<compile_context>
chip_gen: v7x
topology: tpu7x:2x2x1
jax: 0.10.0
libtpu: 0.0.40
codegen_flags: <defaults>
</compile_context>

<pallas_src>
import functools

import jax
import jax.numpy as jnp
from jax import lax
from jax.experimental import pallas as pl
from jax.experimental.pallas import tpu as pltpu


# ---------------------------------------------------------------------------
# Single fused kernel: ReLU->SepConv->BN, ReLU->SepConv->BN, MaxPool(3,2,1),
# skip 1x1-stride-2 conv + BN, residual add.  One grid step per image.
# ---------------------------------------------------------------------------
def _block_kernel(x_ref, w1_ref, b1_ref, w2_ref, b2_ref, wsk_ref, bsk_ref,
                  o_ref,
                  xpad_ref, h1pad_ref, h2pad_ref,
                  *, H, W, Ho, Wo):
    Cin = x_ref.shape[-1]
    Cout = o_ref.shape[-1]
    f32 = jnp.float32

    # ---- stage 0: zero-pad the raw input into VMEM scratch (in-kernel pad;
    # no extra padded copy of x materialized in HBM).
    xpad_ref[...] = jnp.zeros(xpad_ref.shape, xpad_ref.dtype)
    xpad_ref[1:H + 1, 1:W + 1, :] = x_ref[0]

    def sepconv(src_ref, w_ref, b_ref, cin, apply_relu):
        """ReLU -> depthwise3x3 -> pointwise1x1 -> BN, with the depthwise tap
        weights folded into nine (cin, Cout) matrices so the whole contraction
        runs on the MXU (f32 accumulation)."""
        src = src_ref[...]                                  # (H+2, W+2, cin)
        if apply_relu:
            # relu(0) == 0, so applying ReLU after zero-padding is equivalent.
            src = jnp.maximum(src, 0.0)
        acc = jnp.zeros((H * W, Cout), f32)
        t = 0
        for dy in range(3):
            for dx in range(3):
                win = src[dy:dy + H, dx:dx + W, :].reshape(H * W, cin)
                acc = acc + jnp.dot(win, w_ref[t],
                                    preferred_element_type=f32)
                t += 1
        return acc + b_ref[0]                               # (H*W, Cout)

    # ---- stage 1: ReLU -> SepConv(Cin->Cout) -> BN (scale folded into w1)
    h1 = sepconv(xpad_ref, w1_ref, b1_ref, Cin, apply_relu=True)

    # ---- stage 2: ReLU -> SepConv(Cout->Cout) -> BN; relu(h1) is re-padded
    # into a second VMEM scratch, never leaving the chip.
    h1pad_ref[...] = jnp.zeros(h1pad_ref.shape, h1pad_ref.dtype)
    h1pad_ref[1:H + 1, 1:W + 1, :] = jnp.maximum(h1, 0.0).reshape(H, W, Cout)
    h2 = sepconv(h1pad_ref, w2_ref, b2_ref, Cout, apply_relu=False)

    # ---- stage 3: MaxPool2d(3, stride=2, padding=1) via strided reads of the
    # -inf padded VMEM copy of h2 (no 9x candidate tensor in HBM).  Every pool
    # window contains at least one real element, so -inf never leaks.
    h2pad_ref[...] = jnp.full(h2pad_ref.shape, -jnp.inf, h2pad_ref.dtype)
    h2pad_ref[1:H + 1, 1:W + 1, :] = h2.reshape(H, W, Cout)
    pooled = h2pad_ref[pl.ds(0, Ho, stride=2), pl.ds(0, Wo, stride=2), :]
    for dy in range(3):
        for dx in range(3):
            if dy == 0 and dx == 0:
                continue
            cand = h2pad_ref[pl.ds(dy, Ho, stride=2),
                             pl.ds(dx, Wo, stride=2), :]
            pooled = jnp.maximum(pooled, cand)

    # ---- stage 4: skip path = 1x1 conv stride 2 (stride-2 read of the raw
    # padded x, offset 1 == x[::2, ::2]) + BN, fused with the residual add.
    xs = xpad_ref[pl.ds(1, Ho, stride=2), pl.ds(1, Wo, stride=2), :]
    skip = jnp.dot(xs.reshape(Ho * Wo, Cin), wsk_ref[...],
                   preferred_element_type=f32) + bsk_ref[0]
    o_ref[...] = (pooled + skip.reshape(Ho, Wo, Cout)).reshape(1, Ho, Wo, Cout)


# ---------------------------------------------------------------------------
# Block forward: fold BN scales + depthwise taps into MXU weights, one call.
# ---------------------------------------------------------------------------
def block_forward(x_nhwc, p):
    N, H, W, Cin = x_nhwc.shape
    Cout = p["pw1"].shape[1]
    Ho = (H + 2 - 3) // 2 + 1
    Wo = (W + 2 - 3) // 2 + 1
    f32 = jnp.float32

    # Per-tap folded weights: w[t, ci, co] = dw[dy,dx,ci] * pw[ci,co] * bn_scale[co]
    w1 = (p["dw1"][:, :, :, None] * p["pw1"][None, None, :, :]
          * p["s1"][0][None, None, None, :]).reshape(9, Cin, Cout).astype(f32)
    w2 = (p["dw2"][:, :, :, None] * p["pw2"][None, None, :, :]
          * p["s2"][0][None, None, None, :]).reshape(9, Cout, Cout).astype(f32)
    wsk = (p["wskip"] * p["sskip"][0][None, :]).astype(f32)

    kernel = functools.partial(_block_kernel, H=H, W=W, Ho=Ho, Wo=Wo)
    return pl.pallas_call(
        kernel,
        out_shape=jax.ShapeDtypeStruct((N, Ho, Wo, Cout), f32),
        grid=(N,),
        in_specs=[
            pl.BlockSpec((1, H, W, Cin), lambda n: (n, 0, 0, 0)),
            pl.BlockSpec((9, Cin, Cout), lambda n: (0, 0, 0)),
            pl.BlockSpec((1, Cout), lambda n: (0, 0)),
            pl.BlockSpec((9, Cout, Cout), lambda n: (0, 0, 0)),
            pl.BlockSpec((1, Cout), lambda n: (0, 0)),
            pl.BlockSpec((Cin, Cout), lambda n: (0, 0)),
            pl.BlockSpec((1, Cout), lambda n: (0, 0)),
        ],
        out_specs=pl.BlockSpec((1, Ho, Wo, Cout), lambda n: (n, 0, 0, 0)),
        scratch_shapes=[
            pltpu.VMEM((H + 2, W + 2, Cin), f32),    # padded raw x
            pltpu.VMEM((H + 2, W + 2, Cout), f32),   # padded relu(h1)
            pltpu.VMEM((H + 2, W + 2, Cout), f32),   # -inf padded h2 (maxpool)
        ],
        compiler_params=pltpu.CompilerParams(
            dimension_semantics=("parallel",)),      # v7x: one image per TC
    )(x_nhwc, w1, p["b1"], w2, p["b2"], wsk, p["bskip"])


# ---------------------------------------------------------------------------
# Pure-JAX reference (correctness check only)
# ---------------------------------------------------------------------------
def ref_forward(x, p):
    def sep_bn(x, dw, pw, scale, shift):
        x = jnp.maximum(x, 0.0)
        cin = x.shape[-1]
        y = lax.conv_general_dilated(
            x, dw.reshape(3, 3, 1, cin), (1, 1), [(1, 1), (1, 1)],
            dimension_numbers=("NHWC", "HWIO", "NHWC"), feature_group_count=cin)
        y = jnp.einsum("nhwc,cd->nhwd", y, pw)
        return y * scale[0] + shift[0]

    h = sep_bn(x, p["dw1"], p["pw1"], p["s1"], p["b1"])
    h = sep_bn(h, p["dw2"], p["pw2"], p["s2"], p["b2"])
    h = lax.reduce_window(h, -jnp.inf, lax.max, (1, 3, 3, 1), (1, 2, 2, 1),
                          [(0, 0), (1, 1), (1, 1), (0, 0)])
    xs = x[:, ::2, ::2, :]
    skip = jnp.einsum("nhwc,cd->nhwd", xs, p["wskip"]) * p["sskip"][0] + p["bskip"][0]
    return h + skip


def fold_bn(gamma, beta, mean, var, eps=1e-5):
    scale = gamma / jnp.sqrt(var + eps)
    shift = beta - mean * scale
    return scale[None, :], shift[None, :]


def make_params(key, cin, cout):
    ks = jax.random.split(key, 17)
    f32 = jnp.float32

    def bn(kg, kb, km, kv, c):
        gamma = 1.0 + 0.1 * jax.random.normal(kg, (c,), f32)
        beta = 0.1 * jax.random.normal(kb, (c,), f32)
        mean = 0.1 * jax.random.normal(km, (c,), f32)
        var = jnp.abs(jax.random.normal(kv, (c,), f32)) + 0.5
        return fold_bn(gamma, beta, mean, var)

    p = {}
    p["dw1"] = 0.2 * jax.random.normal(ks[0], (3, 3, cin), f32)
    p["pw1"] = 0.2 * jax.random.normal(ks[1], (cin, cout), f32)
    p["s1"], p["b1"] = bn(ks[2], ks[3], ks[4], ks[5], cout)
    p["dw2"] = 0.2 * jax.random.normal(ks[6], (3, 3, cout), f32)
    p["pw2"] = 0.2 * jax.random.normal(ks[7], (cout, cout), f32)
    p["s2"], p["b2"] = bn(ks[8], ks[9], ks[10], ks[11], cout)
    p["wskip"] = 0.2 * jax.random.normal(ks[12], (cin, cout), f32)
    p["sskip"], p["bskip"] = bn(ks[13], ks[14], ks[15], ks[16], cout)
    return p


if __name__ == "__main__":
    key = jax.random.PRNGKey(0)
    kx, kp = jax.random.split(key)

    N, Cin, H, W = 2, 4, 16, 16
    Cout = 8
    x_nchw = jax.random.normal(kx, (N, Cin, H, W), jnp.float32)   # PyTorch layout
    x_nhwc = jnp.transpose(x_nchw, (0, 2, 3, 1))                  # kernel layout

    params = make_params(kp, Cin, Cout)

    out = block_forward(x_nhwc, params)
    out = jax.block_until_ready(out)

    ref = jax.block_until_ready(ref_forward(x_nhwc, params))
    assert out.shape == (N, H // 2, W // 2, Cout), out.shape
    assert jnp.allclose(out, ref, atol=2e-4, rtol=2e-4), \
        float(jnp.max(jnp.abs(out - ref)))

    print("KERNEL_OK")
</pallas_src>

<mosaic_0001>
module attributes {stable_mosaic.version = 11 : i64} {
  func.func @_block_kernel(%arg0: i32, %arg1: memref<1x16x16x4xf32, #tpu.memory_space<vmem>>, %arg2: memref<9x4x8xf32, #tpu.memory_space<vmem>>, %arg3: memref<1x8xf32, #tpu.memory_space<vmem>>, %arg4: memref<9x8x8xf32, #tpu.memory_space<vmem>>, %arg5: memref<1x8xf32, #tpu.memory_space<vmem>>, %arg6: memref<4x8xf32, #tpu.memory_space<vmem>>, %arg7: memref<1x8xf32, #tpu.memory_space<vmem>>, %arg8: memref<1x8x8x8xf32, #tpu.memory_space<vmem>>, %arg9: memref<18x18x4xf32, #tpu.memory_space<vmem>>, %arg10: memref<18x18x8xf32, #tpu.memory_space<vmem>>, %arg11: memref<18x18x8xf32, #tpu.memory_space<vmem>>) attributes {dimension_semantics = [#tpu.dimension_semantics<parallel>], iteration_bounds = array<i64: 2>, scalar_prefetch = 0 : i64, scratch_operands = 3 : i64, tpu.core_type = #tpu.core_type<tc>, window_params = [{transform_indices = @transform_0, window_bounds = array<i64: 1, 16, 16, 4>}, {pipeline_mode = #tpu.pipeline_mode<synchronous>, transform_indices = @transform_1, window_bounds = array<i64: 9, 4, 8>}, {pipeline_mode = #tpu.pipeline_mode<synchronous>, transform_indices = @transform_2, window_bounds = array<i64: 1, 8>}, {pipeline_mode = #tpu.pipeline_mode<synchronous>, transform_indices = @transform_3, window_bounds = array<i64: 9, 8, 8>}, {pipeline_mode = #tpu.pipeline_mode<synchronous>, transform_indices = @transform_4, window_bounds = array<i64: 1, 8>}, {pipeline_mode = #tpu.pipeline_mode<synchronous>, transform_indices = @transform_5, window_bounds = array<i64: 4, 8>}, {pipeline_mode = #tpu.pipeline_mode<synchronous>, transform_indices = @transform_6, window_bounds = array<i64: 1, 8>}, {transform_indices = @transform_7, window_bounds = array<i64: 1, 8, 8, 8>}]} {
    %cst = arith.constant 0.000000e+00 : f32
    %0 = vector.broadcast %cst : f32 to vector<18x18x4xf32>
    %c0 = arith.constant 0 : index
    %c0_0 = arith.constant 0 : index
    %c0_1 = arith.constant 0 : index
    %1 = vector.load %arg9[%c0, %c0_0, %c0_1] : memref<18x18x4xf32, #tpu.memory_space<vmem>>, vector<18x18x4xf32>
    tpu.vector_store %arg9[%c0, %c0_0, %c0_1], %0 {strides = array<i32>} : memref<18x18x4xf32, #tpu.memory_space<vmem>>, vector<18x18x4xf32>,
    %c0_2 = arith.constant 0 : index
    %c0_3 = arith.constant 0 : index
    %c0_4 = arith.constant 0 : index
    %c0_5 = arith.constant 0 : index
    %2 = vector.load %arg1[%c0_2, %c0_3, %c0_4, %c0_5] : memref<1x16x16x4xf32, #tpu.memory_space<vmem>>, vector<1x16x16x4xf32>
    %3 = vector.shape_cast %2 : vector<1x16x16x4xf32> to vector<16x16x4xf32>
    %c1 = arith.constant 1 : index
    %c1_6 = arith.constant 1 : index
    %c0_7 = arith.constant 0 : index
    %4 = vector.load %arg9[%c1, %c1_6, %c0_7] : memref<18x18x4xf32, #tpu.memory_space<vmem>>, vector<16x16x4xf32>
    tpu.vector_store %arg9[%c1, %c1_6, %c0_7], %3 {strides = array<i32>} : memref<18x18x4xf32, #tpu.memory_space<vmem>>, vector<16x16x4xf32>,
    %c0_8 = arith.constant 0 : index
    %c0_9 = arith.constant 0 : index
    %c0_10 = arith.constant 0 : index
    %5 = vector.load %arg9[%c0_8, %c0_9, %c0_10] : memref<18x18x4xf32, #tpu.memory_space<vmem>>, vector<18x18x4xf32>
    %cst_11 = arith.constant 0.000000e+00 : f32
    %6 = vector.broadcast %cst_11 : f32 to vector<18x18x4xf32>
    %7 = arith.maximumf %5, %6 : vector<18x18x4xf32>
    %cst_12 = arith.constant 0.000000e+00 : f32
    %8 = vector.broadcast %cst_12 : f32 to vector<256x8xf32>
    %9 = vector.extract_strided_slice %7 {offsets = [0, 0, 0], sizes = [16, 16, 4], strides = [1, 1, 1]} : vector<18x18x4xf32> to vector<16x16x4xf32>
    %10 = vector.shape_cast %9 : vector<16x16x4xf32> to vector<256x4xf32>
    %c0_13 = arith.constant 0 : index
    %c0_14 = arith.constant 0 : index
    %c0_15 = arith.constant 0 : index
    %11 = vector.load %arg2[%c0_13, %c0_14, %c0_15] : memref<9x4x8xf32, #tpu.memory_space<vmem>>, vector<1x4x8xf32>
    %12 = vector.shape_cast %11 : vector<1x4x8xf32> to vector<4x8xf32>
    %cst_16 = arith.constant dense<0.000000e+00> : vector<256x8xf32>
    %13 = tpu.matmul %10, %12, %cst_16 {dimension_numbers = #tpu.dot_dimension_numbers<[1], [0], [0], [1], [0, 0, 1, 1], [], []>} : vector<256x4xf32>, vector<4x8xf32>, vector<256x8xf32> -> vector<256x8xf32>
    %14 = arith.addf %8, %13 : vector<256x8xf32>
    %15 = vector.extract_strided_slice %7 {offsets = [0, 1, 0], sizes = [16, 16, 4], strides = [1, 1, 1]} : vector<18x18x4xf32> to vector<16x16x4xf32>
    %16 = vector.shape_cast %15 : vector<16x16x4xf32> to vector<256x4xf32>
    %c1_17 = arith.constant 1 : index
    %c0_18 = arith.constant 0 : index
    %c0_19 = arith.constant 0 : index
    %17 = vector.load %arg2[%c1_17, %c0_18, %c0_19] : memref<9x4x8xf32, #tpu.memory_space<vmem>>, vector<1x4x8xf32>
    %18 = vector.shape_cast %17 : vector<1x4x8xf32> to vector<4x8xf32>
    %cst_20 = arith.constant dense<0.000000e+00> : vector<256x8xf32>
    %19 = tpu.matmul %16, %18, %cst_20 {dimension_numbers = #tpu.dot_dimension_numbers<[1], [0], [0], [1], [0, 0, 1, 1], [], []>} : vector<256x4xf32>, vector<4x8xf32>, vector<256x8xf32> -> vector<256x8xf32>
    %20 = arith.addf %14, %19 : vector<256x8xf32>
    %21 = vector.extract_strided_slice %7 {offsets = [0, 2, 0], sizes = [16, 16, 4], strides = [1, 1, 1]} : vector<18x18x4xf32> to vector<16x16x4xf32>
    %22 = vector.shape_cast %21 : vector<16x16x4xf32> to vector<256x4xf32>
    %c2 = arith.constant 2 : index
    %c0_21 = arith.constant 0 : index
    %c0_22 = arith.constant 0 : index
    %23 = vector.load %arg2[%c2, %c0_21, %c0_22] : memref<9x4x8xf32, #tpu.memory_space<vmem>>, vector<1x4x8xf32>
    %24 = vector.shape_cast %23 : vector<1x4x8xf32> to vector<4x8xf32>
    %cst_23 = arith.constant dense<0.000000e+00> : vector<256x8xf32>
    %25 = tpu.matmul %22, %24, %cst_23 {dimension_numbers = #tpu.dot_dimension_numbers<[1], [0], [0], [1], [0, 0, 1, 1], [], []>} : vector<256x4xf32>, vector<4x8xf32>, vector<256x8xf32> -> vector<256x8xf32>
    %26 = arith.addf %20, %25 : vector<256x8xf32>
    %27 = vector.extract_strided_slice %7 {offsets = [1, 0, 0], sizes = [16, 16, 4], strides = [1, 1, 1]} : vector<18x18x4xf32> to vector<16x16x4xf32>
    %28 = vector.shape_cast %27 : vector<16x16x4xf32> to vector<256x4xf32>
    %c3 = arith.constant 3 : index
    %c0_24 = arith.constant 0 : index
    %c0_25 = arith.constant 0 : index
    %29 = vector.load %arg2[%c3, %c0_24, %c0_25] : memref<9x4x8xf32, #tpu.memory_space<vmem>>, vector<1x4x8xf32>
    %30 = vector.shape_cast %29 : vector<1x4x8xf32> to vector<4x8xf32>
    %cst_26 = arith.constant dense<0.000000e+00> : vector<256x8xf32>
    %31 = tpu.matmul %28, %30, %cst_26 {dimension_numbers = #tpu.dot_dimension_numbers<[1], [0], [0], [1], [0, 0, 1, 1], [], []>} : vector<256x4xf32>, vector<4x8xf32>, vector<256x8xf32> -> vector<256x8xf32>
    %32 = arith.addf %26, %31 : vector<256x8xf32>
    %33 = vector.extract_strided_slice %7 {offsets = [1, 1, 0], sizes = [16, 16, 4], strides = [1, 1, 1]} : vector<18x18x4xf32> to vector<16x16x4xf32>
    %34 = vector.shape_cast %33 : vector<16x16x4xf32> to vector<256x4xf32>
    %c4 = arith.constant 4 : index
    %c0_27 = arith.constant 0 : index
    %c0_28 = arith.constant 0 : index
    %35 = vector.load %arg2[%c4, %c0_27, %c0_28] : memref<9x4x8xf32, #tpu.memory_space<vmem>>, vector<1x4x8xf32>
    %36 = vector.shape_cast %35 : vector<1x4x8xf32> to vector<4x8xf32>
    %cst_29 = arith.constant dense<0.000000e+00> : vector<256x8xf32>
    %37 = tpu.matmul %34, %36, %cst_29 {dimension_numbers = #tpu.dot_dimension_numbers<[1], [0], [0], [1], [0, 0, 1, 1], [], []>} : vector<256x4xf32>, vector<4x8xf32>, vector<256x8xf32> -> vector<256x8xf32>
    %38 = arith.addf %32, %37 : vector<256x8xf32>
    %39 = vector.extract_strided_slice %7 {offsets = [1, 2, 0], sizes = [16, 16, 4], strides = [1, 1, 1]} : vector<18x18x4xf32> to vector<16x16x4xf32>
    %40 = vector.shape_cast %39 : vector<16x16x4xf32> to vector<256x4xf32>
    %c5 = arith.constant 5 : index
    %c0_30 = arith.constant 0 : index
    %c0_31 = arith.constant 0 : index
    %41 = vector.load %arg2[%c5, %c0_30, %c0_31] : memref<9x4x8xf32, #tpu.memory_space<vmem>>, vector<1x4x8xf32>
    %42 = vector.shape_cast %41 : vector<1x4x8xf32> to vector<4x8xf32>
    %cst_32 = arith.constant dense<0.000000e+00> : vector<256x8xf32>
    %43 = tpu.matmul %40, %42, %cst_32 {dimension_numbers = #tpu.dot_dimension_numbers<[1], [0], [0], [1], [0, 0, 1, 1], [], []>} : vector<256x4xf32>, vector<4x8xf32>, vector<256x8xf32> -> vector<256x8xf32>
    %44 = arith.addf %38, %43 : vector<256x8xf32>
    %45 = vector.extract_strided_slice %7 {offsets = [2, 0, 0], sizes = [16, 16, 4], strides = [1, 1, 1]} : vector<18x18x4xf32> to vector<16x16x4xf32>
    %46 = vector.shape_cast %45 : vector<16x16x4xf32> to vector<256x4xf32>
    %c6 = arith.constant 6 : index
    %c0_33 = arith.constant 0 : index
    %c0_34 = arith.constant 0 : index
    %47 = vector.load %arg2[%c6, %c0_33, %c0_34] : memref<9x4x8xf32, #tpu.memory_space<vmem>>, vector<1x4x8xf32>
    %48 = vector.shape_cast %47 : vector<1x4x8xf32> to vector<4x8xf32>
    %cst_35 = arith.constant dense<0.000000e+00> : vector<256x8xf32>
    %49 = tpu.matmul %46, %48, %cst_35 {dimension_numbers = #tpu.dot_dimension_numbers<[1], [0], [0], [1], [0, 0, 1, 1], [], []>} : vector<256x4xf32>, vector<4x8xf32>, vector<256x8xf32> -> vector<256x8xf32>
    %50 = arith.addf %44, %49 : vector<256x8xf32>
    %51 = vector.extract_strided_slice %7 {offsets = [2, 1, 0], sizes = [16, 16, 4], strides = [1, 1, 1]} : vector<18x18x4xf32> to vector<16x16x4xf32>
    %52 = vector.shape_cast %51 : vector<16x16x4xf32> to vector<256x4xf32>
    %c7 = arith.constant 7 : index
    %c0_36 = arith.constant 0 : index
    %c0_37 = arith.constant 0 : index
    %53 = vector.load %arg2[%c7, %c0_36, %c0_37] : memref<9x4x8xf32, #tpu.memory_space<vmem>>, vector<1x4x8xf32>
    %54 = vector.shape_cast %53 : vector<1x4x8xf32> to vector<4x8xf32>
    %cst_38 = arith.constant dense<0.000000e+00> : vector<256x8xf32>
    %55 = tpu.matmul %52, %54, %cst_38 {dimension_numbers = #tpu.dot_dimension_numbers<[1], [0], [0], [1], [0, 0, 1, 1], [], []>} : vector<256x4xf32>, vector<4x8xf32>, vector<256x8xf32> -> vector<256x8xf32>
    %56 = arith.addf %50, %55 : vector<256x8xf32>
    %57 = vector.extract_strided_slice %7 {offsets = [2, 2, 0], sizes = [16, 16, 4], strides = [1, 1, 1]} : vector<18x18x4xf32> to vector<16x16x4xf32>
    %58 = vector.shape_cast %57 : vector<16x16x4xf32> to vector<256x4xf32>
    %c8 = arith.constant 8 : index
    %c0_39 = arith.constant 0 : index
    %c0_40 = arith.constant 0 : index
    %59 = vector.load %arg2[%c8, %c0_39, %c0_40] : memref<9x4x8xf32, #tpu.memory_space<vmem>>, vector<1x4x8xf32>
    %60 = vector.shape_cast %59 : vector<1x4x8xf32> to vector<4x8xf32>
    %cst_41 = arith.constant dense<0.000000e+00> : vector<256x8xf32>
    %61 = tpu.matmul %58, %60, %cst_41 {dimension_numbers = #tpu.dot_dimension_numbers<[1], [0], [0], [1], [0, 0, 1, 1], [], []>} : vector<256x4xf32>, vector<4x8xf32>, vector<256x8xf32> -> vector<256x8xf32>
    %62 = arith.addf %56, %61 : vector<256x8xf32>
    %c0_42 = arith.constant 0 : index
    %c0_43 = arith.constant 0 : index
    %63 = vector.load %arg3[%c0_42, %c0_43] : memref<1x8xf32, #tpu.memory_space<vmem>>, vector<1x8xf32>
    %64 = vector.shape_cast %63 : vector<1x8xf32> to vector<8xf32>
    %65 = vector.shape_cast %64 : vector<8xf32> to vector<1x8xf32>
    %66 = vector.broadcast %65 : vector<1x8xf32> to vector<256x8xf32>
    %67 = arith.addf %62, %66 : vector<256x8xf32>
    %cst_44 = arith.constant 0.000000e+00 : f32
    %68 = vector.broadcast %cst_44 : f32 to vector<18x18x8xf32>
    %c0_45 = arith.constant 0 : index
    %c0_46 = arith.constant 0 : index
    %c0_47 = arith.constant 0 : index
    %69 = vector.load %arg10[%c0_45, %c0_46, %c0_47] : memref<18x18x8xf32, #tpu.memory_space<vmem>>, vector<18x18x8xf32>
    tpu.vector_store %arg10[%c0_45, %c0_46, %c0_47], %68 {strides = array<i32>} : memref<18x18x8xf32, #tpu.memory_space<vmem>>, vector<18x18x8xf32>,
    %cst_48 = arith.constant 0.000000e+00 : f32
    %70 = vector.broadcast %cst_48 : f32 to vector<256x8xf32>
    %71 = arith.maximumf %67, %70 : vector<256x8xf32>
    %72 = vector.shape_cast %71 : vector<256x8xf32> to vector<16x16x8xf32>
    %c1_49 = arith.constant 1 : index
    %c1_50 = arith.constant 1 : index
    %c0_51 = arith.constant 0 : index
    %73 = vector.load %arg10[%c1_49, %c1_50, %c0_51] : memref<18x18x8xf32, #tpu.memory_space<vmem>>, vector<16x16x8xf32>
    tpu.vector_store %arg10[%c1_49, %c1_50, %c0_51], %72 {strides = array<i32>} : memref<18x18x8xf32, #tpu.memory_space<vmem>>, vector<16x16x8xf32>,
    %c0_52 = arith.constant 0 : index
    %c0_53 = arith.constant 0 : index
    %c0_54 = arith.constant 0 : index
    %74 = vector.load %arg10[%c0_52, %c0_53, %c0_54] : memref<18x18x8xf32, #tpu.memory_space<vmem>>, vector<18x18x8xf32>
    %cst_55 = arith.constant 0.000000e+00 : f32
    %75 = vector.broadcast %cst_55 : f32 to vector<256x8xf32>
    %76 = vector.extract_strided_slice %74 {offsets = [0, 0, 0], sizes = [16, 16, 8], strides = [1, 1, 1]} : vector<18x18x8xf32> to vector<16x16x8xf32>
    %77 = vector.shape_cast %76 : vector<16x16x8xf32> to vector<256x8xf32>
    %c0_56 = arith.constant 0 : index
    %c0_57 = arith.constant 0 : index
    %c0_58 = arith.constant 0 : index
    %78 = vector.load %arg4[%c0_56, %c0_57, %c0_58] : memref<9x8x8xf32, #tpu.memory_space<vmem>>, vector<1x8x8xf32>
    %79 = vector.shape_cast %78 : vector<1x8x8xf32> to vector<8x8xf32>
    %cst_59 = arith.constant dense<0.000000e+00> : vector<256x8xf32>
    %80 = tpu.matmul %77, %79, %cst_59 {dimension_numbers = #tpu.dot_dimension_numbers<[1], [0], [0], [1], [0, 0, 1, 1], [], []>} : vector<256x8xf32>, vector<8x8xf32>, vector<256x8xf32> -> vector<256x8xf32>
    %81 = arith.addf %75, %80 : vector<256x8xf32>
    %82 = vector.extract_strided_slice %74 {offsets = [0, 1, 0], sizes = [16, 16, 8], strides = [1, 1, 1]} : vector<18x18x8xf32> to vector<16x16x8xf32>
    %83 = vector.shape_cast %82 : vector<16x16x8xf32> to vector<256x8xf32>
    %c1_60 = arith.constant 1 : index
    %c0_61 = arith.constant 0 : index
    %c0_62 = arith.constant 0 : index
    %84 = vector.load %arg4[%c1_60, %c0_61, %c0_62] : memref<9x8x8xf32, #tpu.memory_space<vmem>>, vector<1x8x8xf32>
    %85 = vector.shape_cast %84 : vector<1x8x8xf32> to vector<8x8xf32>
    %cst_63 = arith.constant dense<0.000000e+00> : vector<256x8xf32>
    %86 = tpu.matmul %83, %85, %cst_63 {dimension_numbers = #tpu.dot_dimension_numbers<[1], [0], [0], [1], [0, 0, 1, 1], [], []>} : vector<256x8xf32>, vector<8x8xf32>, vector<256x8xf32> -> vector<256x8xf32>
    %87 = arith.addf %81, %86 : vector<256x8xf32>
    %88 = vector.extract_strided_slice %74 {offsets = [0, 2, 0], sizes = [16, 16, 8], strides = [1, 1, 1]} : vector<18x18x8xf32> to vector<16x16x8xf32>
    %89 = vector.shape_cast %88 : vector<16x16x8xf32> to vector<256x8xf32>
    %c2_64 = arith.constant 2 : index
    %c0_65 = arith.constant 0 : index
    %c0_66 = arith.constant 0 : index
    %90 = vector.load %arg4[%c2_64, %c0_65, %c0_66] : memref<9x8x8xf32, #tpu.memory_space<vmem>>, vector<1x8x8xf32>
    %91 = vector.shape_cast %90 : vector<1x8x8xf32> to vector<8x8xf32>
    %cst_67 = arith.constant dense<0.000000e+00> : vector<256x8xf32>
    %92 = tpu.matmul %89, %91, %cst_67 {dimension_numbers = #tpu.dot_dimension_numbers<[1], [0], [0], [1], [0, 0, 1, 1], [], []>} : vector<256x8xf32>, vector<8x8xf32>, vector<256x8xf32> -> vector<256x8xf32>
    %93 = arith.addf %87, %92 : vector<256x8xf32>
    %94 = vector.extract_strided_slice %74 {offsets = [1, 0, 0], sizes = [16, 16, 8], strides = [1, 1, 1]} : vector<18x18x8xf32> to vector<16x16x8xf32>
    %95 = vector.shape_cast %94 : vector<16x16x8xf32> to vector<256x8xf32>
    %c3_68 = arith.constant 3 : index
    %c0_69 = arith.constant 0 : index
    %c0_70 = arith.constant 0 : index
    %96 = vector.load %arg4[%c3_68, %c0_69, %c0_70] : memref<9x8x8xf32, #tpu.memory_space<vmem>>, vector<1x8x8xf32>
    %97 = vector.shape_cast %96 : vector<1x8x8xf32> to vector<8x8xf32>
    %cst_71 = arith.constant dense<0.000000e+00> : vector<256x8xf32>
    %98 = tpu.matmul %95, %97, %cst_71 {dimension_numbers = #tpu.dot_dimension_numbers<[1], [0], [0], [1], [0, 0, 1, 1], [], []>} : vector<256x8xf32>, vector<8x8xf32>, vector<256x8xf32> -> vector<256x8xf32>
    %99 = arith.addf %93, %98 : vector<256x8xf32>
    %100 = vector.extract_strided_slice %74 {offsets = [1, 1, 0], sizes = [16, 16, 8], strides = [1, 1, 1]} : vector<18x18x8xf32> to vector<16x16x8xf32>
    %101 = vector.shape_cast %100 : vector<16x16x8xf32> to vector<256x8xf32>
    %c4_72 = arith.constant 4 : index
    %c0_73 = arith.constant 0 : index
    %c0_74 = arith.constant 0 : index
    %102 = vector.load %arg4[%c4_72, %c0_73, %c0_74] : memref<9x8x8xf32, #tpu.memory_space<vmem>>, vector<1x8x8xf32>
    %103 = vector.shape_cast %102 : vector<1x8x8xf32> to vector<8x8xf32>
    %cst_75 = arith.constant dense<0.000000e+00> : vector<256x8xf32>
    %104 = tpu.matmul %101, %103, %cst_75 {dimension_numbers = #tpu.dot_dimension_numbers<[1], [0], [0], [1], [0, 0, 1, 1], [], []>} : vector<256x8xf32>, vector<8x8xf32>, vector<256x8xf32> -> vector<256x8xf32>
    %105 = arith.addf %99, %104 : vector<256x8xf32>
    %106 = vector.extract_strided_slice %74 {offsets = [1, 2, 0], sizes = [16, 16, 8], strides = [1, 1, 1]} : vector<18x18x8xf32> to vector<16x16x8xf32>
    %107 = vector.shape_cast %106 : vector<16x16x8xf32> to vector<256x8xf32>
    %c5_76 = arith.constant 5 : index
    %c0_77 = arith.constant 0 : index
    %c0_78 = arith.constant 0 : index
    %108 = vector.load %arg4[%c5_76, %c0_77, %c0_78] : memref<9x8x8xf32, #tpu.memory_space<vmem>>, vector<1x8x8xf32>
    %109 = vector.shape_cast %108 : vector<1x8x8xf32> to vector<8x8xf32>
    %cst_79 = arith.constant dense<0.000000e+00> : vector<256x8xf32>
    %110 = tpu.matmul %107, %109, %cst_79 {dimension_numbers = #tpu.dot_dimension_numbers<[1], [0], [0], [1], [0, 0, 1, 1], [], []>} : vector<256x8xf32>, vector<8x8xf32>, vector<256x8xf32> -> vector<256x8xf32>
    %111 = arith.addf %105, %110 : vector<256x8xf32>
    %112 = vector.extract_strided_slice %74 {offsets = [2, 0, 0], sizes = [16, 16, 8], strides = [1, 1, 1]} : vector<18x18x8xf32> to vector<16x16x8xf32>
    %113 = vector.shape_cast %112 : vector<16x16x8xf32> to vector<256x8xf32>
    %c6_80 = arith.constant 6 : index
    %c0_81 = arith.constant 0 : index
    %c0_82 = arith.constant 0 : index
    %114 = vector.load %arg4[%c6_80, %c0_81, %c0_82] : memref<9x8x8xf32, #tpu.memory_space<vmem>>, vector<1x8x8xf32>
    %115 = vector.shape_cast %114 : vector<1x8x8xf32> to vector<8x8xf32>
    %cst_83 = arith.constant dense<0.000000e+00> : vector<256x8xf32>
    %116 = tpu.matmul %113, %115, %cst_83 {dimension_numbers = #tpu.dot_dimension_numbers<[1], [0], [0], [1], [0, 0, 1, 1], [], []>} : vector<256x8xf32>, vector<8x8xf32>, vector<256x8xf32> -> vector<256x8xf32>
    %117 = arith.addf %111, %116 : vector<256x8xf32>
    %118 = vector.extract_strided_slice %74 {offsets = [2, 1, 0], sizes = [16, 16, 8], strides = [1, 1, 1]} : vector<18x18x8xf32> to vector<16x16x8xf32>
    %119 = vector.shape_cast %118 : vector<16x16x8xf32> to vector<256x8xf32>
    %c7_84 = arith.constant 7 : index
    %c0_85 = arith.constant 0 : index
    %c0_86 = arith.constant 0 : index
    %120 = vector.load %arg4[%c7_84, %c0_85, %c0_86] : memref<9x8x8xf32, #tpu.memory_space<vmem>>, vector<1x8x8xf32>
    %121 = vector.shape_cast %120 : vector<1x8x8xf32> to vector<8x8xf32>
    %cst_87 = arith.constant dense<0.000000e+00> : vector<256x8xf32>
    %122 = tpu.matmul %119, %121, %cst_87 {dimension_numbers = #tpu.dot_dimension_numbers<[1], [0], [0], [1], [0, 0, 1, 1], [], []>} : vector<256x8xf32>, vector<8x8xf32>, vector<256x8xf32> -> vector<256x8xf32>
    %123 = arith.addf %117, %122 : vector<256x8xf32>
    %124 = vector.extract_strided_slice %74 {offsets = [2, 2, 0], sizes = [16, 16, 8], strides = [1, 1, 1]} : vector<18x18x8xf32> to vector<16x16x8xf32>
    %125 = vector.shape_cast %124 : vector<16x16x8xf32> to vector<256x8xf32>
    %c8_88 = arith.constant 8 : index
    %c0_89 = arith.constant 0 : index
    %c0_90 = arith.constant 0 : index
    %126 = vector.load %arg4[%c8_88, %c0_89, %c0_90] : memref<9x8x8xf32, #tpu.memory_space<vmem>>, vector<1x8x8xf32>
    %127 = vector.shape_cast %126 : vector<1x8x8xf32> to vector<8x8xf32>
    %cst_91 = arith.constant dense<0.000000e+00> : vector<256x8xf32>
    %128 = tpu.matmul %125, %127, %cst_91 {dimension_numbers = #tpu.dot_dimension_numbers<[1], [0], [0], [1], [0, 0, 1, 1], [], []>} : vector<256x8xf32>, vector<8x8xf32>, vector<256x8xf32> -> vector<256x8xf32>
    %129 = arith.addf %123, %128 : vector<256x8xf32>
    %c0_92 = arith.constant 0 : index
    %c0_93 = arith.constant 0 : index
    %130 = vector.load %arg5[%c0_92, %c0_93] : memref<1x8xf32, #tpu.memory_space<vmem>>, vector<1x8xf32>
    %131 = vector.shape_cast %130 : vector<1x8xf32> to vector<8xf32>
    %132 = vector.shape_cast %131 : vector<8xf32> to vector<1x8xf32>
    %133 = vector.broadcast %132 : vector<1x8xf32> to vector<256x8xf32>
    %134 = arith.addf %129, %133 : vector<256x8xf32>
    %cst_94 = arith.constant 0xFF800000 : f32
    %135 = vector.broadcast %cst_94 : f32 to vector<18x18x8xf32>
    %c0_95 = arith.constant 0 : index
    %c0_96 = arith.constant 0 : index
    %c0_97 = arith.constant 0 : index
    %136 = vector.load %arg11[%c0_95, %c0_96, %c0_97] : memref<18x18x8xf32, #tpu.memory_space<vmem>>, vector<18x18x8xf32>
    tpu.vector_store %arg11[%c0_95, %c0_96, %c0_97], %135 {strides = array<i32>} : memref<18x18x8xf32, #tpu.memory_space<vmem>>, vector<18x18x8xf32>,
    %137 = vector.shape_cast %134 : vector<256x8xf32> to vector<16x16x8xf32>
    %c1_98 = arith.constant 1 : index
    %c1_99 = arith.constant 1 : index
    %c0_100 = arith.constant 0 : index
    %138 = vector.load %arg11[%c1_98, %c1_99, %c0_100] : memref<18x18x8xf32, #tpu.memory_space<vmem>>, vector<16x16x8xf32>
    tpu.vector_store %arg11[%c1_98, %c1_99, %c0_100], %137 {strides = array<i32>} : memref<18x18x8xf32, #tpu.memory_space<vmem>>, vector<16x16x8xf32>,
    %c0_101 = arith.constant 0 : index
    %c0_102 = arith.constant 0 : index
    %c0_103 = arith.constant 0 : index
    %139 = tpu.strided_load %arg11[%c0_101, %c0_102, %c0_103] {strides = array<i32: 2, 2, 1>} : memref<18x18x8xf32, #tpu.memory_space<vmem>>, vector<8x8x8xf32>
    %c0_104 = arith.constant 0 : index
    %c1_105 = arith.constant 1 : index
    %c0_106 = arith.constant 0 : index
    %140 = tpu.strided_load %arg11[%c0_104, %c1_105, %c0_106] {strides = array<i32: 2, 2, 1>} : memref<18x18x8xf32, #tpu.memory_space<vmem>>, vector<8x8x8xf32>
    %141 = arith.maximumf %139, %140 : vector<8x8x8xf32>
    %c0_107 = arith.constant 0 : index
    %c2_108 = arith.constant 2 : index
    %c0_109 = arith.constant 0 : index
    %142 = tpu.strided_load %arg11[%c0_107, %c2_108, %c0_109] {strides = array<i32: 2, 2, 1>} : memref<18x18x8xf32, #tpu.memory_space<vmem>>, vector<8x8x8xf32>
    %143 = arith.maximumf %141, %142 : vector<8x8x8xf32>
    %c1_110 = arith.constant 1 : index
    %c0_111 = arith.constant 0 : index
    %c0_112 = arith.constant 0 : index
    %144 = tpu.strided_load %arg11[%c1_110, %c0_111, %c0_112] {strides = array<i32: 2, 2, 1>} : memref<18x18x8xf32, #tpu.memory_space<vmem>>, vector<8x8x8xf32>
    %145 = arith.maximumf %143, %144 : vector<8x8x8xf32>
    %c1_113 = arith.constant 1 : index
    %c1_114 = arith.constant 1 : index
    %c0_115 = arith.constant 0 : index
    %146 = tpu.strided_load %arg11[%c1_113, %c1_114, %c0_115] {strides = array<i32: 2, 2, 1>} : memref<18x18x8xf32, #tpu.memory_space<vmem>>, vector<8x8x8xf32>
    %147 = arith.maximumf %145, %146 : vector<8x8x8xf32>
    %c1_116 = arith.constant 1 : index
    %c2_117 = arith.constant 2 : index
    %c0_118 = arith.constant 0 : index
    %148 = tpu.strided_load %arg11[%c1_116, %c2_117, %c0_118] {strides = array<i32: 2, 2, 1>} : memref<18x18x8xf32, #tpu.memory_space<vmem>>, vector<8x8x8xf32>
    %149 = arith.maximumf %147, %148 : vector<8x8x8xf32>
    %c2_119 = arith.constant 2 : index
    %c0_120 = arith.constant 0 : index
    %c0_121 = arith.constant 0 : index
    %150 = tpu.strided_load %arg11[%c2_119, %c0_120, %c0_121] {strides = array<i32: 2, 2, 1>} : memref<18x18x8xf32, #tpu.memory_space<vmem>>, vector<8x8x8xf32>
    %151 = arith.maximumf %149, %150 : vector<8x8x8xf32>
    %c2_122 = arith.constant 2 : index
    %c1_123 = arith.constant 1 : index
    %c0_124 = arith.constant 0 : index
    %152 = tpu.strided_load %arg11[%c2_122, %c1_123, %c0_124] {strides = array<i32: 2, 2, 1>} : memref<18x18x8xf32, #tpu.memory_space<vmem>>, vector<8x8x8xf32>
    %153 = arith.maximumf %151, %152 : vector<8x8x8xf32>
    %c2_125 = arith.constant 2 : index
    %c2_126 = arith.constant 2 : index
    %c0_127 = arith.constant 0 : index
    %154 = tpu.strided_load %arg11[%c2_125, %c2_126, %c0_127] {strides = array<i32: 2, 2, 1>} : memref<18x18x8xf32, #tpu.memory_space<vmem>>, vector<8x8x8xf32>
    %155 = arith.maximumf %153, %154 : vector<8x8x8xf32>
    %c1_128 = arith.constant 1 : index
    %c1_129 = arith.constant 1 : index
    %c0_130 = arith.constant 0 : index
    %156 = tpu.strided_load %arg9[%c1_128, %c1_129, %c0_130] {strides = array<i32: 2, 2, 1>} : memref<18x18x4xf32, #tpu.memory_space<vmem>>, vector<8x8x4xf32>
    %157 = vector.shape_cast %156 : vector<8x8x4xf32> to vector<64x4xf32>
    %c0_131 = arith.constant 0 : index
    %c0_132 = arith.constant 0 : index
    %158 = vector.load %arg6[%c0_131, %c0_132] : memref<4x8xf32, #tpu.memory_space<vmem>>, vector<4x8xf32>
    %cst_133 = arith.constant dense<0.000000e+00> : vector<64x8xf32>
    %159 = tpu.matmul %157, %158, %cst_133 {dimension_numbers = #tpu.dot_dimension_numbers<[1], [0], [0], [1], [0, 0, 1, 1], [], []>} : vector<64x4xf32>, vector<4x8xf32>, vector<64x8xf32> -> vector<64x8xf32>
    %c0_134 = arith.constant 0 : index
    %c0_135 = arith.constant 0 : index
    %160 = vector.load %arg7[%c0_134, %c0_135] : memref<1x8xf32, #tpu.memory_space<vmem>>, vector<1x8xf32>
    %161 = vector.shape_cast %160 : vector<1x8xf32> to vector<8xf32>
    %162 = vector.shape_cast %161 : vector<8xf32> to vector<1x8xf32>
    %163 = vector.broadcast %162 : vector<1x8xf32> to vector<64x8xf32>
    %164 = arith.addf %159, %163 : vector<64x8xf32>
    %165 = vector.shape_cast %164 : vector<64x8xf32> to vector<8x8x8xf32>
    %166 = arith.addf %155, %165 : vector<8x8x8xf32>
    %167 = vector.shape_cast %166 : vector<8x8x8xf32> to vector<1x8x8x8xf32>
    %c0_136 = arith.constant 0 : index
    %c0_137 = arith.constant 0 : index
    %c0_138 = arith.constant 0 : index
    %c0_139 = arith.constant 0 : index
    %168 = vector.load %arg8[%c0_136, %c0_137, %c0_138, %c0_139] : memref<1x8x8x8xf32, #tpu.memory_space<vmem>>, vector<1x8x8x8xf32>
    tpu.vector_store %arg8[%c0_136, %c0_137, %c0_138, %c0_139], %167 {strides = array<i32>} : memref<1x8x8x8xf32, #tpu.memory_space<vmem>>, vector<1x8x8x8xf32>,
    return
  }
  func.func @transform_0(%arg0: i32) -> (i32, i32, i32, i32) {
    %c0_i32 = arith.constant 0 : i32
    %c0_i32_0 = arith.constant 0 : i32
    %c0_i32_1 = arith.constant 0 : i32
    %c0_i32_2 = arith.constant 0 : i32
    return %arg0, %c0_i32, %c0_i32_0, %c0_i32_1 : i32, i32, i32, i32
  }
  func.func @transform_1(%arg0: i32) -> (i32, i32, i32) {
    %c0_i32 = arith.constant 0 : i32
    %c0_i32_0 = arith.constant 0 : i32
    %c0_i32_1 = arith.constant 0 : i32
    %c0_i32_2 = arith.constant 0 : i32
    return %c0_i32, %c0_i32_0, %c0_i32_1 : i32, i32, i32
  }
  func.func @transform_2(%arg0: i32) -> (i32, i32) {
    %c0_i32 = arith.constant 0 : i32
    %c0_i32_0 = arith.constant 0 : i32
    %c0_i32_1 = arith.constant 0 : i32
    return %c0_i32, %c0_i32_0 : i32, i32
  }
  func.func @transform_3(%arg0: i32) -> (i32, i32, i32) {
    %c0_i32 = arith.constant 0 : i32
    %c0_i32_0 = arith.constant 0 : i32
    %c0_i32_1 = arith.constant 0 : i32
    %c0_i32_2 = arith.constant 0 : i32
    return %c0_i32, %c0_i32_0, %c0_i32_1 : i32, i32, i32
  }
  func.func @transform_4(%arg0: i32) -> (i32, i32) {
    %c0_i32 = arith.constant 0 : i32
    %c0_i32_0 = arith.constant 0 : i32
    %c0_i32_1 = arith.constant 0 : i32
    return %c0_i32, %c0_i32_0 : i32, i32
  }
  func.func @transform_5(%arg0: i32) -> (i32, i32) {
    %c0_i32 = arith.constant 0 : i32
    %c0_i32_0 = arith.constant 0 : i32
    %c0_i32_1 = arith.constant 0 : i32
    return %c0_i32, %c0_i32_0 : i32, i32
  }
  func.func @transform_6(%arg0: i32) -> (i32, i32) {
    %c0_i32 = arith.constant 0 : i32
    %c0_i32_0 = arith.constant 0 : i32
    %c0_i32_1 = arith.constant 0 : i32
    return %c0_i32, %c0_i32_0 : i32, i32
  }
  func.func @transform_7(%arg0: i32) -> (i32, i32, i32, i32) {
    %c0_i32 = arith.constant 0 : i32
    %c0_i32_0 = arith.constant 0 : i32
    %c0_i32_1 = arith.constant 0 : i32
    %c0_i32_2 = arith.constant 0 : i32
    return %arg0, %c0_i32, %c0_i32_0, %c0_i32_1 : i32, i32, i32, i32
  }
}

</mosaic_0001>

<bundles_post_ra>
// kernel: tpu_custom_call.1
= control target key start
LH: loop header
LB: loop body
LE: loop exit
PB: predicated region body
PF: predicated region fallthrough
CT: control target
= control target key end

     0   :  { %12 = vsyncpa [#allocation6], 0  ;;  %s12372_s0 = inlined_call_operand.vmem [shape: f32[2,16,16,4], index: 0, kind: input, shape index: {}]   ;;  %s12373_s1 = inlined_call_operand.vmem [shape: f32[9,4,8], index: 1, kind: input, shape index: {}]   ;;  %s12374_s2 = inlined_call_operand.vmem [shape: f32[1,8], index: 2, kind: input, shape index: {}]   ;;  %s12375_s3 = inlined_call_operand.vmem [shape: f32[9,8,8], index: 3, kind: input, shape index: {}]   ;;  %s12376_s4 = inlined_call_operand.vmem [shape: f32[1,8], index: 4, kind: input, shape index: {}]   ;;  %s12377_s5 = inlined_call_operand.vmem [shape: f32[4,8], index: 5, kind: input, shape index: {}]   ;;  %s12378_s6 = inlined_call_operand.vmem [shape: f32[1,8], index: 6, kind: input, shape index: {}]   ;;  %s12379_s7 = inlined_call_operand.hbm [shape: f32[2,8,8,8], index: 7, kind: output, shape index: {}]  }
   0x1   :  { %14 = vsyncpa [#allocation6 + $0x1], 0  ;;  %s9626_s24 = smov 0   ;;  %s9628_s25 = smov 0  }
   0x2   :  { %s9630_s26 = smov 0   ;;  %s9632_s27 = smov 0  }
   0x3 LB: > { %s9647_s28 = sadd.s32 4294967295, %s9579_s27   ;;  %s6816_s29 = sadd.s32 4294967294, %s9579_s27   ;;  %s9579_s27 = sphi %s9632_s27, %s12770_s27   ;;  %s9575_s26 = sphi %s9630_s26, %s12769_s26   ;;  %s9571_s25 = sphi %s9628_s25, %s12768_s25   ;;  %s9567_s24 = sphi %s9626_s24, %s12767_s24  }
   0x4   : > { %s9651_s30 = sadd.s32 1, %s9579_s27   ;;  %s179_s8 = sadd.s32 1, %s9575_s26 }
   0x5   : > { %s176_s9 = ssub.s32 %s9579_s27, %s9651_s30  ;;  %p189_p0 = scmp.ne.s32.totalorder %s9575_s26, %s9571_s25 }
   0x6   : > { %p177_p1 = scmp.eq.s32.totalorder %s176_s9, 0  ;;  %p190_p2 = scmp.eq.s32.totalorder %s9647_s28, 1 }
   0x7   : > { %p195_p3 = scmp.ne.s32.totalorder %s9571_s25, %s9567_s24  ;;  %p196_p4 = scmp.eq.s32.totalorder %s6816_s29, 1 }
   0x8   : > { %s9662_s10 = scalar_select %p177_p1, %s9575_s26, %s179_s8  }
   0x9   : > { %p9664_p5 = por %p190_p2, %p189_p0  ;;  %p9668_p6 = por %p196_p4, %p195_p3 }
   0xa   : > { %p6819_p7 = scmp.ge.s32.totalorder %s9579_s27, 1  ;;  %p240_p8 = scmp.lt.s32.totalorder %s9579_s27, 3 }
   0xc   : > { %p241_p9 = pnand %p6819_p7, %p240_p8 }
   0xe   : > { %244 = sbr.rel (%p241_p9) target bundleno = 1611 (0x64b), region = 48 }
  0x15   : > { %v9677_v0 = vld [vmem:[%s12373_s1 + $0x4] sm:$0xf]  ;;  %vm702_vm0 = vcmask 1043456   ;;  %vm277_vm1 = vcmask 31744   ;;  %v12380_v1 = vmov 0.0   ;;  %vm280_vm2 = vcmask 25600  }
  0x16   : > { %8046 = vmatprep.subr.msk.mxu0 %vm702_vm0, %v9677_v0  ;;  %278 = vst.msk [vmem:[#allocation2] sm:$0xff] %vm277_vm1, %v12380_v1  ;;  %279 = vst.msk [vmem:[#allocation2 + $0x8] sm:$0xff] %vm277_vm1, %v12380_v1  ;;  %v9756_v2 = vld [vmem:[%s12373_s1] sm:$0xf]  ;;  %p272_p10 = scmp.lt.s32.totalorder %s9647_s28, 1  ;;  %8960 = vmatprep.subr.msk.mxu1 %vm702_vm0, %v9677_v0  ;;  %vm555_vm3 = vcmask 1046528  }
  0x17   : > { %282 = vst.msk [vmem:[#allocation2 + $0x18] sm:$0xff] %vm277_vm1, %v12380_v1  ;;  %283 = vst.msk [vmem:[#allocation2 + $0x20] sm:$0xff] %vm277_vm1, %v12380_v1  ;;  %8047 = vmatpush3.msk.msra.mxu0 %vm702_vm0, %v9677_v0  ;;  %8961 = vmatpush3.msk.msra.mxu1 %vm702_vm0, %v9677_v0  ;;  %vm1223_vm4 = vcmask 1045504   ;;  %v9848_v29 = vld [vmem:[%s12373_s1 + $0x8] sm:$0xf]  ;;  %vm3291_vm5 = vcmask 64512  }
  0x18   : > { %285 = vst.msk [vmem:[#allocation2 + $0x30] sm:$0xff] %vm277_vm1, %v12380_v1  ;;  %286 = vst.msk [vmem:[#allocation2 + $0x38] sm:$0xff] %vm277_vm1, %v12380_v1  ;;  %8096 = vmatprep.subr.msk.mxu0 %vm702_vm0, %v9756_v2  ;;  %s273_s17 = scalar_select %p272_p10, %s9647_s28, 1  ;;  %vm3294_vm6 = vcmask 58368  }
  0x19   : > { %288 = vst.msk [vmem:[#allocation2 + $0x48] sm:$0xff] %vm277_vm1, %v12380_v1  ;;  %289 = vst.msk [vmem:[#allocation2 + $0x50] sm:$0xff] %vm277_vm1, %v12380_v1  ;;  %s269_s20 = sand.u32 1, %s9571_s25   ;;  %s7442_s23 = sshll.u32 %s9647_s28, 10 }
  0x1a   : > { %291 = vst.msk [vmem:[#allocation2 + $0x60] sm:$0xff] %vm277_vm1, %v12380_v1  ;;  %292 = vst.msk [vmem:[#allocation2 + $0x68] sm:$0xff] %vm277_vm1, %v12380_v1  ;;  %s7441_s18 = sshll.u32 %s273_s17, 8  ;;  %s12323_s13 = scalar_lea.hbm %s12379_s7, %s7442_s23 }
  0x1b   : > { %294 = vst.msk [vmem:[#allocation2 + $0x78] sm:$0xff] %vm277_vm1, %v12380_v1  ;;  %295 = vst.msk [vmem:[#allocation2 + $0x80] sm:$0xff] %vm277_vm1, %v12380_v1  ;;  %s9809_s21 = scalar_lea.vmem %s12372_s0, %s7441_s18  ;;  %s12331_s14 = scalar_lea.sflag [#allocation6], %s269_s20 }
  0x1c   : > { %297 = vst.msk [vmem:[#allocation2 + $0x90] sm:$0xff] %vm277_vm1, %v12380_v1  ;;  %298 = vst.msk [vmem:[#allocation2 + $0x98] sm:$0xff] %vm277_vm1, %v12380_v1  ;;  %v333_v3 = vld [vmem:[%s9809_s21] sm:$0xff]  ;;  %v334_v4 = vld [vmem:[%s9809_s21 + $0x8] sm:$0xff]  ;;  %s9583_s15 = smov [#allocation5]  }
  0x1d   : > { %300 = vst.msk [vmem:[#allocation2 + $0xa8] sm:$0xff] %vm277_vm1, %v12380_v1  ;;  %301 = vst.msk [vmem:[#allocation2 + $0xb0] sm:$0xff] %vm277_vm1, %v12380_v1  ;;  %v335_v5 = vld [vmem:[%s9809_s21 + $0x10] sm:$0xff]  ;;  %v398_v6 = vld [vmem:[#allocation2] sm:$0xff]  ;;  %s9521_s16 = sshll.u32 %s9583_s15, 4  ;;  %s9522_s16 = int_to_ptr.vmem [resolvable:$false] %s9521_s16 }
  0x1e   : > { %303 = vst.msk [vmem:[#allocation2 + $0xc0] sm:$0xff] %vm277_vm1, %v12380_v1  ;;  %304 = vst.msk [vmem:[#allocation2 + $0xc8] sm:$0xff] %vm277_vm1, %v12380_v1  ;;  %v399_v7 = vld [vmem:[#allocation2 + $0x8] sm:$0xff]  ;;  %v336_v8 = vld [vmem:[%s9809_s21 + $0x18] sm:$0xff]  ;;  %v9818_v9 = vmax.f32 %v398_v6, 0.0  ;;  %s9523_s17 = scalar_lea.vmem %s9522_s16, 2048 }
  0x1f   : > { %306 = vst.msk [vmem:[#allocation2 + $0xd8] sm:$0xff] %vm277_vm1, %v12380_v1  ;;  %307 = vst.msk [vmem:[#allocation2 + $0xe0] sm:$0xff] %vm277_vm1, %v12380_v1  ;;  %v9820_v10 = vmax.f32 %v399_v7, 0.0  ;;  %v337_v12 = vld [vmem:[%s9809_s21 + $0x20] sm:$0xff]  ;;  %v338_v13 = vld [vmem:[%s9809_s21 + $0x28] sm:$0xff] }
  0x20   : > { %309 = vst.msk [vmem:[#allocation2 + $0xf0] sm:$0xff] %vm277_vm1, %v12380_v1  ;;  %310 = vst.msk [vmem:[#allocation2 + $0xf8] sm:$0xff] %vm277_vm1, %v12380_v1  ;;  %v339_v15 = vld [vmem:[%s9809_s21 + $0x30] sm:$0xff]  ;;  %v340_v16 = vld [vmem:[%s9809_s21 + $0x38] sm:$0xff]  ;;  %v556_v18 = vrot.slane %v9818_v9, 1  ;;  %v1224_v23 = vrot.slane %v9818_v9, 2 }
  0x21   : > { %312 = vst.msk [vmem:[#allocation2 + $0x108] sm:$0xff] %vm277_vm1, %v12380_v1  ;;  %313 = vst.msk [vmem:[#allocation2 + $0x110] sm:$0xff] %vm277_vm1, %v12380_v1  ;;  %v341_v17 = vld [vmem:[%s9809_s21 + $0x40] sm:$0xff]  ;;  %v557_v19 = vrot.slane %v9820_v10, 1  ;;  %v342_v20 = vld [vmem:[%s9809_s21 + $0x48] sm:$0xff]  ;;  %v1225_v30 = vrot.slane %v9820_v10, 2 }
  0x22   : > { %315 = vst.msk [vmem:[#allocation2 + $0x120] sm:$0xff] %vm277_vm1, %v12380_v1  ;;  %316 = vst.msk [vmem:[#allocation2 + $0x128] sm:$0xff] %vm277_vm1, %v12380_v1  ;;  %v343_v21 = vld [vmem:[%s9809_s21 + $0x50] sm:$0xff]  ;;  %v344_v22 = vld [vmem:[%s9809_s21 + $0x58] sm:$0xff] }
  0x23   : > { %318 = vst.msk [vmem:[#allocation2 + $0x138] sm:$0xff] %vm277_vm1, %v12380_v1  ;;  %319 = vst.msk [vmem:[#allocation2 + $0x140] sm:$0xff] %vm277_vm1, %v12380_v1  ;;  %v345_v26 = vld [vmem:[%s9809_s21 + $0x60] sm:$0xff]  ;;  %v346_v27 = vld [vmem:[%s9809_s21 + $0x68] sm:$0xff]  ;;  %v558_v31 = vsel %vm555_vm3, %v556_v18, %v557_v19  ;;  %v9867_v39 = vsel %vm1223_vm4, %v1224_v23, %v1225_v30 }
  0x24   : > { %321 = vst.msk [vmem:[#allocation2 + $0x150] sm:$0xff] %vm277_vm1, %v12380_v1  ;;  %322 = vst.msk [vmem:[#allocation2 + $0x158] sm:$0xff] %vm277_vm1, %v12380_v1  ;;  %v347_v28 = vld [vmem:[%s9809_s21 + $0x70] sm:$0xff]  ;;  %v348_v32 = vld [vmem:[%s9809_s21 + $0x78] sm:$0xff]  ;;  %8048 = vmatprep.mubr.msk.f32.mxu0 %vm277_vm1, %v558_v31 }
  0x25   : > { %324 = vst.msk [vmem:[#allocation2 + $0x168] sm:$0xff] %vm277_vm1, %v12380_v1  ;;  %325 = vst.msk [vmem:[#allocation2 + $0x170] sm:$0xff] %vm277_vm1, %v12380_v1  ;;  %v349_v33 = vld [vmem:[%s9809_s21 + $0x80] sm:$0xff]  ;;  %v350_v34 = vld [vmem:[%s9809_s21 + $0x88] sm:$0xff] }
  0x26   : > { %327 = vst.msk [vmem:[#allocation2 + $0x180] sm:$0xff] %vm277_vm1, %v12380_v1  ;;  %328 = vst.msk [vmem:[#allocation2 + $0x188] sm:$0xff] %vm277_vm1, %v12380_v1  ;;  %v351_v36 = vld [vmem:[%s9809_s21 + $0x90] sm:$0xff]  ;;  %v352_v37 = vld [vmem:[%s9809_s21 + $0x98] sm:$0xff] }
  0x27   : > { %330 = vst.msk [vmem:[#allocation2 + $0x198] sm:$0xff] %vm277_vm1, %v12380_v1  ;;  %331 = vst.msk [vmem:[#allocation2 + $0x1a0] sm:$0xff] %vm277_vm1, %v12380_v1  ;;  %v353_v38 = vld [vmem:[%s9809_s21 + $0xa0] sm:$0xff]  ;;  %v354_v49 = vld [vmem:[%s9809_s21 + $0xa8] sm:$0xff] }
  0x28   : > { %281 = vst.msk [vmem:[#allocation2 + $0x10] sm:$0x3] %vm280_vm2, %v12380_v1  ;;  %284 = vst.msk [vmem:[#allocation2 + $0x28] sm:$0x3] %vm280_vm2, %v12380_v1 }
  0x29   : > { %287 = vst.msk [vmem:[#allocation2 + $0x40] sm:$0x3] %vm280_vm2, %v12380_v1  ;;  %290 = vst.msk [vmem:[#allocation2 + $0x58] sm:$0x3] %vm280_vm2, %v12380_v1 }
  0x2a   : > { %293 = vst.msk [vmem:[#allocation2 + $0x70] sm:$0x3] %vm280_vm2, %v12380_v1  ;;  %296 = vst.msk [vmem:[#allocation2 + $0x88] sm:$0x3] %vm280_vm2, %v12380_v1 }
  0x2b   : > { %299 = vst.msk [vmem:[#allocation2 + $0xa0] sm:$0x3] %vm280_vm2, %v12380_v1  ;;  %302 = vst.msk [vmem:[#allocation2 + $0xb8] sm:$0x3] %vm280_vm2, %v12380_v1 }
  0x2c   : > { %305 = vst.msk [vmem:[#allocation2 + $0xd0] sm:$0x3] %vm280_vm2, %v12380_v1  ;;  %308 = vst.msk [vmem:[#allocation2 + $0xe8] sm:$0x3] %vm280_vm2, %v12380_v1 }
  0x2d   : > { %311 = vst.msk [vmem:[#allocation2 + $0x100] sm:$0x3] %vm280_vm2, %v12380_v1  ;;  %314 = vst.msk [vmem:[#allocation2 + $0x118] sm:$0x3] %vm280_vm2, %v12380_v1 }
  0x2e   : > { %317 = vst.msk [vmem:[#allocation2 + $0x130] sm:$0x3] %vm280_vm2, %v12380_v1  ;;  %320 = vst.msk [vmem:[#allocation2 + $0x148] sm:$0x3] %vm280_vm2, %v12380_v1 }
  0x2f   : > { %323 = vst.msk [vmem:[#allocation2 + $0x160] sm:$0x3] %vm280_vm2, %v12380_v1  ;;  %326 = vst.msk [vmem:[#allocation2 + $0x178] sm:$0x3] %vm280_vm2, %v12380_v1  ;;  %v400_v11 = vld [vmem:[#allocation2 + $0x10] sm:$0x3] }
  0x30   : > { %329 = vst.msk [vmem:[#allocation2 + $0x190] sm:$0x3] %vm280_vm2, %v12380_v1  ;;  %332 = vst.msk [vmem:[#allocation2 + $0x1a8] sm:$0x3] %vm280_vm2, %v12380_v1  ;;  %v454_v14 = vmax.f32 %v400_v11, 0.0 }
  0x31   : > { %366 = vst.msk [vmem:[#allocation2 + $0x19] sm:$0xff] %vm277_vm1, %v333_v3  ;;  %367 = vst.msk [vmem:[#allocation2 + $0x21] sm:$0xff] %vm277_vm1, %v334_v4 }
  0x32   : > { %368 = vst.msk [vmem:[#allocation2 + $0x31] sm:$0xff] %vm277_vm1, %v335_v5  ;;  %369 = vst.msk [vmem:[#allocation2 + $0x39] sm:$0xff] %vm277_vm1, %v336_v8  ;;  %v559_v24 = vrot.slane %v454_v14, 1  ;;  %v1227_v25 = vrot.slane %v454_v14, 2 }
  0x33   : > { %370 = vst.msk [vmem:[#allocation2 + $0x49] sm:$0xff] %vm277_vm1, %v337_v12  ;;  %371 = vst.msk [vmem:[#allocation2 + $0x51] sm:$0xff] %vm277_vm1, %v338_v13 }
  0x34   : > { %372 = vst.msk [vmem:[#allocation2 + $0x61] sm:$0xff] %vm277_vm1, %v339_v15  ;;  %373 = vst.msk [vmem:[#allocation2 + $0x69] sm:$0xff] %vm277_vm1, %v340_v16  ;;  %v560_v35 = vsel %vm555_vm3, %v557_v19, %v559_v24  ;;  %v9870_v40 = vsel %vm1223_vm4, %v1225_v30, %v1227_v25 }
  0x35   : > { %374 = vst.msk [vmem:[#allocation2 + $0x79] sm:$0xff] %vm277_vm1, %v341_v17  ;;  %375 = vst.msk [vmem:[#allocation2 + $0x81] sm:$0xff] %vm277_vm1, %v342_v20  ;;  %8049 = vmatmul.mubr.msk.f32.vlgmr.msra.gmra.mrb[0].mxu0 %vm277_vm1, %v560_v35 }
  0x36   : > { %376 = vst.msk [vmem:[#allocation2 + $0x91] sm:$0xff] %vm277_vm1, %v343_v21  ;;  %377 = vst.msk [vmem:[#allocation2 + $0x99] sm:$0xff] %vm277_vm1, %v344_v22  ;;  %8097 = vmatpush3.msk.msra.mxu0 %vm702_vm0, %v9756_v2 }
  0x37   : > { %378 = vst.msk [vmem:[#allocation2 + $0xa9] sm:$0xff] %vm277_vm1, %v345_v26  ;;  %379 = vst.msk [vmem:[#allocation2 + $0xb1] sm:$0xff] %vm277_vm1, %v346_v27  ;;  %8146 = vmatprep.subr.msk.mxu0 %vm702_vm0, %v9848_v29 }
  0x38   : > { %380 = vst.msk [vmem:[#allocation2 + $0xc1] sm:$0xff] %vm277_vm1, %v347_v28  ;;  %381 = vst.msk [vmem:[#allocation2 + $0xc9] sm:$0xff] %vm277_vm1, %v348_v32  ;;  %v401_v41 = vld [vmem:[#allocation2 + $0x18] sm:$0xff]  ;;  %v402_v42 = vld [vmem:[#allocation2 + $0x20] sm:$0xff] }
  0x39   : > { %382 = vst.msk [vmem:[#allocation2 + $0xd9] sm:$0xff] %vm277_vm1, %v349_v33  ;;  %383 = vst.msk [vmem:[#allocation2 + $0xe1] sm:$0xff] %vm277_vm1, %v350_v34  ;;  %v9873_v43 = vld [vmem:[#allocation2 + $0x28] sm:$0x3]  ;;  %v9880_v44 = vmax.f32 %v401_v41, 0.0  ;;  %v9882_v45 = vmax.f32 %v402_v42, 0.0 }
  0x3a   : > { %384 = vst.msk [vmem:[#allocation2 + $0xf1] sm:$0xff] %vm277_vm1, %v351_v36  ;;  %385 = vst.msk [vmem:[#allocation2 + $0xf9] sm:$0xff] %vm277_vm1, %v352_v37  ;;  %v12389_v46 = vmax.f32 %v9873_v43, 0.0  ;;  %v404_v47 = vld [vmem:[#allocation2 + $0x30] sm:$0xff]  ;;  %v405_v48 = vld [vmem:[#allocation2 + $0x38] sm:$0xff] }
  0x3b   : > { %386 = vst.msk [vmem:[#allocation2 + $0x109] sm:$0xff] %vm277_vm1, %v353_v38  ;;  %v9886_v50 = vmax.f32 %v404_v47, 0.0  ;;  %v9888_v51 = vmax.f32 %v405_v48, 0.0  ;;  %v9890_v52 = vld [vmem:[#allocation2 + $0x40] sm:$0x3]  ;;  %v407_v53 = vld [vmem:[#allocation2 + $0x48] sm:$0xff] }
  0x3c   : > { %v408_v54 = vld [vmem:[#allocation2 + $0x50] sm:$0xff]  ;;  %387 = vst.msk [vmem:[#allocation2 + $0x111] sm:$0xff] %vm277_vm1, %v354_v49  ;;  %v561_v55 = vrot.slane %v9880_v44, 1  ;;  %v562_v56 = vrot.slane %v9882_v45, 1  ;;  %v564_v57 = vrot.slane %v12389_v46, 1  ;;  %v12387_v58 = vmax.f32 %v9890_v52, 0.0 }
  0x3d   : > { %v9900_v59 = vld [vmem:[#allocation2 + $0x58] sm:$0x3]  ;;  %v566_v60 = vrot.slane %v9886_v50, 1  ;;  %v567_v61 = vrot.slane %v9888_v51, 1  ;;  %v9904_v62 = vmax.f32 %v407_v53, 0.0  ;;  %v9906_v63 = vmax.f32 %v408_v54, 0.0 }
  0x3e   : > { %v410_v0 = vld [vmem:[#allocation2 + $0x60] sm:$0xff]  ;;  %v411_v2 = vld [vmem:[#allocation2 + $0x68] sm:$0xff]  ;;  %v9909_v3 = vsel %vm555_vm3, %v561_v55, %v562_v56  ;;  %v9912_v4 = vsel %vm555_vm3, %v562_v56, %v564_v57  ;;  %v569_v5 = vrot.slane %v12387_v58, 1  ;;  %v12386_v6 = vmax.f32 %v9900_v59, 0.0  ;;  %v9917_v7 = vld [vmem:[#allocation2 + $0x70] sm:$0x3] }
  0x3f   : > { %v413_v8 = vld [vmem:[#allocation2 + $0x78] sm:$0xff]  ;;  %v414_v11 = vld [vmem:[#allocation2 + $0x80] sm:$0xff]  ;;  %8051 = vmatprep.mubr.msk.f32.mxu0 %vm277_vm1, %v9909_v3  ;;  %v9922_v12 = vsel %vm555_vm3, %v566_v60, %v567_v61  ;;  %v571_v13 = vrot.slane %v9904_v62, 1  ;;  %v572_v14 = vrot.slane %v9906_v63, 1  ;;  %v9926_v15 = vmax.f32 %v410_v0, 0.0  ;;  %v416_v26 = vld [vmem:[#allocation2 + $0x90] sm:$0xff] }
  0x40   : > { %8052 = vmatmul.mubr.msk.f32.gmra.mrb[2].mxu0 %vm277_vm1, %v9912_v4  ;;  %v574_v16 = vrot.slane %v12386_v6, 1  ;;  %v9932_v17 = vmax.f32 %v411_v2, 0.0  ;;  %v9937_v18 = vsel %vm555_vm3, %v567_v61, %v569_v5  ;;  %v12385_v19 = vmax.f32 %v9917_v7, 0.0  ;;  %v9949_v25 = vld [vmem:[#allocation2 + $0x88] sm:$0x3]  ;;  %v417_v27 = vld [vmem:[#allocation2 + $0x98] sm:$0xff] }
  0x41   : > { %8054 = vmatprep.mubr.msk.f32.mxu0 %vm277_vm1, %v9922_v12  ;;  %v9940_v20 = vmax.f32 %v413_v8, 0.0  ;;  %v9942_v21 = vmax.f32 %v414_v11, 0.0  ;;  %v9945_v22 = vsel %vm555_vm3, %v571_v13, %v572_v14  ;;  %v576_v23 = vrot.slane %v9926_v15, 1  ;;  %v9963_v34 = vld [vmem:[#allocation2 + $0xa0] sm:$0x3]  ;;  %v419_v38 = vld [vmem:[#allocation2 + $0xa8] sm:$0xff] }
  0x42   : > { %v577_v24 = vrot.slane %v9932_v17, 1  ;;  %v9954_v28 = vsel %vm555_vm3, %v572_v14, %v574_v16  ;;  %v579_v30 = vrot.slane %v12385_v19, 1  ;;  %v12384_v33 = vmax.f32 %v9949_v25, 0.0  ;;  %v420_v41 = vld [vmem:[#allocation2 + $0xb0] sm:$0xff]  ;;  %v9976_v48 = vld [vmem:[#allocation2 + $0xb8] sm:$0x3] }
  0x43   : > { %v581_v31 = vrot.slane %v9940_v20, 1  ;;  %v582_v32 = vrot.slane %v9942_v21, 1  ;;  %v9968_v36 = vmax.f32 %v416_v26, 0.0  ;;  %v9970_v37 = vmax.f32 %v417_v27, 0.0  ;;  %v355_v42 = vld [vmem:[%s9809_s21 + $0xb0] sm:$0xff]  ;;  %v422_v49 = vld [vmem:[#allocation2 + $0xc0] sm:$0xff] }
  0x44   : > { %8055 = vmatmul.mubr.msk.f32.gmra.mrb[4].mxu0 %vm277_vm1, %v9937_v18  ;;  %v9966_v35 = vsel %vm555_vm3, %v576_v23, %v577_v24  ;;  %v12383_v47 = vmax.f32 %v9963_v34, 0.0  ;;  %v356_v53 = vld [vmem:[%s9809_s21 + $0xb8] sm:$0xff]  ;;  %388 = vst.msk [vmem:[#allocation2 + $0x121] sm:$0xff] %vm277_vm1, %v355_v42  ;;  %v357_v54 = vld [vmem:[%s9809_s21 + $0xc0] sm:$0xff]  ;;  %v358_v55 = vld [vmem:[%s9809_s21 + $0xc8] sm:$0xff]  ;;  %v9985_v56 = vsel %vm555_vm3, %v577_v24, %v579_v30  ;;  %v584_v60 = vrot.slane %v12384_v33, 1 }
  0x45   : > { %8057 = vmatprep.mubr.msk.f32.mxu0 %vm277_vm1, %v9945_v22  ;;  %12544 = vst [vmem:[#allocation8_spill] sm:$0xff] %v9985_v56  ;;  %v9988_v57 = vsel %vm555_vm3, %v581_v31, %v582_v32  ;;  %v423_v61 = vld [vmem:[#allocation2 + $0xc8] sm:$0xff]  ;;  %389 = vst.msk [vmem:[#allocation2 + $0x129] sm:$0xff] %vm277_vm1, %v356_v53  ;;  %v359_v0 = vld [vmem:[%s9809_s21 + $0xd0] sm:$0xff]  ;;  %v586_v5 = vrot.slane %v9968_v36, 1  ;;  %v587_v8 = vrot.slane %v9970_v37, 1 }
  0x46   : > { %12545 = vst [vmem:[#allocation9_spill] sm:$0xff] %v9988_v57  ;;  %390 = vst.msk [vmem:[#allocation2 + $0x139] sm:$0xff] %vm277_vm1, %v357_v54  ;;  %v360_v2 = vld [vmem:[%s9809_s21 + $0xd8] sm:$0xff]  ;;  %v9999_v11 = vmax.f32 %v419_v38, 0.0  ;;  %v10001_v13 = vmax.f32 %v420_v41, 0.0  ;;  %v361_v14 = vld [vmem:[%s9809_s21 + $0xe0] sm:$0xff]  ;;  %v10016_v24 = vsel %vm555_vm3, %v582_v32, %v584_v60 }
  0x47   : > { %391 = vst.msk [vmem:[#allocation2 + $0x141] sm:$0xff] %vm277_vm1, %v358_v55  ;;  %392 = vst.msk [vmem:[#allocation2 + $0x151] sm:$0xff] %vm277_vm1, %v359_v0  ;;  %v362_v16 = vld [vmem:[%s9809_s21 + $0xe8] sm:$0xff]  ;;  %v589_v23 = vrot.slane %v12383_v47, 1  ;;  %v12382_v26 = vmax.f32 %v9976_v48, 0.0  ;;  %v10019_v27 = vmax.f32 %v422_v49, 0.0  ;;  %v10024_v31 = vsel %vm555_vm3, %v586_v5, %v587_v8 }
  0x48   : > { %8058 = vmatmul.mubr.msk.f32.gmra.mrb[6].mxu0 %vm277_vm1, %v9954_v28  ;;  %393 = vst.msk [vmem:[#allocation2 + $0x159] sm:$0xff] %vm277_vm1, %v360_v2  ;;  %394 = vst.msk [vmem:[#allocation2 + $0x169] sm:$0xff] %vm277_vm1, %v361_v14  ;;  %v10021_v30 = vmax.f32 %v423_v61, 0.0  ;;  %v591_v38 = vrot.slane %v9999_v11, 1  ;;  %v592_v41 = vrot.slane %v10001_v13, 1  ;;  %v425_v53 = vld [vmem:[#allocation2 + $0xd8] sm:$0xff] }
  0x49   : > { %8060 = vmatprep.mubr.msk.f32.mxu0 %vm277_vm1, %v9966_v35  ;;  %395 = vst.msk [vmem:[#allocation2 + $0x171] sm:$0xff] %vm277_vm1, %v362_v16  ;;  %12546 = vst [vmem:[#allocation10_spill] sm:$0xff] %v10016_v24  ;;  %v10028_v42 = vld [vmem:[#allocation2 + $0xd0] sm:$0x3]  ;;  %v426_v54 = vld [vmem:[#allocation2 + $0xe0] sm:$0xff]  ;;  %v10033_v32 = vsel %vm555_vm3, %v587_v8, %v589_v23  ;;  %v594_v49 = vrot.slane %v12382_v26, 1 }
  0x4a   : > { %12547 = vst [vmem:[#allocation11_spill] sm:$0xff] %v10024_v31  ;;  %12548 = vst [vmem:[#allocation12_spill] sm:$0xff] %v10033_v32  ;;  %v596_v55 = vrot.slane %v10019_v27, 1  ;;  %v597_v60 = vrot.slane %v10021_v30, 1  ;;  %v12388_v61 = vmax.f32 %v10028_v42, 0.0  ;;  %v10045_v2 = vsel %vm555_vm3, %v591_v38, %v592_v41  ;;  %v428_v14 = vld [vmem:[#allocation2 + $0xf0] sm:$0xff] }
  0x4b   : > { %v10042_v0 = vld [vmem:[#allocation2 + $0xe8] sm:$0x3]  ;;  %12549 = vst [vmem:[#allocation13_spill] sm:$0xff] %v10045_v2  ;;  %v10047_v5 = vmax.f32 %v425_v53, 0.0  ;;  %v10049_v8 = vmax.f32 %v426_v54, 0.0  ;;  %v429_v16 = vld [vmem:[#allocation2 + $0xf8] sm:$0xff]  ;;  %v10057_v1 = vsel %vm555_vm3, %v592_v41, %v594_v49 }
  0x4c   : > { %8061 = vmatmul.mubr.msk.f32.gmra.mrb[8].mxu0 %vm277_vm1, %v9985_v56  ;;  %v12392_v23 = vmax.f32 %v10042_v0, 0.0  ;;  %12550 = vst [vmem:[#allocation14_spill] sm:$0xff] %v10057_v1  ;;  %v10060_v38 = vsel %vm555_vm3, %v596_v55, %v597_v60  ;;  %v599_v53 = vrot.slane %v12388_v61, 1  ;;  %v10064_v54 = vld [vmem:[#allocation2 + $0x100] sm:$0x3]  ;;  %v10068_v33 = vmax.f32 %v428_v14, 0.0 }
  0x4d   : > { %8063 = vmatprep.mubr.msk.f32.mxu0 %vm277_vm1, %v9988_v57  ;;  %12551 = vst [vmem:[#allocation15_spill] sm:$0xff] %v10060_v38  ;;  %v601_v26 = vrot.slane %v10047_v5, 1  ;;  %v602_v47 = vrot.slane %v10049_v8, 1  ;;  %v10070_v19 = vmax.f32 %v429_v16, 0.0  ;;  %v431_v6 = vld [vmem:[#allocation2 + $0x108] sm:$0xff]  ;;  %v432_v58 = vld [vmem:[#allocation2 + $0x110] sm:$0xff] }
  0x4e   : > { %v604_v41 = vrot.slane %v12392_v23, 1  ;;  %v10079_v49 = vsel %vm555_vm3, %v597_v60, %v599_v53  ;;  %v12405_v55 = vmax.f32 %v10064_v54, 0.0  ;;  %v10082_v14 = vmax.f32 %v431_v6, 0.0  ;;  %v10091_v23 = vld [vmem:[#allocation2 + $0x118] sm:$0x3] }
  0x4f   : > { %12552 = vst [vmem:[#allocation16_spill] sm:$0xff] %v10079_v49  ;;  %v10084_v16 = vmax.f32 %v432_v58, 0.0  ;;  %v10087_v61 = vsel %vm555_vm3, %v601_v26, %v602_v47  ;;  %v606_v46 = vrot.slane %v10068_v33, 1  ;;  %v12416_v53 = vmax.f32 %v10091_v23, 0.0 }
  0x50   : > { %8064 = vmatmul.mubr.msk.f32.gmra.mrb[10].mxu0 %vm277_vm1, %v10016_v24  ;;  %12553 = vst [vmem:[#allocation17_spill] sm:$0xff] %v10087_v61  ;;  %v10096_v60 = vsel %vm555_vm3, %v602_v47, %v604_v41  ;;  %v609_v58 = vrot.slane %v12405_v55, 1  ;;  %v611_v6 = vrot.slane %v10082_v14, 1  ;;  %v10112_v47 = vld [vmem:[#allocation2 + $0x130] sm:$0x3]  ;;  %v437_v41 = vld [vmem:[#allocation2 + $0x138] sm:$0xff] }
  0x51   : > { %8066 = vmatprep.mubr.msk.f32.mxu0 %vm277_vm1, %v10024_v31  ;;  %12554 = vst [vmem:[#allocation18_spill] sm:$0xff] %v10096_v60  ;;  %v612_v26 = vrot.slane %v10084_v16, 1  ;;  %v10129_v56 = vmax.f32 %v437_v41, 0.0 }
  0x54   : > { %8067 = vmatmul.mubr.msk.f32.gmra.mrb[12].mxu0 %vm277_vm1, %v10033_v32 }
  0x55   : > { %8069 = vmatprep.mubr.msk.f32.mxu0 %vm277_vm1, %v10045_v2  ;;  %v434_v2 = vld [vmem:[#allocation2 + $0x120] sm:$0xff] }
  0x56   : > { %v10108_v31 = vmax.f32 %v434_v2, 0.0  ;;  %v614_v2 = vrot.slane %v12416_v53, 1 }
  0x58   : > { %8070 = vmatmul.mubr.msk.f32.gmra.mrb[14].mxu0 %vm277_vm1, %v10057_v1  ;;  %v607_v1 = vrot.slane %v10070_v19, 1  ;;  %v616_v24 = vrot.slane %v10108_v31, 1 }
  0x59   : > { %8072 = vmatprep.mubr.msk.f32.mxu0 %vm277_vm1, %v10060_v38  ;;  %v435_v38 = vld [vmem:[#allocation2 + $0x128] sm:$0xff] }
  0x5a   : > { %v10106_v32 = vsel %vm555_vm3, %v606_v46, %v607_v1  ;;  %v10119_v55 = vsel %vm555_vm3, %v607_v1, %v609_v58  ;;  %v10122_v46 = vsel %vm555_vm3, %v611_v6, %v612_v26  ;;  %v10140_v1 = vsel %vm555_vm3, %v612_v26, %v614_v2 }
  0x5b   : > { %12555 = vst [vmem:[#allocation19_spill] sm:$0xff] %v10106_v32  ;;  %12556 = vst [vmem:[#allocation20_spill] sm:$0xff] %v10119_v55 }
  0x5c   : > { %8073 = vmatmul.mubr.msk.f32.gmra.mrb[16].mxu0 %vm277_vm1, %v10079_v49  ;;  %v10110_v49 = vmax.f32 %v435_v38, 0.0  ;;  %12557 = vst [vmem:[#allocation21_spill] sm:$0xff] %v10122_v46  ;;  %v12417_v38 = vmax.f32 %v10112_v47, 0.0  ;;  %12558 = vst [vmem:[#allocation22_spill] sm:$0xff] %v10140_v1 }
  0x5d   : > { %8075 = vmatprep.mubr.msk.f32.mxu0 %vm277_vm1, %v10087_v61  ;;  %v438_v61 = vld [vmem:[#allocation2 + $0x140] sm:$0xff] }
  0x5e   : > { %v617_v57 = vrot.slane %v10110_v49, 1  ;;  %v619_v58 = vrot.slane %v12417_v38, 1 }
  0x60   : > { %8076 = vmatmul.mubr.msk.f32.gmra.mrb[18].mxu0 %vm277_vm1, %v10096_v60  ;;  %v10131_v60 = vmax.f32 %v438_v61, 0.0  ;;  %v10146_v41 = vsel %vm555_vm3, %v616_v24, %v617_v57  ;;  %v621_v61 = vrot.slane %v10129_v56, 1  ;;  %v10155_v26 = vsel %vm555_vm3, %v617_v57, %v619_v58  ;;  %v6924_v57 = vld [vmem:[%s12373_s1 + $0xc] sm:$0xf]  ;;  %v364_v58 = vld [vmem:[%s9809_s21 + $0xf8] sm:$0xff] }
  0x61   : > { %8078 = vmatprep.mubr.msk.f32.mxu0 %vm277_vm1, %v10106_v32  ;;  %v10133_v32 = vld [vmem:[#allocation2 + $0x148] sm:$0x3]  ;;  %12559 = vst [vmem:[#allocation23_spill] sm:$0xff] %v10146_v41  ;;  %12560 = vst [vmem:[#allocation24_spill] sm:$0xff] %v10155_v26 }
  0x62   : > { %v12418_v6 = vmax.f32 %v10133_v32, 0.0  ;;  %v622_v53 = vrot.slane %v10131_v60, 1  ;;  %397 = vst.msk [vmem:[#allocation2 + $0x189] sm:$0xff] %vm277_vm1, %v364_v58  ;;  %v1230_v58 = vrot.slane %v9882_v45, 2 }
  0x64   : > { %8079 = vmatmul.mubr.msk.f32.gmra.mrb[20].mxu0 %vm277_vm1, %v10119_v55  ;;  %v624_v2 = vrot.slane %v12418_v6, 1  ;;  %v10160_v38 = vsel %vm555_vm3, %v621_v61, %v622_v53  ;;  %v443_v61 = vld [vmem:[#allocation2 + $0x168] sm:$0xff] }
  0x65   : > { %8081 = vmatprep.mubr.msk.f32.mxu0 %vm277_vm1, %v10122_v46  ;;  %12561 = vst [vmem:[#allocation25_spill] sm:$0xff] %v10160_v38  ;;  %v10243_v6 = vmax.f32 %v443_v61, 0.0  ;;  %v1240_v46 = vrot.slane %v9906_v63, 2 }
  0x66   : > { %v10167_v24 = vsel %vm555_vm3, %v622_v53, %v624_v2  ;;  %v441_v53 = vld [vmem:[#allocation2 + $0x158] sm:$0xff] }
  0x67   : > { %12562 = vst [vmem:[#allocation26_spill] sm:$0xff] %v10167_v24  ;;  %v10239_v2 = vmax.f32 %v441_v53, 0.0  ;;  %v12563_v53 = vmax.f32 %v9873_v43, 0.0  ;;  %v12564_v43 = vmax.f32 %v9890_v52, 0.0  ;;  %v12565_v52 = vmax.f32 %v9900_v59, 0.0 }
  0x68   : > { %8082 = vmatmul.mubr.msk.f32.gmra.mrb[22].mxu0 %vm277_vm1, %v10140_v1  ;;  %v1239_v1 = vrot.slane %v9904_v62, 2 }
  0x69   : > { %8084 = vmatprep.mubr.msk.f32.mxu0 %vm277_vm1, %v10146_v41  ;;  %v1232_v61 = vrot.slane %v12563_v53, 2  ;;  %v10267_v41 = vld [vmem:[%s12373_s1 + $0x10] sm:$0xf] }
  0x6c   : > { %8085 = vmatmul.mubr.msk.f32.gmra.mrb[24].mxu0 %vm277_vm1, %v10155_v26  ;;  %v1235_v26 = vrot.slane %v9888_v51, 2 }
  0x6d   : > { %8087 = vmatprep.mubr.msk.f32.mxu0 %vm277_vm1, %v10160_v38 }
  0x70   : > { %8088 = vmatmul.mubr.msk.f32.gmra.mrb[26].mxu0 %vm277_vm1, %v10167_v24  ;;  %v444_v24 = vld [vmem:[#allocation2 + $0x170] sm:$0xff] }
  0x71   : > { %8098 = vmatprep.mubr.msk.f32.mxu0 %vm277_vm1, %v9818_v9  ;;  %v440_v9 = vld [vmem:[#allocation2 + $0x150] sm:$0xff] }
  0x74   : > { %8099 = vmatmul.mubr.msk.f32.vlgmr.msra.gmra.mrb[0].mxu0 %vm277_vm1, %v9820_v10  ;;  %v363_v10 = vld [vmem:[%s9809_s21 + $0xf0] sm:$0xff]  ;;  %s6820_s21 = sshll.u32 %s269_s20, 6 }
  0x75   : > { %8147 = vmatpush3.msk.msra.mxu0 %vm702_vm0, %v9848_v29  ;;  %8101 = vmatprep.mubr.msk.f32.mxu0 %vm277_vm1, %v9880_v44  ;;  %v10232_v29 = vmax.f32 %v440_v9, 0.0  ;;  %396 = vst.msk [vmem:[#allocation2 + $0x181] sm:$0xff] %vm277_vm1, %v363_v10  ;;  %v10247_v9 = vmax.f32 %v444_v24, 0.0  ;;  %v1229_v10 = vrot.slane %v9880_v44, 2  ;;  %v1234_v24 = vrot.slane %v9886_v50, 2  ;;  %s12249_s22 = scalar_lea.vmem [#allocation5], %s6820_s21 }
  0x76   : > { %8196 = vmatprep.subr.msk.mxu0 %vm702_vm0, %v6924_v57  ;;  %s6700_s29 = sshll.u32 %s12249_s22, 4  ;;  %s12325_s29 = int_to_ptr.vmem [resolvable:$true] %s6700_s29 }
  0x77   : > { %v10260_v38 = vsel %vm1223_vm4, %v1229_v10, %v1230_v58  ;;  %v1237_v10 = vrot.slane %v12564_v43, 2  ;;  %v10280_v53 = vsel %vm1223_vm4, %v1234_v24, %v1235_v26  ;;  %v1245_v24 = vrot.slane %v9932_v17, 2  ;;  %s9517_s28 = scalar_lea.vmem %s12325_s29, 1024  ;;  %p9524_p0 = scmp.lt.s32.totalorder %s12325_s29, %s9522_s16 }
  0x78   : > { %8102 = vmatmul.mubr.msk.f32.gmra.mrb[2].mxu0 %vm277_vm1, %v9882_v45  ;;  %p9518_p11 = scmp.ne.s32.totalorder %s12325_s29, %s9517_s28  ;;  %p9525_p1 = scmp.lt.s32.totalorder %s9523_s17, %s9517_s28 }
  0x79   : > { %8104 = vmatprep.mubr.msk.f32.mxu0 %vm277_vm1, %v9886_v50 }
  0x7a   : > { %p9519_p12 = pnand %p9518_p11, %p9664_p5  ;;  %p9526_p2 = por %p9525_p1, %p9524_p0 }
  0x7c   : > { %8105 = vmatmul.mubr.msk.f32.gmra.mrb[4].mxu0 %vm277_vm1, %v9888_v51  ;;  %p9520_p13 = pneg %p9519_p12 }
  0x7d   : > { %8107 = vmatprep.mubr.msk.f32.mxu0 %vm277_vm1, %v9904_v62 }
  0x7e   : > { %p9527_p3 = pnand %p9526_p2, %p9520_p13 }
  0x80   : > { %8108 = vmatmul.mubr.msk.f32.gmra.mrb[6].mxu0 %vm277_vm1, %v9906_v63 }
  0x81   : > { %8110 = vmatprep.mubr.msk.f32.mxu0 %vm277_vm1, %v9926_v15 }
  0x84   : > { %8111 = vmatmul.mubr.msk.f32.gmra.mrb[8].mxu0 %vm277_vm1, %v9932_v17 }
  0x85   : > { %8113 = vmatprep.mubr.msk.f32.mxu0 %vm277_vm1, %v9940_v20 }
  0x88   : > { %8114 = vmatmul.mubr.msk.f32.gmra.mrb[10].mxu0 %vm277_vm1, %v9942_v21 }
  0x89   : > { %8116 = vmatprep.mubr.msk.f32.mxu0 %vm277_vm1, %v9968_v36 }
  0x8c   : > { %8117 = vmatmul.mubr.msk.f32.gmra.mrb[12].mxu0 %vm277_vm1, %v9970_v37 }
  0x8d   : > { %8119 = vmatprep.mubr.msk.f32.mxu0 %vm277_vm1, %v9999_v11 }
  0x90   : > { %8120 = vmatmul.mubr.msk.f32.gmra.mrb[14].mxu0 %vm277_vm1, %v10001_v13 }
  0x91   : > { %8122 = vmatprep.mubr.msk.f32.mxu0 %vm277_vm1, %v10019_v27 }
  0x94   : > { %8123 = vmatmul.mubr.msk.f32.gmra.mrb[16].mxu0 %vm277_vm1, %v10021_v30 }
  0x95   : > { %8125 = vmatprep.mubr.msk.f32.mxu0 %vm277_vm1, %v10047_v5 }
  0x98   : > { %8126 = vmatmul.mubr.msk.f32.gmra.mrb[18].mxu0 %vm277_vm1, %v10049_v8 }
  0x99   : > { %8128 = vmatprep.mubr.msk.f32.mxu0 %vm277_vm1, %v10068_v33 }
  0x9c   : > { %8129 = vmatmul.mubr.msk.f32.gmra.mrb[20].mxu0 %vm277_vm1, %v10070_v19 }
  0x9d   : > { %8131 = vmatprep.mubr.msk.f32.mxu0 %vm277_vm1, %v10082_v14 }
  0xa0   : > { %8132 = vmatmul.mubr.msk.f32.gmra.mrb[22].mxu0 %vm277_vm1, %v10084_v16 }
  0xa1   : > { %8134 = vmatprep.mubr.msk.f32.mxu0 %vm277_vm1, %v10108_v31 }
  0xa4   : > { %8135 = vmatmul.mubr.msk.f32.gmra.mrb[24].mxu0 %vm277_vm1, %v10110_v49 }
  0xa5   : > { %8137 = vmatprep.mubr.msk.f32.mxu0 %vm277_vm1, %v10129_v56 }
  0xa8   : > { %8138 = vmatmul.mubr.msk.f32.gmra.mrb[26].mxu0 %vm277_vm1, %v10131_v60 }
  0xa9   : > { %8140 = vmatprep.mubr.msk.f32.mxu0 %vm277_vm1, %v10232_v29 }
  0xac   : > { %8141 = vmatmul.mubr.msk.f32.gmra.mrb[28].mxu0 %vm277_vm1, %v10239_v2 }
  0xad   : > { %8143 = vmatprep.mubr.msk.f32.mxu0 %vm277_vm1, %v10243_v6 }
  0xb0   : > { %8144 = vmatmul.mubr.msk.f32.gmra.mrb[30].mxu0 %vm277_vm1, %v10247_v9 }
  0xb1   : > { %8148 = vmatprep.mubr.msk.f32.mxu0 %vm277_vm1, %v9867_v39  ;;  %v10275_v39 = vsel %vm1223_vm4, %v1230_v58, %v1232_v61  ;;  %v10296_v58 = vsel %vm1223_vm4, %v1239_v1, %v1240_v46  ;;  %v1244_v61 = vrot.slane %v9926_v15, 2  ;;  %v1249_v1 = vrot.slane %v9940_v20, 2 }
  0xb2   : > { %12566 = vst [vmem:[#allocation27_spill] sm:$0xff] %v10296_v58 }
  0xb4   : > { %8149 = vmatmul.mubr.msk.f32.vlgmr.msra.gmra.mrb[0].mxu0 %vm277_vm1, %v9870_v40  ;;  %v10291_v40 = vsel %vm1223_vm4, %v1235_v26, %v1237_v10  ;;  %v12568_v26 = vmax.f32 %v9917_v7, 0.0  ;;  %v10310_v10 = vsel %vm1223_vm4, %v1244_v61, %v1245_v24  ;;  %v1254_v61 = vrot.slane %v9968_v36, 2 }
  0xb5   : > { %8197 = vmatpush3.msk.msra.mxu0 %vm702_vm0, %v6924_v57  ;;  %8151 = vmatprep.mubr.msk.f32.mxu0 %vm277_vm1, %v10260_v38  ;;  %v1242_v57 = vrot.slane %v12565_v52, 2  ;;  %12569 = vst [vmem:[#allocation29_spill] sm:$0xff] %v10310_v10  ;;  %v1250_v52 = vrot.slane %v9942_v21, 2 }
  0xb6   : > { %8246 = vmatprep.subr.msk.mxu0 %vm702_vm0, %v10267_v41  ;;  %v1247_v59 = vrot.slane %v12568_v26, 2  ;;  %v1255_v26 = vrot.slane %v9970_v37, 2 }
  0xb7   : > { %v10305_v43 = vsel %vm1223_vm4, %v1240_v46, %v1242_v57  ;;  %v12571_v46 = vmax.f32 %v9949_v25, 0.0  ;;  %v10324_v57 = vsel %vm1223_vm4, %v1249_v1, %v1250_v52  ;;  %v1259_v1 = vrot.slane %v9999_v11, 2 }
  0xb8   : > { %8152 = vmatmul.mubr.msk.f32.gmra.mrb[2].mxu0 %vm277_vm1, %v10275_v39  ;;  %12567 = vst [vmem:[#allocation28_spill] sm:$0xff] %v10305_v43  ;;  %12572 = vst [vmem:[#allocation31_spill] sm:$0xff] %v10324_v57 }
  0xb9   : > { %8154 = vmatprep.mubr.msk.f32.mxu0 %vm277_vm1, %v10280_v53  ;;  %v1252_v7 = vrot.slane %v12571_v46, 2  ;;  %v1260_v46 = vrot.slane %v10001_v13, 2 }
  0xbc   : > { %8155 = vmatmul.mubr.msk.f32.gmra.mrb[4].mxu0 %vm277_vm1, %v10291_v40 }
  0xbd   : > { %8157 = vmatprep.mubr.msk.f32.mxu0 %vm277_vm1, %v10296_v58  ;;  %v10319_v58 = vsel %vm1223_vm4, %v1245_v24, %v1247_v59  ;;  %v12574_v24 = vmax.f32 %v9963_v34, 0.0  ;;  %v10338_v59 = vsel %vm1223_vm4, %v1254_v61, %v1255_v26  ;;  %v1264_v61 = vrot.slane %v10019_v27, 2 }
  0xbe   : > { %12570 = vst [vmem:[#allocation30_spill] sm:$0xff] %v10319_v58  ;;  %12575 = vst [vmem:[#allocation33_spill] sm:$0xff] %v10338_v59 }
  0xbf   : > { %v1257_v25 = vrot.slane %v12574_v24, 2  ;;  %v1265_v24 = vrot.slane %v10021_v30, 2 }
  0xc0   : > { %8158 = vmatmul.mubr.msk.f32.gmra.mrb[6].mxu0 %vm277_vm1, %v10305_v43 }
  0xc1   : > { %8160 = vmatprep.mubr.msk.f32.mxu0 %vm277_vm1, %v10310_v10  ;;  %v10333_v10 = vsel %vm1223_vm4, %v1250_v52, %v1252_v7  ;;  %v12577_v52 = vmax.f32 %v9976_v48, 0.0  ;;  %v10352_v7 = vsel %vm1223_vm4, %v1259_v1, %v1260_v46  ;;  %v1269_v1 = vrot.slane %v10047_v5, 2 }
  0xc2   : > { %12573 = vst [vmem:[#allocation32_spill] sm:$0xff] %v10333_v10  ;;  %12578 = vst [vmem:[#allocation35_spill] sm:$0xff] %v10352_v7 }
  0xc3   : > { %v1262_v34 = vrot.slane %v12577_v52, 2  ;;  %v1270_v52 = vrot.slane %v10049_v8, 2 }
  0xc4   : > { %8161 = vmatmul.mubr.msk.f32.gmra.mrb[8].mxu0 %vm277_vm1, %v10319_v58 }
  0xc5   : > { %8163 = vmatprep.mubr.msk.f32.mxu0 %vm277_vm1, %v10324_v57  ;;  %v10347_v57 = vsel %vm1223_vm4, %v1255_v26, %v1257_v25  ;;  %v12580_v26 = vmax.f32 %v10028_v42, 0.0  ;;  %v10366_v25 = vsel %vm1223_vm4, %v1264_v61, %v1265_v24  ;;  %v1274_v61 = vrot.slane %v10068_v33, 2 }
  0xc6   : > { %12576 = vst [vmem:[#allocation34_spill] sm:$0xff] %v10347_v57  ;;  %12581 = vst [vmem:[#allocation37_spill] sm:$0xff] %v10366_v25 }
  0xc7   : > { %v1267_v48 = vrot.slane %v12580_v26, 2  ;;  %v1275_v26 = vrot.slane %v10070_v19, 2 }
  0xc8   : > { %8164 = vmatmul.mubr.msk.f32.gmra.mrb[10].mxu0 %vm277_vm1, %v10333_v10 }
  0xc9   : > { %8166 = vmatprep.mubr.msk.f32.mxu0 %vm277_vm1, %v10338_v59  ;;  %v10361_v59 = vsel %vm1223_vm4, %v1260_v46, %v1262_v34  ;;  %v12583_v46 = vmax.f32 %v10042_v0, 0.0  ;;  %v10380_v34 = vsel %vm1223_vm4, %v1269_v1, %v1270_v52  ;;  %v1279_v1 = vrot.slane %v10082_v14, 2 }
  0xca   : > { %12579 = vst [vmem:[#allocation36_spill] sm:$0xff] %v10361_v59  ;;  %12584 = vst [vmem:[#allocation39_spill] sm:$0xff] %v10380_v34 }
  0xcb   : > { %v1272_v42 = vrot.slane %v12583_v46, 2  ;;  %v1280_v46 = vrot.slane %v10084_v16, 2 }
  0xcc   : > { %8167 = vmatmul.mubr.msk.f32.gmra.mrb[12].mxu0 %vm277_vm1, %v10347_v57 }
  0xcd   : > { %8169 = vmatprep.mubr.msk.f32.mxu0 %vm277_vm1, %v10352_v7  ;;  %v10375_v7 = vsel %vm1223_vm4, %v1265_v24, %v1267_v48  ;;  %v12586_v24 = vmax.f32 %v10064_v54, 0.0  ;;  %v10394_v48 = vsel %vm1223_vm4, %v1274_v61, %v1275_v26  ;;  %v1284_v61 = vrot.slane %v10108_v31, 2 }
  0xce   : > { %12582 = vst [vmem:[#allocation38_spill] sm:$0xff] %v10375_v7  ;;  %12587 = vst [vmem:[#allocation41_spill] sm:$0xff] %v10394_v48 }
  0xcf   : > { %v1277_v0 = vrot.slane %v12586_v24, 2  ;;  %v1285_v24 = vrot.slane %v10110_v49, 2 }
  0xd0   : > { %8170 = vmatmul.mubr.msk.f32.gmra.mrb[14].mxu0 %vm277_vm1, %v10361_v59 }
  0xd1   : > { %8172 = vmatprep.mubr.msk.f32.mxu0 %vm277_vm1, %v10366_v25  ;;  %v10389_v25 = vsel %vm1223_vm4, %v1270_v52, %v1272_v42  ;;  %v12589_v52 = vmax.f32 %v10091_v23, 0.0  ;;  %v10408_v42 = vsel %vm1223_vm4, %v1279_v1, %v1280_v46  ;;  %v1289_v1 = vrot.slane %v10129_v56, 2 }
  0xd2   : > { %12585 = vst [vmem:[#allocation40_spill] sm:$0xff] %v10389_v25  ;;  %12590 = vst [vmem:[#allocation43_spill] sm:$0xff] %v10408_v42 }
  0xd3   : > { %v1282_v54 = vrot.slane %v12589_v52, 2  ;;  %v1290_v52 = vrot.slane %v10131_v60, 2 }
  0xd4   : > { %8173 = vmatmul.mubr.msk.f32.gmra.mrb[16].mxu0 %vm277_vm1, %v10375_v7  ;;  %v445_v7 = vld [vmem:[#allocation2 + $0x178] sm:$0x3] }
  0xd5   : > { %8175 = vmatprep.mubr.msk.f32.mxu0 %vm277_vm1, %v10380_v34  ;;  %v10403_v34 = vsel %vm1223_vm4, %v1275_v26, %v1277_v0  ;;  %v12592_v26 = vmax.f32 %v10112_v47, 0.0  ;;  %v10422_v0 = vsel %vm1223_vm4, %v1284_v61, %v1285_v24  ;;  %v12595_v47 = vmax.f32 %v10133_v32, 0.0 }
  0xd6   : > { %12588 = vst [vmem:[#allocation42_spill] sm:$0xff] %v10403_v34  ;;  %12593 = vst [vmem:[#allocation45_spill] sm:$0xff] %v10422_v0  ;;  %v10436_v61 = vsel %vm1223_vm4, %v1289_v1, %v1290_v52 }
  0xd7   : > { %v1287_v23 = vrot.slane %v12592_v26, 2 }
  0xd8   : > { %8176 = vmatmul.mubr.msk.f32.gmra.mrb[18].mxu0 %vm277_vm1, %v10389_v25  ;;  %v442_v25 = vld [vmem:[#allocation2 + $0x160] sm:$0x3] }
  0xd9   : > { %8178 = vmatprep.mubr.msk.f32.mxu0 %vm277_vm1, %v10394_v48  ;;  %v10417_v48 = vsel %vm1223_vm4, %v1280_v46, %v1282_v54  ;;  %v10431_v46 = vsel %vm1223_vm4, %v1285_v24, %v1287_v23  ;;  %v1292_v54 = vrot.slane %v12595_v47, 2  ;;  %v496_v26 = vmax.f32 %v442_v25, 0.0 }
  0xda   : > { %12591 = vst [vmem:[#allocation44_spill] sm:$0xff] %v10417_v48  ;;  %12594 = vst [vmem:[#allocation46_spill] sm:$0xff] %v10431_v46  ;;  %v627_v24 = vrot.slane %v10239_v2, 1  ;;  %v499_v23 = vmax.f32 %v445_v7, 0.0  ;;  %v631_v7 = vrot.slane %v10243_v6, 1 }
  0xdb   : > { %v10447_v32 = vsel %vm1223_vm4, %v1290_v52, %v1292_v54  ;;  %v1297_v25 = vrot.slane %v496_v26, 2  ;;  %v629_v1 = vrot.slane %v496_v26, 1 }
  0xdc   : > { %8179 = vmatmul.mubr.msk.f32.gmra.mrb[20].mxu0 %vm277_vm1, %v10403_v34  ;;  %v1295_v34 = vrot.slane %v10239_v2, 2  ;;  %v1302_v52 = vrot.slane %v499_v23, 2  ;;  %v634_v54 = vrot.slane %v499_v23, 1  ;;  %v12599_v23 = vld [vmem:[#allocation10_spill] sm:$0xff] }
  0xdd   : > { %8181 = vmatprep.mubr.msk.f32.mxu0 %vm277_vm1, %v10408_v42  ;;  %v1294_v42 = vrot.slane %v10232_v29, 2  ;;  %v10458_v57 = vsel %vm555_vm3, %v627_v24, %v629_v1 }
  0xdf   : > { %v10450_v47 = vsel %vm1223_vm4, %v1294_v42, %v1295_v34  ;;  %v632_v42 = vrot.slane %v10247_v9, 1 }
  0xe0   : > { %8182 = vmatmul.mubr.msk.f32.gmra.mrb[22].mxu0 %vm277_vm1, %v10417_v48  ;;  %12596 = vst [vmem:[#allocation47_spill] sm:$0xff] %v10450_v47  ;;  %v1299_v48 = vrot.slane %v10243_v6, 2 }
  0xe1   : > { %8184 = vmatprep.mubr.msk.f32.mxu0 %vm277_vm1, %v10422_v0  ;;  %v626_v0 = vrot.slane %v10232_v29, 1  ;;  %v10480_v1 = vsel %vm555_vm3, %v632_v42, %v634_v54  ;;  %v12603_v54 = vld [vmem:[#allocation14_spill] sm:$0xff] }
  0xe3   : > { %v10455_v59 = vsel %vm555_vm3, %v626_v0, %v627_v24  ;;  %v10471_v0 = vsel %vm1223_vm4, %v1295_v34, %v1297_v25  ;;  %v10477_v24 = vsel %vm555_vm3, %v631_v7, %v632_v42  ;;  %v7026_v25 = vld [vmem:[%s12373_s1 + $0x18] sm:$0xf]  ;;  %v12600_v7 = vld [vmem:[#allocation11_spill] sm:$0xff]  ;;  %v12601_v42 = vld [vmem:[#allocation12_spill] sm:$0xff] }
  0xe4   : > { %8185 = vmatmul.mubr.msk.f32.gmra.mrb[24].mxu0 %vm277_vm1, %v10431_v46  ;;  %v1300_v46 = vrot.slane %v10247_v9, 2  ;;  %8090 = vmatprep.mubr.msk.f32.mxu1 %vm277_vm1, %v10455_v59 }
  0xe5   : > { %8187 = vmatprep.mubr.msk.f32.mxu0 %vm277_vm1, %v10436_v61  ;;  %8091 = vmatmul.mubr.msk.f32.vlgmr.msra.gmra.mrb[0].mxu1 %vm277_vm1, %v10458_v57 }
  0xe6   : > { %v10474_v26 = vsel %vm1223_vm4, %v1299_v48, %v1300_v46  ;;  %8093 = vmatprep.mubr.msk.f32.mxu1 %vm277_vm1, %v10477_v24  ;;  %v10491_v34 = vsel %vm1223_vm4, %v1300_v46, %v1302_v52  ;;  %v6992_v48 = vld [vmem:[%s12373_s1 + $0x14] sm:$0xf]  ;;  %v12602_v52 = vld [vmem:[#allocation13_spill] sm:$0xff] }
  0xe8   : > { %8188 = vmatmul.mubr.msk.f32.gmra.mrb[26].mxu0 %vm277_vm1, %v10447_v32 }
  0xe9   : > { %8190 = vmatprep.mubr.msk.f32.mxu0 %vm277_vm1, %v10450_v47  ;;  %8094 = vmatmul.mubr.msk.f32.gmra.mrb[2].mxu1 %vm277_vm1, %v10480_v1 }
  0xec   : > { %8191 = vmatmul.mubr.msk.f32.gmra.mrb[28].mxu0 %vm277_vm1, %v10471_v0 }
  0xed   : > { %8193 = vmatprep.mubr.msk.f32.mxu0 %vm277_vm1, %v10474_v26 }
  0xf0   : > { %8194 = vmatmul.mubr.msk.f32.gmra.mrb[30].mxu0 %vm277_vm1, %v10491_v34 }
  0xf1   : > { %8198 = vmatprep.mubr.msk.f32.mxu0 %vm277_vm1, %v9880_v44  ;;  %v446_v44 = vld [vmem:[#allocation2 + $0x180] sm:$0xff] }
  0xf4   : > { %8199 = vmatmul.mubr.msk.f32.vlgmr.msra.gmra.mrb[0].mxu0 %vm277_vm1, %v9882_v45  ;;  %v10559_v45 = vmax.f32 %v446_v44, 0.0  ;;  %v12605_v44 = vld [vmem:[#allocation16_spill] sm:$0xff] }
  0xf5   : > { %8247 = vmatpush3.msk.msra.mxu0 %vm702_vm0, %v10267_v41  ;;  %8201 = vmatprep.mubr.msk.f32.mxu0 %vm277_vm1, %v9886_v50  ;;  %v447_v41 = vld [vmem:[#allocation2 + $0x188] sm:$0xff] }
  0xf6   : > { %8296 = vmatprep.subr.msk.mxu0 %vm702_vm0, %v6992_v48  ;;  %v10563_v46 = vmax.f32 %v447_v41, 0.0  ;;  %v12606_v41 = vld [vmem:[#allocation17_spill] sm:$0xff] }
  0xf8   : > { %8202 = vmatmul.mubr.msk.f32.gmra.mrb[2].mxu0 %vm277_vm1, %v9888_v51 }
  0xf9   : > { %8204 = vmatprep.mubr.msk.f32.mxu0 %vm277_vm1, %v9904_v62 }
  0xfc   : > { %8205 = vmatmul.mubr.msk.f32.gmra.mrb[4].mxu0 %vm277_vm1, %v9906_v63 }
  0xfd   : > { %8207 = vmatprep.mubr.msk.f32.mxu0 %vm277_vm1, %v9926_v15 }
 0x100   : > { %8208 = vmatmul.mubr.msk.f32.gmra.mrb[6].mxu0 %vm277_vm1, %v9932_v17 }
 0x101   : > { %8210 = vmatprep.mubr.msk.f32.mxu0 %vm277_vm1, %v9940_v20 }
 0x104   : > { %8211 = vmatmul.mubr.msk.f32.gmra.mrb[8].mxu0 %vm277_vm1, %v9942_v21 }
 0x105   : > { %8213 = vmatprep.mubr.msk.f32.mxu0 %vm277_vm1, %v9968_v36 }
 0x108   : > { %8214 = vmatmul.mubr.msk.f32.gmra.mrb[10].mxu0 %vm277_vm1, %v9970_v37 }
 0x109   : > { %8216 = vmatprep.mubr.msk.f32.mxu0 %vm277_vm1, %v9999_v11 }
 0x10c   : > { %8217 = vmatmul.mubr.msk.f32.gmra.mrb[12].mxu0 %vm277_vm1, %v10001_v13 }
 0x10d   : > { %8219 = vmatprep.mubr.msk.f32.mxu0 %vm277_vm1, %v10019_v27 }
 0x110   : > { %8220 = vmatmul.mubr.msk.f32.gmra.mrb[14].mxu0 %vm277_vm1, %v10021_v30 }
 0x111   : > { %8222 = vmatprep.mubr.msk.f32.mxu0 %vm277_vm1, %v10047_v5 }
 0x114   : > { %8223 = vmatmul.mubr.msk.f32.gmra.mrb[16].mxu0 %vm277_vm1, %v10049_v8 }
 0x115   : > { %8225 = vmatprep.mubr.msk.f32.mxu0 %vm277_vm1, %v10068_v33 }
 0x118   : > { %8226 = vmatmul.mubr.msk.f32.gmra.mrb[18].mxu0 %vm277_vm1, %v10070_v19 }
 0x119   : > { %8228 = vmatprep.mubr.msk.f32.mxu0 %vm277_vm1, %v10082_v14 }
 0x11c   : > { %8229 = vmatmul.mubr.msk.f32.gmra.mrb[20].mxu0 %vm277_vm1, %v10084_v16 }
 0x11d   : > { %8231 = vmatprep.mubr.msk.f32.mxu0 %vm277_vm1, %v10108_v31 }
 0x120   : > { %8232 = vmatmul.mubr.msk.f32.gmra.mrb[22].mxu0 %vm277_vm1, %v10110_v49 }
 0x121   : > { %8234 = vmatprep.mubr.msk.f32.mxu0 %vm277_vm1, %v10129_v56 }
 0x124   : > { %8235 = vmatmul.mubr.msk.f32.gmra.mrb[24].mxu0 %vm277_vm1, %v10131_v60 }
 0x125   : > { %8237 = vmatprep.mubr.msk.f32.mxu0 %vm277_vm1, %v10232_v29 }
 0x128   : > { %8238 = vmatmul.mubr.msk.f32.gmra.mrb[26].mxu0 %vm277_vm1, %v10239_v2 }
 0x129   : > { %8240 = vmatprep.mubr.msk.f32.mxu0 %vm277_vm1, %v10243_v6 }
 0x12c   : > { %8241 = vmatmul.mubr.msk.f32.gmra.mrb[28].mxu0 %vm277_vm1, %v10247_v9 }
 0x12d   : > { %8243 = vmatprep.mubr.msk.f32.mxu0 %vm277_vm1, %v10559_v45 }
 0x130   : > { %8244 = vmatmul.mubr.msk.f32.gmra.mrb[30].mxu0 %vm277_vm1, %v10563_v46 }
 0x131   : > { %8248 = vmatprep.mubr.msk.f32.mxu0 %vm277_vm1, %v9909_v3  ;;  %v12597_v3 = vld [vmem:[#allocation8_spill] sm:$0xff] }
 0x134   : > { %8249 = vmatmul.mubr.msk.f32.vlgmr.msra.gmra.mrb[0].mxu0 %vm277_vm1, %v9912_v4  ;;  %v12598_v4 = vld [vmem:[#allocation9_spill] sm:$0xff] }
 0x135   : > { %8297 = vmatpush3.msk.msra.mxu0 %vm702_vm0, %v6992_v48  ;;  %8251 = vmatprep.mubr.msk.f32.mxu0 %vm277_vm1, %v9922_v12  ;;  %v12604_v48 = vld [vmem:[#allocation15_spill] sm:$0xff] }
 0x136   : > { %8346 = vmatprep.subr.msk.mxu0 %vm702_vm0, %v7026_v25 }
 0x138   : > { %8252 = vmatmul.mubr.msk.f32.gmra.mrb[2].mxu0 %vm277_vm1, %v9937_v18 }
 0x139   : > { %8254 = vmatprep.mubr.msk.f32.mxu0 %vm277_vm1, %v9945_v22 }
 0x13c   : > { %8255 = vmatmul.mubr.msk.f32.gmra.mrb[4].mxu0 %vm277_vm1, %v9954_v28 }
 0x13d   : > { %8257 = vmatprep.mubr.msk.f32.mxu0 %vm277_vm1, %v9966_v35 }
 0x140   : > { %8258 = vmatmul.mubr.msk.f32.gmra.mrb[6].mxu0 %vm277_vm1, %v12597_v3 }
 0x141   : > { %8260 = vmatprep.mubr.msk.f32.mxu0 %vm277_vm1, %v12598_v4 }
 0x144   : > { %8261 = vmatmul.mubr.msk.f32.gmra.mrb[8].mxu0 %vm277_vm1, %v12599_v23  ;;  %v12607_v23 = vld [vmem:[#allocation18_spill] sm:$0xff] }
 0x145   : > { %8263 = vmatprep.mubr.msk.f32.mxu0 %vm277_vm1, %v12600_v7  ;;  %v12608_v7 = vld [vmem:[#allocation19_spill] sm:$0xff] }
 0x148   : > { %8264 = vmatmul.mubr.msk.f32.gmra.mrb[10].mxu0 %vm277_vm1, %v12601_v42 }
 0x149   : > { %8266 = vmatprep.mubr.msk.f32.mxu0 %vm277_vm1, %v12602_v52  ;;  %v12609_v52 = vld [vmem:[#allocation21_spill] sm:$0xff] }
 0x14c   : > { %8267 = vmatmul.mubr.msk.f32.gmra.mrb[12].mxu0 %vm277_vm1, %v12603_v54  ;;  %v12610_v54 = vld [vmem:[#allocation22_spill] sm:$0xff] }
 0x14d   : > { %8269 = vmatprep.mubr.msk.f32.mxu0 %vm277_vm1, %v12604_v48  ;;  %v12611_v48 = vld [vmem:[#allocation23_spill] sm:$0xff] }
 0x150   : > { %8270 = vmatmul.mubr.msk.f32.gmra.mrb[14].mxu0 %vm277_vm1, %v12605_v44  ;;  %v12612_v44 = vld [vmem:[#allocation24_spill] sm:$0xff] }
 0x151   : > { %8272 = vmatprep.mubr.msk.f32.mxu0 %vm277_vm1, %v12606_v41  ;;  %v12613_v41 = vld [vmem:[#allocation25_spill] sm:$0xff] }
 0x154   : > { %8273 = vmatmul.mubr.msk.f32.gmra.mrb[16].mxu0 %vm277_vm1, %v12607_v23  ;;  %v448_v23 = vld [vmem:[#allocation2 + $0x190] sm:$0x3] }
 0x155   : > { %8275 = vmatprep.mubr.msk.f32.mxu0 %vm277_vm1, %v12608_v7  ;;  %v12614_v7 = vld [vmem:[#allocation26_spill] sm:$0xff] }
 0x158   : > { %8276 = vmatmul.mubr.msk.f32.gmra.mrb[18].mxu0 %vm277_vm1, %v10119_v55  ;;  %v1899_v55 = vrot.slane %v10559_v45, 1 }
 0x159   : > { %8278 = vmatprep.mubr.msk.f32.mxu0 %vm277_vm1, %v12609_v52  ;;  %v502_v52 = vmax.f32 %v448_v23, 0.0 }
 0x15c   : > { %8279 = vmatmul.mubr.msk.f32.gmra.mrb[20].mxu0 %vm277_vm1, %v12610_v54  ;;  %v1900_v54 = vrot.slane %v10563_v46, 1 }
 0x15d   : > { %8281 = vmatprep.mubr.msk.f32.mxu0 %vm277_vm1, %v12611_v48 }
 0x160   : > { %8282 = vmatmul.mubr.msk.f32.gmra.mrb[22].mxu0 %vm277_vm1, %v12612_v44  ;;  %v1902_v44 = vrot.slane %v502_v52, 1 }
 0x161   : > { %8284 = vmatprep.mubr.msk.f32.mxu0 %vm277_vm1, %v12613_v41  ;;  %v10635_v41 = vsel %vm555_vm3, %v1899_v55, %v1900_v54  ;;  %v7060_v55 = vld [vmem:[%s12373_s1 + $0x1c] sm:$0xf] }
 0x162   : > { %v10642_v23 = vsel %vm555_vm3, %v1900_v54, %v1902_v44  ;;  %v12615_v54 = vld [vmem:[#allocation27_spill] sm:$0xff]  ;;  %v12619_v44 = vld [vmem:[#allocation34_spill] sm:$0xff] }
 0x164   : > { %8285 = vmatmul.mubr.msk.f32.gmra.mrb[24].mxu0 %vm277_vm1, %v12614_v7 }
 0x165   : > { %8287 = vmatprep.mubr.msk.f32.mxu0 %vm277_vm1, %v10455_v59 }
 0x168   : > { %8288 = vmatmul.mubr.msk.f32.gmra.mrb[26].mxu0 %vm277_vm1, %v10458_v57 }
 0x169   : > { %8290 = vmatprep.mubr.msk.f32.mxu0 %vm277_vm1, %v10477_v24 }
 0x16c   : > { %8291 = vmatmul.mubr.msk.f32.gmra.mrb[28].mxu0 %vm277_vm1, %v10480_v1 }
 0x16d   : > { %8293 = vmatprep.mubr.msk.f32.mxu0 %vm277_vm1, %v10635_v41 }
 0x170   : > { %8294 = vmatmul.mubr.msk.f32.gmra.mrb[30].mxu0 %vm277_vm1, %v10642_v23 }
 0x171   : > { %8298 = vmatprep.mubr.msk.f32.mxu0 %vm277_vm1, %v10260_v38  ;;  %v12616_v38 = vld [vmem:[#allocation29_spill] sm:$0xff] }
 0x174   : > { %8299 = vmatmul.mubr.msk.f32.vlgmr.msra.gmra.mrb[0].mxu0 %vm277_vm1, %v10275_v39  ;;  %v12617_v39 = vld [vmem:[#allocation31_spill] sm:$0xff] }
 0x175   : > { %8347 = vmatpush3.msk.msra.mxu0 %vm702_vm0, %v7026_v25  ;;  %8301 = vmatprep.mubr.msk.f32.mxu0 %vm277_vm1, %v10280_v53  ;;  %v12618_v25 = vld [vmem:[#allocation33_spill] sm:$0xff] }
 0x176   : > { %8396 = vmatprep.subr.msk.mxu0 %vm702_vm0, %v7060_v55 }
 0x178   : > { %8302 = vmatmul.mubr.msk.f32.gmra.mrb[2].mxu0 %vm277_vm1, %v10291_v40 }
 0x179   : > { %8304 = vmatprep.mubr.msk.f32.mxu0 %vm277_vm1, %v12615_v54  ;;  %v12620_v54 = vld [vmem:[#allocation35_spill] sm:$0xff] }
 0x17c   : > { %8305 = vmatmul.mubr.msk.f32.gmra.mrb[4].mxu0 %vm277_vm1, %v10305_v43  ;;  %v12621_v43 = vld [vmem:[#allocation36_spill] sm:$0xff] }
 0x17d   : > { %8307 = vmatprep.mubr.msk.f32.mxu0 %vm277_vm1, %v12616_v38  ;;  %v12622_v38 = vld [vmem:[#allocation37_spill] sm:$0xff] }
 0x180   : > { %8308 = vmatmul.mubr.msk.f32.gmra.mrb[6].mxu0 %vm277_vm1, %v10319_v58  ;;  %v12623_v58 = vld [vmem:[#allocation38_spill] sm:$0xff] }
 0x181   : > { %8310 = vmatprep.mubr.msk.f32.mxu0 %vm277_vm1, %v12617_v39  ;;  %v12624_v39 = vld [vmem:[#allocation39_spill] sm:$0xff] }
 0x184   : > { %8311 = vmatmul.mubr.msk.f32.gmra.mrb[8].mxu0 %vm277_vm1, %v10333_v10  ;;  %v12625_v10 = vld [vmem:[#allocation40_spill] sm:$0xff] }
 0x185   : > { %8313 = vmatprep.mubr.msk.f32.mxu0 %vm277_vm1, %v12618_v25  ;;  %v12626_v25 = vld [vmem:[#allocation41_spill] sm:$0xff] }
 0x188   : > { %8314 = vmatmul.mubr.msk.f32.gmra.mrb[10].mxu0 %vm277_vm1, %v12619_v44  ;;  %v12627_v44 = vld [vmem:[#allocation42_spill] sm:$0xff] }
 0x189   : > { %8316 = vmatprep.mubr.msk.f32.mxu0 %vm277_vm1, %v12620_v54  ;;  %v12628_v54 = vld [vmem:[#allocation43_spill] sm:$0xff] }
 0x18c   : > { %8317 = vmatmul.mubr.msk.f32.gmra.mrb[12].mxu0 %vm277_vm1, %v12621_v43  ;;  %v12629_v43 = vld [vmem:[#allocation44_spill] sm:$0xff] }
 0x18d   : > { %8319 = vmatprep.mubr.msk.f32.mxu0 %vm277_vm1, %v12622_v38  ;;  %v12630_v38 = vld [vmem:[#allocation45_spill] sm:$0xff] }
 0x190   : > { %8320 = vmatmul.mubr.msk.f32.gmra.mrb[14].mxu0 %vm277_vm1, %v12623_v58  ;;  %v12631_v58 = vld [vmem:[#allocation46_spill] sm:$0xff] }
 0x191   : > { %8322 = vmatprep.mubr.msk.f32.mxu0 %vm277_vm1, %v12624_v39 }
 0x194   : > { %8323 = vmatmul.mubr.msk.f32.gmra.mrb[16].mxu0 %vm277_vm1, %v12625_v10 }
 0x195   : > { %8325 = vmatprep.mubr.msk.f32.mxu0 %vm277_vm1, %v12626_v25 }
 0x198   : > { %8326 = vmatmul.mubr.msk.f32.gmra.mrb[18].mxu0 %vm277_vm1, %v12627_v44  ;;  %v2171_v44 = vrot.slane %v10563_v46, 2 }
 0x199   : > { %8328 = vmatprep.mubr.msk.f32.mxu0 %vm277_vm1, %v12628_v54  ;;  %v2170_v54 = vrot.slane %v10559_v45, 2 }
 0x19c   : > { %8329 = vmatmul.mubr.msk.f32.gmra.mrb[20].mxu0 %vm277_vm1, %v12629_v43 }
 0x19d   : > { %8331 = vmatprep.mubr.msk.f32.mxu0 %vm277_vm1, %v12630_v38  ;;  %v10712_v38 = vsel %vm1223_vm4, %v2170_v54, %v2171_v44 }
 0x1a0   : > { %8332 = vmatmul.mubr.msk.f32.gmra.mrb[22].mxu0 %vm277_vm1, %v12631_v58  ;;  %v2173_v58 = vrot.slane %v502_v52, 2  ;;  %v7094_v52 = vld [vmem:[%s12373_s1 + $0x20] sm:$0xf] }
 0x1a1   : > { %8334 = vmatprep.mubr.msk.f32.mxu0 %vm277_vm1, %v10436_v61 }
 0x1a4   : > { %8335 = vmatmul.mubr.msk.f32.gmra.mrb[24].mxu0 %vm277_vm1, %v10447_v32 }
 0x1a5   : > { %8337 = vmatprep.mubr.msk.f32.mxu0 %vm277_vm1, %v10450_v47  ;;  %v10719_v47 = vsel %vm1223_vm4, %v2171_v44, %v2173_v58  ;;  %v12656_v58 = vld [vmem:[#allocation37_spill] sm:$0xff]  ;;  %v11067_v44 = vld [vmem:[%s12375_s3 + $0x10] sm:$0xff] }
 0x1a8   : > { %8338 = vmatmul.mubr.msk.f32.gmra.mrb[26].mxu0 %vm277_vm1, %v10471_v0 }
 0x1a9   : > { %8340 = vmatprep.mubr.msk.f32.mxu0 %vm277_vm1, %v10474_v26 }
 0x1ac   : > { %8341 = vmatmul.mubr.msk.f32.gmra.mrb[28].mxu0 %vm277_vm1, %v10491_v34 }
 0x1ad   : > { %8343 = vmatprep.mubr.msk.f32.mxu0 %vm277_vm1, %v10712_v38 }
 0x1b0   : > { %8344 = vmatmul.mubr.msk.f32.gmra.mrb[30].mxu0 %vm277_vm1, %v10719_v47 }
 0x1b1   : > { %8348 = vmatprep.mubr.msk.f32.mxu0 %vm277_vm1, %v9886_v50  ;;  %v449_v50 = vld [vmem:[#allocation2 + $0x198] sm:$0xff] }
 0x1b4   : > { %8349 = vmatmul.mubr.msk.f32.vlgmr.msra.gmra.mrb[0].mxu0 %vm277_vm1, %v9888_v51  ;;  %v10786_v51 = vmax.f32 %v449_v50, 0.0 }
 0x1b5   : > { %8397 = vmatpush3.msk.msra.mxu0 %vm702_vm0, %v7060_v55  ;;  %8351 = vmatprep.mubr.msk.f32.mxu0 %vm277_vm1, %v9904_v62  ;;  %v450_v62 = vld [vmem:[#allocation2 + $0x1a0] sm:$0xff] }
 0x1b6   : > { %8446 = vmatprep.subr.msk.mxu0 %vm702_vm0, %v7094_v52  ;;  %v3466_v55 = vld [vmem:[%s12375_s3] sm:$0xff] }
 0x1b8   : > { %8352 = vmatmul.mubr.msk.f32.gmra.mrb[2].mxu0 %vm277_vm1, %v9906_v63  ;;  %v10790_v63 = vmax.f32 %v450_v62, 0.0  ;;  %v11056_v54 = vpop.f32.mrb[0].mxu1 }
 0x1b9   : > { %8354 = vmatprep.mubr.msk.f32.mxu0 %vm277_vm1, %v9926_v15  ;;  %v12633_v15 = vld [vmem:[#allocation11_spill] sm:$0xff] }
 0x1bc   : > { %8355 = vmatmul.mubr.msk.f32.gmra.mrb[4].mxu0 %vm277_vm1, %v9932_v17  ;;  %v12634_v17 = vld [vmem:[#allocation13_spill] sm:$0xff] }
 0x1bd   : > { %8357 = vmatprep.mubr.msk.f32.mxu0 %vm277_vm1, %v9940_v20  ;;  %v12637_v20 = vld [vmem:[#allocation16_spill] sm:$0xff] }
 0x1c0   : > { %8358 = vmatmul.mubr.msk.f32.gmra.mrb[6].mxu0 %vm277_vm1, %v9942_v21  ;;  %v12638_v21 = vld [vmem:[#allocation17_spill] sm:$0xff] }
 0x1c1   : > { %8360 = vmatprep.mubr.msk.f32.mxu0 %vm277_vm1, %v9968_v36  ;;  %v12643_v36 = vld [vmem:[#allocation22_spill] sm:$0xff] }
 0x1c4   : > { %8361 = vmatmul.mubr.msk.f32.gmra.mrb[8].mxu0 %vm277_vm1, %v9970_v37  ;;  %v12644_v37 = vld [vmem:[#allocation24_spill] sm:$0xff] }
 0x1c5   : > { %8363 = vmatprep.mubr.msk.f32.mxu0 %vm277_vm1, %v9999_v11  ;;  %v451_v11 = vld [vmem:[#allocation2 + $0x1a8] sm:$0x3] }
 0x1c8   : > { %8364 = vmatmul.mubr.msk.f32.gmra.mrb[10].mxu0 %vm277_vm1, %v10001_v13  ;;  %v505_v13 = vmax.f32 %v451_v11, 0.0 }
 0x1c9   : > { %8366 = vmatprep.mubr.msk.f32.mxu0 %vm277_vm1, %v10019_v27  ;;  %v2710_v27 = vrot.slane %v10786_v51, 1 }
 0x1cc   : > { %8367 = vmatmul.mubr.msk.f32.gmra.mrb[12].mxu0 %vm277_vm1, %v10021_v30  ;;  %v2711_v30 = vrot.slane %v10790_v63, 1 }
 0x1cd   : > { %8369 = vmatprep.mubr.msk.f32.mxu0 %vm277_vm1, %v10047_v5 }
 0x1ce   : > { %v2712_v5 = vsel %vm555_vm3, %v2710_v27, %v2711_v30 }
 0x1d0   : > { %8370 = vmatmul.mubr.msk.f32.gmra.mrb[14].mxu0 %vm277_vm1, %v10049_v8 }
 0x1d1   : > { %8372 = vmatprep.mubr.msk.f32.mxu0 %vm277_vm1, %v10068_v33  ;;  %v12641_v33 = vld [vmem:[#allocation20_spill] sm:$0xff] }
 0x1d4   : > { %8373 = vmatmul.mubr.msk.f32.gmra.mrb[16].mxu0 %vm277_vm1, %v10070_v19  ;;  %v12636_v19 = vld [vmem:[#allocation15_spill] sm:$0xff] }
 0x1d5   : > { %8375 = vmatprep.mubr.msk.f32.mxu0 %vm277_vm1, %v10082_v14  ;;  %v12647_v14 = vld [vmem:[#allocation28_spill] sm:$0xff] }
 0x1d8   : > { %8376 = vmatmul.mubr.msk.f32.gmra.mrb[18].mxu0 %vm277_vm1, %v10084_v16  ;;  %v12648_v16 = vld [vmem:[#allocation29_spill] sm:$0xff] }
 0x1d9   : > { %8378 = vmatprep.mubr.msk.f32.mxu0 %vm277_vm1, %v10108_v31  ;;  %v2713_v31 = vrot.slane %v505_v13, 1 }
 0x1db   : > { %v2714_v8 = vsel %vm555_vm3, %v2711_v30, %v2713_v31 }
 0x1dc   : > { %8379 = vmatmul.mubr.msk.f32.gmra.mrb[20].mxu0 %vm277_vm1, %v10110_v49  ;;  %v12646_v49 = vld [vmem:[#allocation27_spill] sm:$0xff] }
 0x1dd   : > { %8381 = vmatprep.mubr.msk.f32.mxu0 %vm277_vm1, %v10129_v56  ;;  %v12645_v56 = vld [vmem:[#allocation25_spill] sm:$0xff] }
 0x1e0   : > { %8382 = vmatmul.mubr.msk.f32.gmra.mrb[22].mxu0 %vm277_vm1, %v10131_v60  ;;  %v12649_v60 = vld [vmem:[#allocation30_spill] sm:$0xff] }
 0x1e1   : > { %8384 = vmatprep.mubr.msk.f32.mxu0 %vm277_vm1, %v10232_v29  ;;  %v12651_v29 = vld [vmem:[#allocation32_spill] sm:$0xff] }
 0x1e4   : > { %8385 = vmatmul.mubr.msk.f32.gmra.mrb[24].mxu0 %vm277_vm1, %v10239_v2  ;;  %v12652_v2 = vld [vmem:[#allocation33_spill] sm:$0xff] }
 0x1e5   : > { %8387 = vmatprep.mubr.msk.f32.mxu0 %vm277_vm1, %v10243_v6  ;;  %v12650_v6 = vld [vmem:[#allocation31_spill] sm:$0xff] }
 0x1e8   : > { %8388 = vmatmul.mubr.msk.f32.gmra.mrb[26].mxu0 %vm277_vm1, %v10247_v9  ;;  %v12653_v9 = vld [vmem:[#allocation34_spill] sm:$0xff] }
 0x1e9   : > { %8390 = vmatprep.mubr.msk.f32.mxu0 %vm277_vm1, %v10559_v45  ;;  %v12661_v45 = vld [vmem:[#allocation46_spill] sm:$0xff] }
 0x1ec   : > { %8391 = vmatmul.mubr.msk.f32.gmra.mrb[28].mxu0 %vm277_vm1, %v10563_v46  ;;  %v2982_v46 = vrot.slane %v10790_v63, 2 }
 0x1ed   : > { %8393 = vmatprep.mubr.msk.f32.mxu0 %vm277_vm1, %v10786_v51 }
 0x1f0   : > { %8394 = vmatmul.mubr.msk.f32.gmra.mrb[30].mxu0 %vm277_vm1, %v10790_v63 }
 0x1f1   : > { %8398 = vmatprep.mubr.msk.f32.mxu0 %vm277_vm1, %v9922_v12  ;;  %v12632_v12 = vld [vmem:[#allocation10_spill] sm:$0xff] }
 0x1f4   : > { %8399 = vmatmul.mubr.msk.f32.vlgmr.msra.gmra.mrb[0].mxu0 %vm277_vm1, %v9937_v18  ;;  %v12635_v18 = vld [vmem:[#allocation14_spill] sm:$0xff] }
 0x1f5   : > { %8447 = vmatpush3.msk.msra.mxu0 %vm702_vm0, %v7094_v52  ;;  %8401 = vmatprep.mubr.msk.f32.mxu0 %vm277_vm1, %v9945_v22  ;;  %v12639_v22 = vld [vmem:[#allocation18_spill] sm:$0xff] }
 0x1f6   : > { %v11073_v52 = vld [vmem:[%s12374_s2] ss:$0 sm:$0xff] }
 0x1f8   : > { %8402 = vmatmul.mubr.msk.f32.gmra.mrb[2].mxu0 %vm277_vm1, %v9954_v28  ;;  %v12640_v28 = vld [vmem:[#allocation19_spill] sm:$0xff] }
 0x1f9   : > { %8404 = vmatprep.mubr.msk.f32.mxu0 %vm277_vm1, %v9966_v35  ;;  %v12642_v35 = vld [vmem:[#allocation21_spill] sm:$0xff] }
 0x1fc   : > { %8405 = vmatmul.mubr.msk.f32.gmra.mrb[4].mxu0 %vm277_vm1, %v12597_v3  ;;  %v7129_v3 = vld [vmem:[%s12375_s3 + $0x8] sm:$0xff] }
 0x1fd   : > { %8407 = vmatprep.mubr.msk.f32.mxu0 %vm277_vm1, %v12598_v4  ;;  %8496 = vmatprep.subr.mxu1 %v7129_v3 }
 0x1fe   : > { %8497 = vmatpush3.msra.mxu1 %v7129_v3 }
 0x1ff   : > { %8546 = vmatprep.subr.mxu1 %v3466_v55 }
 0x200   : > { %8408 = vmatmul.mubr.msk.f32.gmra.mrb[6].mxu0 %vm277_vm1, %v12632_v12 }
 0x201   : > { %8410 = vmatprep.mubr.msk.f32.mxu0 %vm277_vm1, %v12633_v15 }
 0x204   : > { %8411 = vmatmul.mubr.msk.f32.gmra.mrb[8].mxu0 %vm277_vm1, %v12601_v42 }
 0x205   : > { %8413 = vmatprep.mubr.msk.f32.mxu0 %vm277_vm1, %v12634_v17 }
 0x208   : > { %8414 = vmatmul.mubr.msk.f32.gmra.mrb[10].mxu0 %vm277_vm1, %v12635_v18 }
 0x209   : > { %8416 = vmatprep.mubr.msk.f32.mxu0 %vm277_vm1, %v12636_v19 }
 0x20c   : > { %8417 = vmatmul.mubr.msk.f32.gmra.mrb[12].mxu0 %vm277_vm1, %v12637_v20 }
 0x20d   : > { %8419 = vmatprep.mubr.msk.f32.mxu0 %vm277_vm1, %v12638_v21 }
 0x210   : > { %8420 = vmatmul.mubr.msk.f32.gmra.mrb[14].mxu0 %vm277_vm1, %v12639_v22 }
 0x211   : > { %8422 = vmatprep.mubr.msk.f32.mxu0 %vm277_vm1, %v12640_v28 }
 0x214   : > { %8423 = vmatmul.mubr.msk.f32.gmra.mrb[16].mxu0 %vm277_vm1, %v12641_v33 }
 0x215   : > { %8425 = vmatprep.mubr.msk.f32.mxu0 %vm277_vm1, %v12642_v35 }
 0x218   : > { %8426 = vmatmul.mubr.msk.f32.gmra.mrb[18].mxu0 %vm277_vm1, %v12643_v36 }
 0x219   : > { %8428 = vmatprep.mubr.msk.f32.mxu0 %vm277_vm1, %v12611_v48 }
 0x21c   : > { %8429 = vmatmul.mubr.msk.f32.gmra.mrb[20].mxu0 %vm277_vm1, %v12644_v37 }
 0x21d   : > { %8431 = vmatprep.mubr.msk.f32.mxu0 %vm277_vm1, %v12645_v56 }
 0x220   : > { %8432 = vmatmul.mubr.msk.f32.gmra.mrb[22].mxu0 %vm277_vm1, %v12614_v7 }
 0x221   : > { %8434 = vmatprep.mubr.msk.f32.mxu0 %vm277_vm1, %v10455_v59  ;;  %v12658_v59 = vld [vmem:[#allocation42_spill] sm:$0xff] }
 0x224   : > { %8435 = vmatmul.mubr.msk.f32.gmra.mrb[24].mxu0 %vm277_vm1, %v10458_v57  ;;  %v12657_v57 = vld [vmem:[#allocation38_spill] sm:$0xff] }
 0x225   : > { %8437 = vmatprep.mubr.msk.f32.mxu0 %vm277_vm1, %v10477_v24  ;;  %v12659_v24 = vld [vmem:[#allocation43_spill] sm:$0xff] }
 0x228   : > { %8438 = vmatmul.mubr.msk.f32.gmra.mrb[26].mxu0 %vm277_vm1, %v10480_v1  ;;  %v12660_v1 = vld [vmem:[#allocation45_spill] sm:$0xff] }
 0x229   : > { %8440 = vmatprep.mubr.msk.f32.mxu0 %vm277_vm1, %v10635_v41 }
 0x22c   : > { %8441 = vmatmul.mubr.msk.f32.gmra.mrb[28].mxu0 %vm277_vm1, %v10642_v23 }
 0x22d   : > { %8443 = vmatprep.mubr.msk.f32.mxu0 %vm277_vm1, %v2712_v5 }
 0x230   : > { %8444 = vmatmul.mubr.msk.f32.gmra.mrb[30].mxu0 %vm277_vm1, %v2714_v8 }
 0x231   : > { %8448 = vmatprep.mubr.msk.f32.mxu0 %vm277_vm1, %v10280_v53  ;;  %v12654_v53 = vld [vmem:[#allocation35_spill] sm:$0xff] }
 0x234   : > { %8449 = vmatmul.mubr.msk.f32.vlgmr.msra.gmra.mrb[0].mxu0 %vm277_vm1, %v10291_v40  ;;  %v12655_v40 = vld [vmem:[#allocation36_spill] sm:$0xff] }
 0x235   : > { %8451 = vmatprep.mubr.msk.f32.mxu0 %vm277_vm1, %v12646_v49 }
 0x238   : > { %8452 = vmatmul.mubr.msk.f32.gmra.mrb[2].mxu0 %vm277_vm1, %v12647_v14 }
 0x239   : > { %8454 = vmatprep.mubr.msk.f32.mxu0 %vm277_vm1, %v12648_v16 }
 0x23c   : > { %8455 = vmatmul.mubr.msk.f32.gmra.mrb[4].mxu0 %vm277_vm1, %v12649_v60 }
 0x23d   : > { %8457 = vmatprep.mubr.msk.f32.mxu0 %vm277_vm1, %v12650_v6 }
 0x240   : > { %8458 = vmatmul.mubr.msk.f32.gmra.mrb[6].mxu0 %vm277_vm1, %v12651_v29 }
 0x241   : > { %8460 = vmatprep.mubr.msk.f32.mxu0 %vm277_vm1, %v12652_v2 }
 0x244   : > { %8461 = vmatmul.mubr.msk.f32.gmra.mrb[8].mxu0 %vm277_vm1, %v12653_v9 }
 0x245   : > { %8463 = vmatprep.mubr.msk.f32.mxu0 %vm277_vm1, %v12654_v53 }
 0x248   : > { %8464 = vmatmul.mubr.msk.f32.gmra.mrb[10].mxu0 %vm277_vm1, %v12655_v40 }
 0x249   : > { %8466 = vmatprep.mubr.msk.f32.mxu0 %vm277_vm1, %v12656_v58 }
 0x24c   : > { %8467 = vmatmul.mubr.msk.f32.gmra.mrb[12].mxu0 %vm277_vm1, %v12657_v57 }
 0x24d   : > { %8469 = vmatprep.mubr.msk.f32.mxu0 %vm277_vm1, %v12624_v39 }
 0x250   : > { %8470 = vmatmul.mubr.msk.f32.gmra.mrb[14].mxu0 %vm277_vm1, %v12625_v10  ;;  %v12662_v10 = vld [vmem:[#allocation47_spill] sm:$0xff] }
 0x251   : > { %8472 = vmatprep.mubr.msk.f32.mxu0 %vm277_vm1, %v12626_v25 }
 0x254   : > { %8473 = vmatmul.mubr.msk.f32.gmra.mrb[16].mxu0 %vm277_vm1, %v12658_v59 }
 0x255   : > { %8475 = vmatprep.mubr.msk.f32.mxu0 %vm277_vm1, %v12659_v24 }
 0x258   : > { %8476 = vmatmul.mubr.msk.f32.gmra.mrb[18].mxu0 %vm277_vm1, %v12629_v43  ;;  %v2981_v43 = vrot.slane %v10786_v51, 2 }
 0x259   : > { %8478 = vmatprep.mubr.msk.f32.mxu0 %vm277_vm1, %v12660_v1 }
 0x25c   : > { %8479 = vmatmul.mubr.msk.f32.gmra.mrb[20].mxu0 %vm277_vm1, %v12661_v45 }
 0x25d   : > { %8481 = vmatprep.mubr.msk.f32.mxu0 %vm277_vm1, %v10436_v61  ;;  %v2984_v61 = vrot.slane %v505_v13, 2 }
 0x260   : > { %8482 = vmatmul.mubr.msk.f32.gmra.mrb[22].mxu0 %vm277_vm1, %v10447_v32  ;;  %v2983_v32 = vsel %vm1223_vm4, %v2981_v43, %v2982_v46 }
 0x261   : > { %8484 = vmatprep.mubr.msk.f32.mxu0 %vm277_vm1, %v12662_v10 }
 0x264   : > { %8485 = vmatmul.mubr.msk.f32.gmra.mrb[24].mxu0 %vm277_vm1, %v10471_v0  ;;  %v2985_v0 = vsel %vm1223_vm4, %v2982_v46, %v2984_v61 }
 0x265   : > { %8487 = vmatprep.mubr.msk.f32.mxu0 %vm277_vm1, %v10474_v26  ;;  %v12663_v26 = vmov 0.0  }
 0x266   : > { %3297 = vst.msk [vmem:[#allocation3 + $0x20] sm:$0xff] %vm3291_vm5, %v12663_v26  ;;  %3292 = vst.msk [vmem:[#allocation3] sm:$0xff] %vm3291_vm5, %v12663_v26 }
 0x267   : > { %3298 = vst.msk [vmem:[#allocation3 + $0x28] sm:$0x3] %vm3294_vm6, %v12663_v26  ;;  %3295 = vst.msk [vmem:[#allocation3 + $0x10] sm:$0x3] %vm3294_vm6, %v12663_v26 }
 0x268   : > { %8488 = vmatmul.mubr.msk.f32.gmra.mrb[26].mxu0 %vm277_vm1, %v10491_v34  ;;  %3293 = vst.msk [vmem:[#allocation3 + $0x8] sm:$0xff] %vm3291_vm5, %v12663_v26  ;;  %3296 = vst.msk [vmem:[#allocation3 + $0x18] sm:$0xff] %vm3291_vm5, %v12663_v26 }
 0x269   : > { %8490 = vmatprep.mubr.msk.f32.mxu0 %vm277_vm1, %v10712_v38  ;;  %3299 = vst.msk [vmem:[#allocation3 + $0x30] sm:$0xff] %vm3291_vm5, %v12663_v26  ;;  %3300 = vst.msk [vmem:[#allocation3 + $0x38] sm:$0xff] %vm3291_vm5, %v12663_v26  ;;  %v11058_v38 = vpop.f32.mrb[1].mxu1 }
 0x26a   : > { %3301 = vst.msk [vmem:[#allocation3 + $0x40] sm:$0x3] %vm3294_vm6, %v12663_v26  ;;  %3304 = vst.msk [vmem:[#allocation3 + $0x58] sm:$0x3] %vm3294_vm6, %v12663_v26  ;;  %v11060_v39 = vpop.f32.mrb[2].mxu1 }
 0x26b   : > { %3302 = vst.msk [vmem:[#allocation3 + $0x48] sm:$0xff] %vm3291_vm5, %v12663_v26  ;;  %3303 = vst.msk [vmem:[#allocation3 + $0x50] sm:$0xff] %vm3291_vm5, %v12663_v26  ;;  %v11062_v25 = vpop.f32.mrb[3].mxu1 }
 0x26c   : > { %8491 = vmatmul.mubr.msk.f32.gmra.mrb[28].mxu0 %vm277_vm1, %v10719_v47  ;;  %3305 = vst.msk [vmem:[#allocation3 + $0x60] sm:$0xff] %vm3291_vm5, %v12663_v26  ;;  %3306 = vst.msk [vmem:[#allocation3 + $0x68] sm:$0xff] %vm3291_vm5, %v12663_v26 }
 0x26d   : > { %8493 = vmatprep.mubr.msk.f32.mxu0 %vm277_vm1, %v2983_v32  ;;  %3307 = vst.msk [vmem:[#allocation3 + $0x70] sm:$0x3] %vm3294_vm6, %v12663_v26  ;;  %3310 = vst.msk [vmem:[#allocation3 + $0x88] sm:$0x3] %vm3294_vm6, %v12663_v26  ;;  %v11037_v47 = vld [vmem:[#allocation3] sm:$0xff] }
 0x26e   : > { %3308 = vst.msk [vmem:[#allocation3 + $0x78] sm:$0xff] %vm3291_vm5, %v12663_v26  ;;  %3309 = vst.msk [vmem:[#allocation3 + $0x80] sm:$0xff] %vm3291_vm5, %v12663_v26  ;;  %v3515_v4 = vrot.slane %v11037_v47, 1  ;;  %v11046_v42 = vld [vmem:[#allocation3 + $0x10] sm:$0x3] }
 0x26f   : > { %3311 = vst.msk [vmem:[#allocation3 + $0x90] sm:$0xff] %vm3291_vm5, %v12663_v26  ;;  %3312 = vst.msk [vmem:[#allocation3 + $0x98] sm:$0xff] %vm3291_vm5, %v12663_v26  ;;  %v11039_v34 = vld [vmem:[#allocation3 + $0x8] sm:$0xff]  ;;  %v3518_v48 = vrot.slane %v11046_v42, 1 }
 0x270   : > { %8494 = vmatmul.mubr.msk.f32.gmra.mrb[30].mxu0 %vm277_vm1, %v2985_v0  ;;  %3313 = vst.msk [vmem:[#allocation3 + $0xa0] sm:$0x3] %vm3294_vm6, %v12663_v26  ;;  %3316 = vst.msk [vmem:[#allocation3 + $0xb8] sm:$0x3] %vm3294_vm6, %v12663_v26  ;;  %v3516_v7 = vrot.slane %v11039_v34, 1 }
 0x271   : > { %3314 = vst.msk [vmem:[#allocation3 + $0xa8] sm:$0xff] %vm3291_vm5, %v12663_v26  ;;  %3315 = vst.msk [vmem:[#allocation3 + $0xb0] sm:$0xff] %vm3291_vm5, %v12663_v26 }
 0x272   : > { %3317 = vst.msk [vmem:[#allocation3 + $0xc0] sm:$0xff] %vm3291_vm5, %v12663_v26  ;;  %3318 = vst.msk [vmem:[#allocation3 + $0xc8] sm:$0xff] %vm3291_vm5, %v12663_v26  ;;  %v3517_v41 = vsel %vm555_vm3, %v3515_v4, %v3516_v7  ;;  %v3519_v23 = vsel %vm555_vm3, %v3516_v7, %v3518_v48 }
 0x273   : > { %3319 = vst.msk [vmem:[#allocation3 + $0xd0] sm:$0x3] %vm3294_vm6, %v12663_v26  ;;  %3322 = vst.msk [vmem:[#allocation3 + $0xe8] sm:$0x3] %vm3294_vm6, %v12663_v26  ;;  %8498 = vmatprep.mubr.msk.f32.mxu1 %vm3291_vm5, %v3517_v41 }
 0x274   : > { %3320 = vst.msk [vmem:[#allocation3 + $0xd8] sm:$0xff] %vm3291_vm5, %v12663_v26  ;;  %3321 = vst.msk [vmem:[#allocation3 + $0xe0] sm:$0xff] %vm3291_vm5, %v12663_v26  ;;  %8499 = vmatmul.mubr.msk.f32.vlgmr.msra.gmra.mrb[4].mxu1 %vm3291_vm5, %v3519_v23 }
 0x275   : > { %3323 = vst.msk [vmem:[#allocation3 + $0xf0] sm:$0xff] %vm3291_vm5, %v12663_v26  ;;  %3324 = vst.msk [vmem:[#allocation3 + $0xf8] sm:$0xff] %vm3291_vm5, %v12663_v26  ;;  %8547 = vmatpush3.msra.mxu1 %v3466_v55 }
 0x276   : > { %3325 = vst.msk [vmem:[#allocation3 + $0x100] sm:$0x3] %vm3294_vm6, %v12663_v26  ;;  %3328 = vst.msk [vmem:[#allocation3 + $0x118] sm:$0x3] %vm3294_vm6, %v12663_v26  ;;  %8596 = vmatprep.subr.mxu1 %v11067_v44 }
 0x277   : > { %3326 = vst.msk [vmem:[#allocation3 + $0x108] sm:$0xff] %vm3291_vm5, %v12663_v26  ;;  %3327 = vst.msk [vmem:[#allocation3 + $0x110] sm:$0xff] %vm3291_vm5, %v12663_v26 }
 0x278   : > { %3329 = vst.msk [vmem:[#allocation3 + $0x120] sm:$0xff] %vm3291_vm5, %v12663_v26  ;;  %3330 = vst.msk [vmem:[#allocation3 + $0x128] sm:$0xff] %vm3291_vm5, %v12663_v26 }
 0x279   : > { %3331 = vst.msk [vmem:[#allocation3 + $0x130] sm:$0x3] %vm3294_vm6, %v12663_v26  ;;  %3334 = vst.msk [vmem:[#allocation3 + $0x148] sm:$0x3] %vm3294_vm6, %v12663_v26 }
 0x27a   : > { %3332 = vst.msk [vmem:[#allocation3 + $0x138] sm:$0xff] %vm3291_vm5, %v12663_v26  ;;  %3333 = vst.msk [vmem:[#allocation3 + $0x140] sm:$0xff] %vm3291_vm5, %v12663_v26 }
 0x27b   : > { %3335 = vst.msk [vmem:[#allocation3 + $0x150] sm:$0xff] %vm3291_vm5, %v12663_v26  ;;  %3336 = vst.msk [vmem:[#allocation3 + $0x158] sm:$0xff] %vm3291_vm5, %v12663_v26 }
 0x27c   : > { %3337 = vst.msk [vmem:[#allocation3 + $0x160] sm:$0x3] %vm3294_vm6, %v12663_v26  ;;  %3340 = vst.msk [vmem:[#allocation3 + $0x178] sm:$0x3] %vm3294_vm6, %v12663_v26 }
 0x27d   : > { %3338 = vst.msk [vmem:[#allocation3 + $0x168] sm:$0xff] %vm3291_vm5, %v12663_v26  ;;  %3339 = vst.msk [vmem:[#allocation3 + $0x170] sm:$0xff] %vm3291_vm5, %v12663_v26 }
 0x27e   : > { %3341 = vst.msk [vmem:[#allocation3 + $0x180] sm:$0xff] %vm3291_vm5, %v12663_v26  ;;  %3342 = vst.msk [vmem:[#allocation3 + $0x188] sm:$0xff] %vm3291_vm5, %v12663_v26 }
 0x27f   : > { %3343 = vst.msk [vmem:[#allocation3 + $0x190] sm:$0x3] %vm3294_vm6, %v12663_v26  ;;  %3346 = vst.msk [vmem:[#allocation3 + $0x1a8] sm:$0x3] %vm3294_vm6, %v12663_v26 }
 0x280   : > { %3344 = vst.msk [vmem:[#allocation3 + $0x198] sm:$0xff] %vm3291_vm5, %v12663_v26  ;;  %3345 = vst.msk [vmem:[#allocation3 + $0x1a0] sm:$0xff] %vm3291_vm5, %v12663_v26 }
 0x307   : > { %v8450_v50 = vpop.f32.mrb[0].mxu0 }
 0x308   : > { %v3260_v51 = vadd.f32 %v8450_v50, %v11073_v52  ;;  %v3061_v62 = vpop.f32.mrb[1].mxu0 }
 0x309   : > { %v3259_v63 = vadd.f32 %v11073_v52, %v3061_v62 }
 0x30a   : > { %v3348_v12 = vmax.f32 %v3260_v51, 0.0 }
 0x30b   : > { %v3347_v15 = vmax.f32 %v3259_v63, 0.0  ;;  %v8453_v17 = vpop.f32.mrb[2].mxu0 }
 0x30c   : > { %3381 = vst.msk [vmem:[#allocation3 + $0x21] sm:$0xff] %vm3291_vm5, %v3348_v12  ;;  %v3262_v18 = vadd.f32 %v8453_v17, %v11073_v52  ;;  %v3071_v19 = vpop.f32.mrb[3].mxu0 }
 0x30d   : > { %3380 = vst.msk [vmem:[#allocation3 + $0x19] sm:$0xff] %vm3291_vm5, %v3347_v15  ;;  %v3261_v20 = vadd.f32 %v11073_v52, %v3071_v19 }
 0x30e   : > { %v3350_v21 = vmax.f32 %v3262_v18, 0.0 }
 0x30f   : > { %v3349_v22 = vmax.f32 %v3261_v20, 0.0  ;;  %v8456_v28 = vpop.f32.mrb[4].mxu0 }
 0x310   : > { %3383 = vst.msk [vmem:[#allocation3 + $0x39] sm:$0xff] %vm3291_vm5, %v3350_v21  ;;  %v3264_v33 = vadd.f32 %v8456_v28, %v11073_v52  ;;  %v3081_v35 = vpop.f32.mrb[5].mxu0 }
 0x311   : > { %3382 = vst.msk [vmem:[#allocation3 + $0x31] sm:$0xff] %vm3291_vm5, %v3349_v22  ;;  %v3263_v36 = vadd.f32 %v11073_v52, %v3081_v35 }
 0x312   : > { %v3352_v37 = vmax.f32 %v3264_v33, 0.0 }
 0x313   : > { %v3351_v56 = vmax.f32 %v3263_v36, 0.0  ;;  %v8459_v11 = vpop.f32.mrb[6].mxu0  ;;  %v11085_v13 = vld [vmem:[#allocation3 + $0x28] sm:$0x3] }
 0x314   : > { %3385 = vst.msk [vmem:[#allocation3 + $0x51] sm:$0xff] %vm3291_vm5, %v3352_v37  ;;  %v3266_v27 = vadd.f32 %v8459_v11, %v11073_v52  ;;  %v3091_v30 = vpop.f32.mrb[7].mxu0  ;;  %v11089_v31 = vld [vmem:[#allocation3 + $0x18] sm:$0xff]  ;;  %v11091_v5 = vld [vmem:[#allocation3 + $0x20] sm:$0xff]  ;;  %v3523_v8 = vrot.slane %v11085_v13, 1 }
 0x315   : > { %3384 = vst.msk [vmem:[#allocation3 + $0x49] sm:$0xff] %vm3291_vm5, %v3351_v56  ;;  %v3265_v49 = vadd.f32 %v11073_v52, %v3091_v30  ;;  %v3520_v14 = vrot.slane %v11089_v31, 1  ;;  %v3521_v16 = vrot.slane %v11091_v5, 1 }
 0x316   : > { %v3354_v60 = vmax.f32 %v3266_v27, 0.0 }
 0x317   : > { %v3353_v6 = vmax.f32 %v3265_v49, 0.0  ;;  %v8462_v29 = vpop.f32.mrb[8].mxu0  ;;  %v11099_v2 = vsel %vm555_vm3, %v3520_v14, %v3521_v16  ;;  %v11102_v9 = vsel %vm555_vm3, %v3521_v16, %v3523_v8  ;;  %v11104_v53 = vld [vmem:[#allocation3 + $0x40] sm:$0x3] }
 0x318   : > { %3387 = vst.msk [vmem:[#allocation3 + $0x69] sm:$0xff] %vm3291_vm5, %v3354_v60  ;;  %v3268_v40 = vadd.f32 %v8462_v29, %v11073_v52  ;;  %v3101_v58 = vpop.f32.mrb[9].mxu0  ;;  %8501 = vmatprep.mubr.msk.f32.mxu1 %vm3291_vm5, %v11099_v2  ;;  %v11110_v57 = vld [vmem:[#allocation3 + $0x30] sm:$0xff]  ;;  %v11112_v59 = vld [vmem:[#allocation3 + $0x38] sm:$0xff]  ;;  %v3528_v24 = vrot.slane %v11104_v53, 1 }
 0x319   : > { %3386 = vst.msk [vmem:[#allocation3 + $0x61] sm:$0xff] %vm3291_vm5, %v3353_v6  ;;  %v3267_v1 = vadd.f32 %v11073_v52, %v3101_v58  ;;  %8502 = vmatmul.mubr.msk.f32.gmra.mrb[6].mxu1 %vm3291_vm5, %v11102_v9  ;;  %v3525_v45 = vrot.slane %v11110_v57, 1  ;;  %v3526_v10 = vrot.slane %v11112_v59, 1 }
 0x31a   : > { %v3356_v43 = vmax.f32 %v3268_v40, 0.0 }
 0x31b   : > { %v3355_v46 = vmax.f32 %v3267_v1, 0.0  ;;  %v8465_v61 = vpop.f32.mrb[10].mxu0  ;;  %v11122_v32 = vsel %vm555_vm3, %v3525_v45, %v3526_v10  ;;  %v11125_v0 = vsel %vm555_vm3, %v3526_v10, %v3528_v24  ;;  %v11127_v26 = vld [vmem:[#allocation3 + $0x58] sm:$0x3] }
 0x31c   : > { %3389 = vst.msk [vmem:[#allocation3 + $0x81] sm:$0xff] %vm3291_vm5, %v3356_v43  ;;  %v3270_v3 = vadd.f32 %v8465_v61, %v11073_v52  ;;  %v3111_v4 = vpop.f32.mrb[11].mxu0  ;;  %8504 = vmatprep.mubr.msk.f32.mxu1 %vm3291_vm5, %v11122_v32  ;;  %v11133_v7 = vld [vmem:[#allocation3 + $0x48] sm:$0xff]  ;;  %v11135_v48 = vld [vmem:[#allocation3 + $0x50] sm:$0xff]  ;;  %v3533_v41 = vrot.slane %v11127_v26, 1 }
 0x31d   : > { %3388 = vst.msk [vmem:[#allocation3 + $0x79] sm:$0xff] %vm3291_vm5, %v3355_v46  ;;  %v3269_v23 = vadd.f32 %v11073_v52, %v3111_v4  ;;  %8505 = vmatmul.mubr.msk.f32.gmra.mrb[8].mxu1 %vm3291_vm5, %v11125_v0  ;;  %v3530_v55 = vrot.slane %v11133_v7, 1  ;;  %v3531_v50 = vrot.slane %v11135_v48, 1 }
 0x31e   : > { %v3358_v51 = vmax.f32 %v3270_v3, 0.0 }
 0x31f   : > { %v3357_v62 = vmax.f32 %v3269_v23, 0.0  ;;  %v8468_v63 = vpop.f32.mrb[12].mxu0  ;;  %v11145_v12 = vsel %vm555_vm3, %v3530_v55, %v3531_v50  ;;  %v11148_v15 = vsel %vm555_vm3, %v3531_v50, %v3533_v41  ;;  %v11150_v17 = vld [vmem:[#allocation3 + $0x70] sm:$0x3] }
 0x320   : > { %12664 = vst [vmem:[#allocation8_spill] sm:$0xff] %v11148_v15  ;;  %3391 = vst.msk [vmem:[#allocation3 + $0x99] sm:$0xff] %vm3291_vm5, %v3358_v51  ;;  %v3272_v18 = vadd.f32 %v8468_v63, %v11073_v52  ;;  %v3121_v19 = vpop.f32.mrb[13].mxu0  ;;  %8507 = vmatprep.mubr.msk.f32.mxu1 %vm3291_vm5, %v11145_v12  ;;  %v11156_v20 = vld [vmem:[#allocation3 + $0x60] sm:$0xff]  ;;  %v11158_v21 = vld [vmem:[#allocation3 + $0x68] sm:$0xff]  ;;  %v3538_v22 = vrot.slane %v11150_v17, 1 }
 0x321   : > { %3390 = vst.msk [vmem:[#allocation3 + $0x91] sm:$0xff] %vm3291_vm5, %v3357_v62  ;;  %v3271_v28 = vadd.f32 %v11073_v52, %v3121_v19  ;;  %8508 = vmatmul.mubr.msk.f32.gmra.mrb[10].mxu1 %vm3291_vm5, %v11148_v15  ;;  %v3535_v33 = vrot.slane %v11156_v20, 1  ;;  %v3536_v35 = vrot.slane %v11158_v21, 1 }
 0x322   : > { %v3360_v36 = vmax.f32 %v3272_v18, 0.0 }
 0x323   : > { %v3359_v37 = vmax.f32 %v3271_v28, 0.0  ;;  %v8471_v56 = vpop.f32.mrb[14].mxu0  ;;  %v11168_v11 = vsel %vm555_vm3, %v3535_v33, %v3536_v35  ;;  %v11171_v27 = vsel %vm555_vm3, %v3536_v35, %v3538_v22  ;;  %v11173_v30 = vld [vmem:[#allocation3 + $0x88] sm:$0x3] }
 0x324   : > { %12665 = vst [vmem:[#allocation9_spill] sm:$0xff] %v11168_v11  ;;  %12666 = vst [vmem:[#allocation12_spill] sm:$0xff] %v11171_v27  ;;  %v3274_v8 = vadd.f32 %v8471_v56, %v11073_v52  ;;  %v3131_v49 = vpop.f32.mrb[15].mxu0  ;;  %8510 = vmatprep.mubr.msk.f32.mxu1 %vm3291_vm5, %v11168_v11  ;;  %v11179_v14 = vld [vmem:[#allocation3 + $0x78] sm:$0xff]  ;;  %v11181_v16 = vld [vmem:[#allocation3 + $0x80] sm:$0xff]  ;;  %v3543_v60 = vrot.slane %v11173_v30, 1 }
 0x325   : > { %3393 = vst.msk [vmem:[#allocation3 + $0xb1] sm:$0xff] %vm3291_vm5, %v3360_v36  ;;  %3392 = vst.msk [vmem:[#allocation3 + $0xa9] sm:$0xff] %vm3291_vm5, %v3359_v37  ;;  %v3273_v6 = vadd.f32 %v11073_v52, %v3131_v49  ;;  %8511 = vmatmul.mubr.msk.f32.gmra.mrb[12].mxu1 %vm3291_vm5, %v11171_v27  ;;  %v3540_v29 = vrot.slane %v11179_v14, 1  ;;  %v3541_v40 = vrot.slane %v11181_v16, 1 }
 0x326   : > { %v3362_v58 = vmax.f32 %v3274_v8, 0.0 }
 0x327   : > { %v3361_v24 = vmax.f32 %v3273_v6, 0.0  ;;  %v8474_v1 = vpop.f32.mrb[16].mxu0  ;;  %v11191_v45 = vsel %vm555_vm3, %v3540_v29, %v3541_v40  ;;  %v11194_v10 = vsel %vm555_vm3, %v3541_v40, %v3543_v60  ;;  %v11196_v43 = vld [vmem:[#allocation3 + $0xa0] sm:$0x3] }
 0x328   : > { %12667 = vst [vmem:[#allocation23_spill] sm:$0xff] %v11191_v45  ;;  %12668 = vst [vmem:[#allocation26_spill] sm:$0xff] %v11194_v10  ;;  %v3276_v46 = vadd.f32 %v8474_v1, %v11073_v52  ;;  %v3141_v61 = vpop.f32.mrb[17].mxu0  ;;  %8513 = vmatprep.mubr.msk.f32.mxu1 %vm3291_vm5, %v11191_v45  ;;  %v11202_v3 = vld [vmem:[#allocation3 + $0x90] sm:$0xff]  ;;  %v11204_v4 = vld [vmem:[#allocation3 + $0x98] sm:$0xff]  ;;  %v3548_v41 = vrot.slane %v11196_v43, 1 }
 0x329   : > { %3395 = vst.msk [vmem:[#allocation3 + $0xc9] sm:$0xff] %vm3291_vm5, %v3362_v58  ;;  %3394 = vst.msk [vmem:[#allocation3 + $0xc1] sm:$0xff] %vm3291_vm5, %v3361_v24  ;;  %v3275_v23 = vadd.f32 %v11073_v52, %v3141_v61  ;;  %8514 = vmatmul.mubr.msk.f32.gmra.mrb[14].mxu1 %vm3291_vm5, %v11194_v10  ;;  %v3545_v55 = vrot.slane %v11202_v3, 1  ;;  %v3546_v50 = vrot.slane %v11204_v4, 1 }
 0x32a   : > { %v3364_v51 = vmax.f32 %v3276_v46, 0.0 }
 0x32b   : > { %v3363_v62 = vmax.f32 %v3275_v23, 0.0  ;;  %v8477_v63 = vpop.f32.mrb[18].mxu0  ;;  %v11214_v18 = vsel %vm555_vm3, %v3545_v55, %v3546_v50  ;;  %v11217_v19 = vsel %vm555_vm3, %v3546_v50, %v3548_v41 }
 0x32c   : > { %12669 = vst [vmem:[#allocation39_spill] sm:$0xff] %v11214_v18  ;;  %12670 = vst [vmem:[#allocation40_spill] sm:$0xff] %v11217_v19  ;;  %v11219_v22 = vld [vmem:[#allocation3 + $0xb8] sm:$0x3]  ;;  %v3278_v28 = vadd.f32 %v8477_v63, %v11073_v52  ;;  %v3151_v33 = vpop.f32.mrb[19].mxu0  ;;  %8516 = vmatprep.mubr.msk.f32.mxu1 %vm3291_vm5, %v11214_v18  ;;  %v11225_v35 = vld [vmem:[#allocation3 + $0xa8] sm:$0xff] }
 0x32d   : > { %3397 = vst.msk [vmem:[#allocation3 + $0xe1] sm:$0xff] %vm3291_vm5, %v3364_v51  ;;  %v11227_v36 = vld [vmem:[#allocation3 + $0xb0] sm:$0xff]  ;;  %v3553_v37 = vrot.slane %v11219_v22, 1  ;;  %3396 = vst.msk [vmem:[#allocation3 + $0xd9] sm:$0xff] %vm3291_vm5, %v3363_v62  ;;  %v3277_v56 = vadd.f32 %v11073_v52, %v3151_v33  ;;  %8517 = vmatmul.mubr.msk.f32.gmra.mrb[16].mxu1 %vm3291_vm5, %v11217_v19  ;;  %v3550_v8 = vrot.slane %v11225_v35, 1 }
 0x32e   : > { %v3551_v49 = vrot.slane %v11227_v36, 1  ;;  %v3366_v60 = vmax.f32 %v3278_v28, 0.0 }
 0x32f   : > { %v3365_v6 = vmax.f32 %v3277_v56, 0.0  ;;  %v8480_v29 = vpop.f32.mrb[20].mxu0 }
 0x330   : > { %v11237_v40 = vsel %vm555_vm3, %v3550_v8, %v3551_v49  ;;  %v11240_v58 = vsel %vm555_vm3, %v3551_v49, %v3553_v37  ;;  %v11242_v24 = vld [vmem:[#allocation3 + $0xd0] sm:$0x3]  ;;  %3399 = vst.msk [vmem:[#allocation3 + $0xf9] sm:$0xff] %vm3291_vm5, %v3366_v60  ;;  %v3280_v1 = vadd.f32 %v8480_v29, %v11073_v52  ;;  %v3161_v46 = vpop.f32.mrb[21].mxu0  ;;  %v11248_v61 = vld [vmem:[#allocation3 + $0xc0] sm:$0xff]  ;;  %v11250_v41 = vld [vmem:[#allocation3 + $0xc8] sm:$0xff] }
 0x331   : > { %12671 = vst [vmem:[#allocation41_spill] sm:$0xff] %v11237_v40  ;;  %12672 = vst [vmem:[#allocation44_spill] sm:$0xff] %v11240_v58  ;;  %8519 = vmatprep.mubr.msk.f32.mxu1 %vm3291_vm5, %v11237_v40  ;;  %v3558_v23 = vrot.slane %v11242_v24, 1  ;;  %v3279_v55 = vadd.f32 %v11073_v52, %v3161_v46  ;;  %v3555_v50 = vrot.slane %v11248_v61, 1  ;;  %v3556_v51 = vrot.slane %v11250_v41, 1 }
 0x332   : > { %3398 = vst.msk [vmem:[#allocation3 + $0xf1] sm:$0xff] %vm3291_vm5, %v3365_v6  ;;  %8520 = vmatmul.mubr.msk.f32.gmra.mrb[18].mxu1 %vm3291_vm5, %v11240_v58  ;;  %v3368_v62 = vmax.f32 %v3280_v1, 0.0 }
 0x333   : > { %v3367_v63 = vmax.f32 %v3279_v55, 0.0  ;;  %v8483_v28 = vpop.f32.mrb[22].mxu0  ;;  %v11260_v33 = vsel %vm555_vm3, %v3555_v50, %v3556_v51  ;;  %v11263_v37 = vsel %vm555_vm3, %v3556_v51, %v3558_v23 }
 0x334   : > { %12673 = vst [vmem:[#allocation10_spill] sm:$0xff] %v11260_v33  ;;  %12674 = vst [vmem:[#allocation11_spill] sm:$0xff] %v11263_v37  ;;  %v11265_v56 = vld [vmem:[#allocation3 + $0xe8] sm:$0x3]  ;;  %v3282_v8 = vadd.f32 %v8483_v28, %v11073_v52  ;;  %v3171_v49 = vpop.f32.mrb[23].mxu0  ;;  %8522 = vmatprep.mubr.msk.f32.mxu1 %vm3291_vm5, %v11260_v33  ;;  %v11271_v60 = vld [vmem:[#allocation3 + $0xd8] sm:$0xff] }
 0x335   : > { %3401 = vst.msk [vmem:[#allocation3 + $0x111] sm:$0xff] %vm3291_vm5, %v3368_v62  ;;  %v11273_v6 = vld [vmem:[#allocation3 + $0xe0] sm:$0xff]  ;;  %v3563_v29 = vrot.slane %v11265_v56, 1  ;;  %3400 = vst.msk [vmem:[#allocation3 + $0x109] sm:$0xff] %vm3291_vm5, %v3367_v63  ;;  %v3281_v1 = vadd.f32 %v11073_v52, %v3171_v49  ;;  %v3560_v46 = vrot.slane %v11271_v60, 1 }
 0x336   : > { %8523 = vmatmul.mubr.msk.f32.gmra.mrb[20].mxu1 %vm3291_vm5, %v11263_v37  ;;  %v3561_v23 = vrot.slane %v11273_v6, 1  ;;  %v3370_v55 = vmax.f32 %v3282_v8, 0.0 }
 0x337   : > { %v3369_v50 = vmax.f32 %v3281_v1, 0.0  ;;  %v8486_v51 = vpop.f32.mrb[24].mxu0  ;;  %v11288_v33 = vld [vmem:[#allocation3 + $0x100] sm:$0x3] }
 0x338   : > { %v11283_v62 = vsel %vm555_vm3, %v3560_v46, %v3561_v23  ;;  %v11286_v28 = vsel %vm555_vm3, %v3561_v23, %v3563_v29  ;;  %3403 = vst.msk [vmem:[#allocation3 + $0x129] sm:$0xff] %vm3291_vm5, %v3370_v55  ;;  %v3284_v63 = vadd.f32 %v8486_v51, %v11073_v52  ;;  %v3181_v49 = vpop.f32.mrb[25].mxu0  ;;  %v3568_v1 = vrot.slane %v11288_v33, 1 }
 0x339   : > { %12675 = vst [vmem:[#allocation13_spill] sm:$0xff] %v11283_v62  ;;  %12676 = vst [vmem:[#allocation14_spill] sm:$0xff] %v11286_v28  ;;  %8525 = vmatprep.mubr.msk.f32.mxu1 %vm3291_vm5, %v11283_v62  ;;  %v11294_v37 = vld [vmem:[#allocation3 + $0xf0] sm:$0xff]  ;;  %v11296_v8 = vld [vmem:[#allocation3 + $0xf8] sm:$0xff]  ;;  %v3283_v29 = vadd.f32 %v11073_v52, %v3181_v49 }
 0x33a   : > { %3402 = vst.msk [vmem:[#allocation3 + $0x121] sm:$0xff] %vm3291_vm5, %v3369_v50  ;;  %8526 = vmatmul.mubr.msk.f32.gmra.mrb[22].mxu1 %vm3291_vm5, %v11286_v28  ;;  %v3565_v46 = vrot.slane %v11294_v37, 1  ;;  %v3566_v23 = vrot.slane %v11296_v8, 1  ;;  %v3372_v55 = vmax.f32 %v3284_v63, 0.0 }
 0x33b   : > { %v3371_v51 = vmax.f32 %v3283_v29, 0.0  ;;  %v8489_v62 = vpop.f32.mrb[26].mxu0 }
 0x33c   : > { %v11306_v58 = vsel %vm555_vm3, %v3565_v46, %v3566_v23  ;;  %v11309_v40 = vsel %vm555_vm3, %v3566_v23, %v3568_v1  ;;  %v11311_v19 = vld [vmem:[#allocation3 + $0x118] sm:$0x3]  ;;  %3405 = vst.msk [vmem:[#allocation3 + $0x141] sm:$0xff] %vm3291_vm5, %v3372_v55  ;;  %v3286_v50 = vadd.f32 %v8489_v62, %v11073_v52  ;;  %v3191_v49 = vpop.f32.mrb[27].mxu0  ;;  %v11317_v28 = vld [vmem:[#allocation3 + $0x108] sm:$0xff]  ;;  %v11319_v63 = vld [vmem:[#allocation3 + $0x110] sm:$0xff] }
 0x33d   : > { %12677 = vst [vmem:[#allocation15_spill] sm:$0xff] %v11306_v58  ;;  %12678 = vst [vmem:[#allocation16_spill] sm:$0xff] %v11309_v40  ;;  %8528 = vmatprep.mubr.msk.f32.mxu1 %vm3291_vm5, %v11306_v58  ;;  %v3573_v29 = vrot.slane %v11311_v19, 1  ;;  %v3285_v1 = vadd.f32 %v11073_v52, %v3191_v49  ;;  %v3570_v46 = vrot.slane %v11317_v28, 1  ;;  %v3571_v62 = vrot.slane %v11319_v63, 1 }
 0x33e   : > { %3404 = vst.msk [vmem:[#allocation3 + $0x139] sm:$0xff] %vm3291_vm5, %v3371_v51  ;;  %8529 = vmatmul.mubr.msk.f32.gmra.mrb[24].mxu1 %vm3291_vm5, %v11309_v40  ;;  %v3374_v23 = vmax.f32 %v3286_v50, 0.0 }
 0x33f   : > { %v3373_v55 = vmax.f32 %v3285_v1, 0.0  ;;  %v8492_v58 = vpop.f32.mrb[28].mxu0  ;;  %v11329_v18 = vsel %vm555_vm3, %v3570_v46, %v3571_v62  ;;  %v11332_v10 = vsel %vm555_vm3, %v3571_v62, %v3573_v29  ;;  %v11334_v45 = vld [vmem:[#allocation3 + $0x130] sm:$0x3] }
 0x340   : > { %12679 = vst [vmem:[#allocation17_spill] sm:$0xff] %v11329_v18  ;;  %12680 = vst [vmem:[#allocation18_spill] sm:$0xff] %v11332_v10  ;;  %v8962_v51 = vadd.f32 %v8492_v58, %v11056_v54  ;;  %v3201_v49 = vpop.f32.mrb[29].mxu0  ;;  %8531 = vmatprep.mubr.msk.f32.mxu1 %vm3291_vm5, %v11329_v18  ;;  %v3578_v1 = vrot.slane %v11334_v45, 1 }
 0x341   : > { %3407 = vst.msk [vmem:[#allocation3 + $0x159] sm:$0xff] %vm3291_vm5, %v3374_v23  ;;  %v11340_v40 = vld [vmem:[#allocation3 + $0x120] sm:$0xff]  ;;  %v11342_v50 = vld [vmem:[#allocation3 + $0x128] sm:$0xff]  ;;  %3406 = vst.msk [vmem:[#allocation3 + $0x151] sm:$0xff] %vm3291_vm5, %v3373_v55  ;;  %v8963_v29 = vadd.f32 %v3201_v49, %v11058_v38 }
 0x342   : > { %8532 = vmatmul.mubr.msk.f32.gmra.mrb[26].mxu1 %vm3291_vm5, %v11332_v10  ;;  %v3575_v46 = vrot.slane %v11340_v40, 1  ;;  %v3576_v54 = vrot.slane %v11342_v50, 1  ;;  %v3288_v58 = vadd.f32 %v8962_v51, %v11073_v52 }
 0x343   : > { %v3287_v62 = vadd.f32 %v8963_v29, %v11073_v52  ;;  %v8495_v23 = vpop.f32.mrb[30].mxu0  ;;  %v11359_v55 = vld [vmem:[#allocation3 + $0x148] sm:$0x3] }
 0x344   : > { %v11354_v18 = vsel %vm555_vm3, %v3575_v46, %v3576_v54  ;;  %v11357_v27 = vsel %vm555_vm3, %v3576_v54, %v3578_v1  ;;  %v3376_v38 = vmax.f32 %v3288_v58, 0.0  ;;  %v8964_v49 = vadd.f32 %v8495_v23, %v11060_v39  ;;  %v3211_v10 = vpop.f32.mrb[31].mxu0 }
 0x345   : > { %12681 = vst [vmem:[#allocation19_spill] sm:$0xff] %v11354_v18  ;;  %12682 = vst [vmem:[#allocation20_spill] sm:$0xff] %v11357_v27  ;;  %8534 = vmatprep.mubr.msk.f32.mxu1 %vm3291_vm5, %v11354_v18  ;;  %v11364_v11 = vld [vmem:[#allocation3 + $0x138] sm:$0xff]  ;;  %v11366_v51 = vld [vmem:[#allocation3 + $0x140] sm:$0xff]  ;;  %v3583_v29 = vrot.slane %v11359_v55, 1  ;;  %v3375_v46 = vmax.f32 %v3287_v62, 0.0  ;;  %v8965_v15 = vadd.f32 %v3211_v10, %v11062_v25 }
 0x346   : > { %8535 = vmatmul.mubr.msk.f32.gmra.mrb[28].mxu1 %vm3291_vm5, %v11357_v27  ;;  %v3580_v1 = vrot.slane %v11364_v11, 1  ;;  %v3581_v39 = vrot.slane %v11366_v51, 1  ;;  %3409 = vst.msk [vmem:[#allocation3 + $0x171] sm:$0xff] %vm3291_vm5, %v3376_v38  ;;  %v3290_v54 = vadd.f32 %v8964_v49, %v11073_v52 }
 0x347   : > { %3408 = vst.msk [vmem:[#allocation3 + $0x169] sm:$0xff] %vm3291_vm5, %v3375_v46  ;;  %v3289_v58 = vadd.f32 %v8965_v15, %v11073_v52 }
 0x348   : > { %v11379_v23 = vsel %vm555_vm3, %v3580_v1, %v3581_v39  ;;  %v11382_v25 = vsel %vm555_vm3, %v3581_v39, %v3583_v29  ;;  %v11384_v10 = vld [vmem:[#allocation3 + $0x160] sm:$0x3]  ;;  %v3378_v62 = vmax.f32 %v3290_v54, 0.0  ;;  %v11388_v27 = vld [vmem:[#allocation3 + $0x150] sm:$0xff]  ;;  %v11390_v38 = vld [vmem:[#allocation3 + $0x158] sm:$0xff] }
 0x349   : > { %12683 = vst [vmem:[#allocation21_spill] sm:$0xff] %v11382_v25  ;;  %8537 = vmatprep.mubr.msk.f32.mxu1 %vm3291_vm5, %v11379_v23  ;;  %v3588_v49 = vrot.slane %v11384_v10, 1  ;;  %v3377_v46 = vmax.f32 %v3289_v58, 0.0  ;;  %v3585_v52 = vrot.slane %v11388_v27, 1  ;;  %v3586_v15 = vrot.slane %v11390_v38, 1 }
 0x34a   : > { %8538 = vmatmul.mubr.msk.f32.gmra.mrb[30].mxu1 %vm3291_vm5, %v11382_v25  ;;  %3411 = vst.msk [vmem:[#allocation3 + $0x189] sm:$0xff] %vm3291_vm5, %v3378_v62  ;;  %v4186_v25 = vrot.slane %v11112_v59, 2 }
 0x34b   : > { %3410 = vst.msk [vmem:[#allocation3 + $0x181] sm:$0xff] %vm3291_vm5, %v3377_v46  ;;  %v11400_v29 = vsel %vm555_vm3, %v3585_v52, %v3586_v15  ;;  %v11403_v1 = vsel %vm555_vm3, %v3586_v15, %v3588_v49 }
 0x34c   : > { %12684 = vst [vmem:[#allocation22_spill] sm:$0xff] %v11400_v29  ;;  %12685 = vst [vmem:[#allocation24_spill] sm:$0xff] %v11403_v1  ;;  %8540 = vmatprep.mubr.msk.f32.mxu1 %vm3291_vm5, %v11400_v29  ;;  %v11508_v29 = vld [vmem:[%s12375_s3 + $0x20] sm:$0xff] }
 0x34d   : > { %v11409_v39 = vld [vmem:[#allocation3 + $0x178] sm:$0x3] }
 0x34e   : > { %8541 = vmatmul.mubr.msk.f32.gmra.mrb[32].mxu1 %vm3291_vm5, %v11403_v1  ;;  %v11411_v54 = vld [vmem:[#allocation3 + $0x168] sm:$0xff]  ;;  %v11413_v58 = vld [vmem:[#allocation3 + $0x170] sm:$0xff]  ;;  %v3593_v62 = vrot.slane %v11409_v39, 1 }
 0x34f   : > { %v3590_v46 = vrot.slane %v11411_v54, 1  ;;  %v3591_v52 = vrot.slane %v11413_v58, 1  ;;  %v7227_v1 = vld [vmem:[%s12375_s3 + $0x18] sm:$0xff] }
 0x351   : > { %v11419_v49 = vsel %vm555_vm3, %v3590_v46, %v3591_v52  ;;  %v11422_v15 = vsel %vm555_vm3, %v3591_v52, %v3593_v62  ;;  %v4176_v62 = vrot.slane %v11039_v34, 2  ;;  %v4178_v46 = vrot.slane %v11046_v42, 2 }
 0x352   : > { %12686 = vst [vmem:[#allocation25_spill] sm:$0xff] %v11419_v49  ;;  %12687 = vst [vmem:[#allocation27_spill] sm:$0xff] %v11422_v15  ;;  %8543 = vmatprep.mubr.msk.f32.mxu1 %vm3291_vm5, %v11419_v49  ;;  %v4181_v49 = vrot.slane %v11091_v5, 2 }
 0x353   : > { %8544 = vmatmul.mubr.msk.f32.gmra.mrb[34].mxu1 %vm3291_vm5, %v11422_v15  ;;  %v4180_v15 = vrot.slane %v11089_v31, 2 }
 0x354   : > { %8548 = vmatprep.mubr.msk.f32.mxu1 %vm3291_vm5, %v11037_v47 }
 0x355   : > { %v11512_v42 = vsel %vm1223_vm4, %v4180_v15, %v4181_v49 }
 0x357   : > { %8549 = vmatmul.mubr.msk.f32.vlgmr.msra.gmra.mrb[4].mxu1 %vm3291_vm5, %v11039_v34  ;;  %v4183_v34 = vrot.slane %v11085_v13, 2 }
 0x358   : > { %8597 = vmatpush3.msra.mxu1 %v11067_v44  ;;  %8551 = vmatprep.mubr.msk.f32.mxu1 %vm3291_vm5, %v11089_v31  ;;  %v4175_v44 = vrot.slane %v11037_v47, 2  ;;  %v4179_v47 = vsel %vm1223_vm4, %v4176_v62, %v4178_v46  ;;  %v4190_v46 = vrot.slane %v11133_v7, 2 }
 0x359   : > { %8646 = vmatprep.subr.mxu1 %v7227_v1  ;;  %v11520_v13 = vsel %vm1223_vm4, %v4181_v49, %v4183_v34  ;;  %v4193_v49 = vrot.slane %v11127_v26, 2  ;;  %v4196_v34 = vrot.slane %v11158_v21, 2 }
 0x35a   : > { %v4177_v52 = vsel %vm1223_vm4, %v4175_v44, %v4176_v62  ;;  %v4185_v44 = vrot.slane %v11110_v57, 2  ;;  %v4188_v62 = vrot.slane %v11104_v53, 2 }
 0x35b   : > { %8552 = vmatmul.mubr.msk.f32.gmra.mrb[6].mxu1 %vm3291_vm5, %v11091_v5 }
 0x35c   : > { %8554 = vmatprep.mubr.msk.f32.mxu1 %vm3291_vm5, %v11110_v57  ;;  %v11526_v15 = vsel %vm1223_vm4, %v4185_v44, %v4186_v25 }
 0x35f   : > { %8555 = vmatmul.mubr.msk.f32.gmra.mrb[8].mxu1 %vm3291_vm5, %v11112_v59 }
 0x360   : > { %8557 = vmatprep.mubr.msk.f32.mxu1 %vm3291_vm5, %v11133_v7 }
 0x363   : > { %8558 = vmatmul.mubr.msk.f32.gmra.mrb[10].mxu1 %vm3291_vm5, %v11135_v48 }
 0x364   : > { %8560 = vmatprep.mubr.msk.f32.mxu1 %vm3291_vm5, %v11156_v20 }
 0x367   : > { %8561 = vmatmul.mubr.msk.f32.gmra.mrb[12].mxu1 %vm3291_vm5, %v11158_v21 }
 0x368   : > { %8563 = vmatprep.mubr.msk.f32.mxu1 %vm3291_vm5, %v11179_v14 }
 0x36b   : > { %8564 = vmatmul.mubr.msk.f32.gmra.mrb[14].mxu1 %vm3291_vm5, %v11181_v16 }
 0x36c   : > { %8566 = vmatprep.mubr.msk.f32.mxu1 %vm3291_vm5, %v11202_v3 }
 0x36f   : > { %8567 = vmatmul.mubr.msk.f32.gmra.mrb[16].mxu1 %vm3291_vm5, %v11204_v4 }
 0x370   : > { %8569 = vmatprep.mubr.msk.f32.mxu1 %vm3291_vm5, %v11225_v35 }
 0x373   : > { %8570 = vmatmul.mubr.msk.f32.gmra.mrb[18].mxu1 %vm3291_vm5, %v11227_v36 }
 0x374   : > { %8572 = vmatprep.mubr.msk.f32.mxu1 %vm3291_vm5, %v11248_v61 }
 0x377   : > { %8573 = vmatmul.mubr.msk.f32.gmra.mrb[20].mxu1 %vm3291_vm5, %v11250_v41 }
 0x378   : > { %8575 = vmatprep.mubr.msk.f32.mxu1 %vm3291_vm5, %v11271_v60 }
 0x37b   : > { %8576 = vmatmul.mubr.msk.f32.gmra.mrb[22].mxu1 %vm3291_vm5, %v11273_v6 }
 0x37c   : > { %8578 = vmatprep.mubr.msk.f32.mxu1 %vm3291_vm5, %v11294_v37 }
 0x37f   : > { %8579 = vmatmul.mubr.msk.f32.gmra.mrb[24].mxu1 %vm3291_vm5, %v11296_v8 }
 0x380   : > { %8581 = vmatprep.mubr.msk.f32.mxu1 %vm3291_vm5, %v11317_v28 }
 0x383   : > { %8582 = vmatmul.mubr.msk.f32.gmra.mrb[26].mxu1 %vm3291_vm5, %v11319_v63 }
 0x384   : > { %8584 = vmatprep.mubr.msk.f32.mxu1 %vm3291_vm5, %v11340_v40 }
 0x387   : > { %8585 = vmatmul.mubr.msk.f32.gmra.mrb[28].mxu1 %vm3291_vm5, %v11342_v50 }
 0x388   : > { %8587 = vmatprep.mubr.msk.f32.mxu1 %vm3291_vm5, %v11364_v11 }
 0x38b   : > { %8588 = vmatmul.mubr.msk.f32.gmra.mrb[30].mxu1 %vm3291_vm5, %v11366_v51 }
 0x38c   : > { %8590 = vmatprep.mubr.msk.f32.mxu1 %vm3291_vm5, %v11388_v27 }
 0x38f   : > { %8591 = vmatmul.mubr.msk.f32.gmra.mrb[32].mxu1 %vm3291_vm5, %v11390_v38 }
 0x390   : > { %8593 = vmatprep.mubr.msk.f32.mxu1 %vm3291_vm5, %v11411_v54 }
 0x393   : > { %8594 = vmatmul.mubr.msk.f32.gmra.mrb[34].mxu1 %vm3291_vm5, %v11413_v58 }
 0x394   : > { %8598 = vmatprep.mubr.msk.f32.mxu1 %vm3291_vm5, %v4177_v52  ;;  %v11533_v52 = vsel %vm1223_vm4, %v4186_v25, %v4188_v62  ;;  %v4198_v25 = vrot.slane %v11150_v17, 2  ;;  %v4200_v62 = vrot.slane %v11179_v14, 2 }
 0x397   : > { %8599 = vmatmul.mubr.msk.f32.vlgmr.msra.gmra.mrb[4].mxu1 %vm3291_vm5, %v4179_v47  ;;  %v4195_v47 = vrot.slane %v11156_v20, 2 }
 0x398   : > { %8647 = vmatpush3.msra.mxu1 %v7227_v1  ;;  %8601 = vmatprep.mubr.msk.f32.mxu1 %vm3291_vm5, %v11512_v42  ;;  %v4191_v1 = vrot.slane %v11135_v48, 2 }
 0x399   : > { %8696 = vmatprep.subr.mxu1 %v11508_v29  ;;  %v11552_v26 = vsel %vm1223_vm4, %v4195_v47, %v4196_v34  ;;  %v4206_v47 = vrot.slane %v11204_v4, 2 }
 0x39a   : > { %v11539_v53 = vsel %vm1223_vm4, %v4190_v46, %v4191_v1  ;;  %v11546_v44 = vsel %vm1223_vm4, %v4191_v1, %v4193_v49  ;;  %12689 = vst [vmem:[#allocation29_spill] sm:$0xff] %v11552_v26  ;;  %v4201_v46 = vrot.slane %v11181_v16, 2  ;;  %v4203_v1 = vrot.slane %v11173_v30, 2 }
 0x39b   : > { %8602 = vmatmul.mubr.msk.f32.gmra.mrb[6].mxu1 %vm3291_vm5, %v11520_v13  ;;  %12688 = vst [vmem:[#allocation28_spill] sm:$0xff] %v11539_v53  ;;  %v4205_v49 = vrot.slane %v11202_v3, 2 }
 0x39c   : > { %8604 = vmatprep.mubr.msk.f32.mxu1 %vm3291_vm5, %v11526_v15  ;;  %v11565_v17 = vsel %vm1223_vm4, %v4200_v62, %v4201_v46  ;;  %v4211_v62 = vrot.slane %v11227_v36, 2 }
 0x39d   : > { %12690 = vst [vmem:[#allocation30_spill] sm:$0xff] %v11565_v17  ;;  %v11578_v30 = vsel %vm1223_vm4, %v4205_v49, %v4206_v47  ;;  %v4216_v49 = vrot.slane %v11250_v41, 2 }
 0x39e   : > { %12691 = vst [vmem:[#allocation31_spill] sm:$0xff] %v11578_v30 }
 0x39f   : > { %8605 = vmatmul.mubr.msk.f32.gmra.mrb[8].mxu1 %vm3291_vm5, %v11533_v52 }
 0x3a0   : > { %8607 = vmatprep.mubr.msk.f32.mxu1 %vm3291_vm5, %v11539_v53  ;;  %v11559_v53 = vsel %vm1223_vm4, %v4196_v34, %v4198_v25  ;;  %v4208_v34 = vrot.slane %v11196_v43, 2  ;;  %v4210_v25 = vrot.slane %v11225_v35, 2 }
 0x3a2   : > { %v11591_v43 = vsel %vm1223_vm4, %v4210_v25, %v4211_v62  ;;  %v4221_v25 = vrot.slane %v11273_v6, 2 }
 0x3a3   : > { %8608 = vmatmul.mubr.msk.f32.gmra.mrb[10].mxu1 %vm3291_vm5, %v11546_v44  ;;  %12692 = vst [vmem:[#allocation32_spill] sm:$0xff] %v11591_v43 }
 0x3a4   : > { %8610 = vmatprep.mubr.msk.f32.mxu1 %vm3291_vm5, %v11552_v26  ;;  %v11572_v26 = vsel %vm1223_vm4, %v4201_v46, %v4203_v1  ;;  %v4213_v46 = vrot.slane %v11219_v22, 2  ;;  %v4215_v1 = vrot.slane %v11248_v61, 2 }
 0x3a6   : > { %v11604_v22 = vsel %vm1223_vm4, %v4215_v1, %v4216_v49  ;;  %v4226_v1 = vrot.slane %v11296_v8, 2 }
 0x3a7   : > { %8611 = vmatmul.mubr.msk.f32.gmra.mrb[12].mxu1 %vm3291_vm5, %v11559_v53  ;;  %12693 = vst [vmem:[#allocation33_spill] sm:$0xff] %v11604_v22 }
 0x3a8   : > { %8613 = vmatprep.mubr.msk.f32.mxu1 %vm3291_vm5, %v11565_v17  ;;  %v11585_v17 = vsel %vm1223_vm4, %v4206_v47, %v4208_v34  ;;  %v4218_v47 = vrot.slane %v11242_v24, 2  ;;  %v4220_v34 = vrot.slane %v11271_v60, 2 }
 0x3aa   : > { %v11617_v24 = vsel %vm1223_vm4, %v4220_v34, %v4221_v25  ;;  %v4231_v34 = vrot.slane %v11319_v63, 2 }
 0x3ab   : > { %8614 = vmatmul.mubr.msk.f32.gmra.mrb[14].mxu1 %vm3291_vm5, %v11572_v26  ;;  %12694 = vst [vmem:[#allocation34_spill] sm:$0xff] %v11617_v24 }
 0x3ac   : > { %8616 = vmatprep.mubr.msk.f32.mxu1 %vm3291_vm5, %v11578_v30  ;;  %v11598_v30 = vsel %vm1223_vm4, %v4211_v62, %v4213_v46  ;;  %v4223_v62 = vrot.slane %v11265_v56, 2  ;;  %v4225_v46 = vrot.slane %v11294_v37, 2 }
 0x3ae   : > { %v11630_v56 = vsel %vm1223_vm4, %v4225_v46, %v4226_v1  ;;  %v4236_v46 = vrot.slane %v11342_v50, 2 }
 0x3af   : > { %8617 = vmatmul.mubr.msk.f32.gmra.mrb[16].mxu1 %vm3291_vm5, %v11585_v17  ;;  %12695 = vst [vmem:[#allocation35_spill] sm:$0xff] %v11630_v56 }
 0x3b0   : > { %8619 = vmatprep.mubr.msk.f32.mxu1 %vm3291_vm5, %v11591_v43  ;;  %v11611_v43 = vsel %vm1223_vm4, %v4216_v49, %v4218_v47  ;;  %v4228_v49 = vrot.slane %v11288_v33, 2  ;;  %v4230_v47 = vrot.slane %v11317_v28, 2 }
 0x3b2   : > { %v11643_v33 = vsel %vm1223_vm4, %v4230_v47, %v4231_v34  ;;  %v4241_v47 = vrot.slane %v11366_v51, 2 }
 0x3b3   : > { %8620 = vmatmul.mubr.msk.f32.gmra.mrb[18].mxu1 %vm3291_vm5, %v11598_v30  ;;  %12697 = vst [vmem:[#allocation37_spill] sm:$0xff] %v11643_v33 }
 0x3b4   : > { %8622 = vmatprep.mubr.msk.f32.mxu1 %vm3291_vm5, %v11604_v22  ;;  %v11624_v22 = vsel %vm1223_vm4, %v4221_v25, %v4223_v62  ;;  %v4233_v25 = vrot.slane %v11311_v19, 2  ;;  %v4235_v62 = vrot.slane %v11340_v40, 2 }
 0x3b6   : > { %v11656_v19 = vsel %vm1223_vm4, %v4235_v62, %v4236_v46  ;;  %v4246_v62 = vrot.slane %v11390_v38, 2 }
 0x3b7   : > { %8623 = vmatmul.mubr.msk.f32.gmra.mrb[20].mxu1 %vm3291_vm5, %v11611_v43  ;;  %12698 = vst [vmem:[#allocation38_spill] sm:$0xff] %v11656_v19 }
 0x3b8   : > { %8625 = vmatprep.mubr.msk.f32.mxu1 %vm3291_vm5, %v11617_v24  ;;  %v11637_v24 = vsel %vm1223_vm4, %v4226_v1, %v4228_v49  ;;  %v4238_v1 = vrot.slane %v11334_v45, 2  ;;  %v4240_v49 = vrot.slane %v11364_v11, 2 }
 0x3b9   : > { %12696 = vst [vmem:[#allocation36_spill] sm:$0xff] %v11637_v24 }
 0x3ba   : > { %v11669_v45 = vsel %vm1223_vm4, %v4240_v49, %v4241_v47  ;;  %v4251_v49 = vrot.slane %v11413_v58, 2 }
 0x3bb   : > { %8626 = vmatmul.mubr.msk.f32.gmra.mrb[22].mxu1 %vm3291_vm5, %v11624_v22  ;;  %12700 = vst [vmem:[#allocation43_spill] sm:$0xff] %v11669_v45 }
 0x3bc   : > { %8628 = vmatprep.mubr.msk.f32.mxu1 %vm3291_vm5, %v11630_v56  ;;  %v11650_v56 = vsel %vm1223_vm4, %v4231_v34, %v4233_v25  ;;  %v4243_v34 = vrot.slane %v11359_v55, 2  ;;  %v4245_v25 = vrot.slane %v11388_v27, 2 }
 0x3be   : > { %v11682_v55 = vsel %vm1223_vm4, %v4245_v25, %v4246_v62  ;;  %v12702_v25 = vld [vmem:[#allocation8_spill] sm:$0xff] }
 0x3bf   : > { %8629 = vmatmul.mubr.msk.f32.gmra.mrb[24].mxu1 %vm3291_vm5, %v11637_v24  ;;  %12701 = vst [vmem:[#allocation45_spill] sm:$0xff] %v11682_v55 }
 0x3c0   : > { %8631 = vmatprep.mubr.msk.f32.mxu1 %vm3291_vm5, %v11643_v33  ;;  %v11663_v33 = vsel %vm1223_vm4, %v4236_v46, %v4238_v1  ;;  %v4248_v46 = vrot.slane %v11384_v10, 2  ;;  %v4250_v1 = vrot.slane %v11411_v54, 2 }
 0x3c1   : > { %12699 = vst [vmem:[#allocation42_spill] sm:$0xff] %v11663_v33 }
 0x3c2   : > { %v11695_v10 = vsel %vm1223_vm4, %v4250_v1, %v4251_v49  ;;  %v12707_v1 = vld [vmem:[#allocation39_spill] sm:$0xff] }
 0x3c3   : > { %8632 = vmatmul.mubr.msk.f32.gmra.mrb[26].mxu1 %vm3291_vm5, %v11650_v56 }
 0x3c4   : > { %8634 = vmatprep.mubr.msk.f32.mxu1 %vm3291_vm5, %v11656_v19  ;;  %v11676_v19 = vsel %vm1223_vm4, %v4241_v47, %v4243_v34  ;;  %v4253_v47 = vrot.slane %v11409_v39, 2  ;;  %v7293_v39 = vld [vmem:[%s12375_s3 + $0x28] sm:$0xff] }
 0x3c6   : > { %v11700_v34 = vsel %vm1223_vm4, %v4251_v49, %v4253_v47  ;;  %v12708_v49 = vld [vmem:[#allocation40_spill] sm:$0xff]  ;;  %v12709_v47 = vld [vmem:[#allocation41_spill] sm:$0xff] }
 0x3c7   : > { %8635 = vmatmul.mubr.msk.f32.gmra.mrb[28].mxu1 %vm3291_vm5, %v11663_v33 }
 0x3c8   : > { %8637 = vmatprep.mubr.msk.f32.mxu1 %vm3291_vm5, %v11669_v45  ;;  %v11689_v45 = vsel %vm1223_vm4, %v4246_v62, %v4248_v46  ;;  %v12704_v62 = vld [vmem:[#allocation12_spill] sm:$0xff]  ;;  %v12706_v46 = vld [vmem:[#allocation26_spill] sm:$0xff] }
 0x3cb   : > { %8638 = vmatmul.mubr.msk.f32.gmra.mrb[30].mxu1 %vm3291_vm5, %v11676_v19 }
 0x3cc   : > { %8640 = vmatprep.mubr.msk.f32.mxu1 %vm3291_vm5, %v11682_v55 }
 0x3cf   : > { %8641 = vmatmul.mubr.msk.f32.gmra.mrb[32].mxu1 %vm3291_vm5, %v11689_v45 }
 0x3d0   : > { %8643 = vmatprep.mubr.msk.f32.mxu1 %vm3291_vm5, %v11695_v10 }
 0x3d3   : > { %8644 = vmatmul.mubr.msk.f32.gmra.mrb[34].mxu1 %vm3291_vm5, %v11700_v34 }
 0x3d4   : > { %8648 = vmatprep.mubr.msk.f32.mxu1 %vm3291_vm5, %v11089_v31  ;;  %v11768_v31 = vld [vmem:[#allocation3 + $0x180] sm:$0xff] }
 0x3d7   : > { %8649 = vmatmul.mubr.msk.f32.vlgmr.msra.gmra.mrb[4].mxu1 %vm3291_vm5, %v11091_v5  ;;  %v11772_v5 = vld [vmem:[#allocation3 + $0x188] sm:$0xff] }
 0x3d8   : > { %8697 = vmatpush3.msra.mxu1 %v11508_v29  ;;  %8651 = vmatprep.mubr.msk.f32.mxu1 %vm3291_vm5, %v11110_v57  ;;  %v7326_v29 = vld [vmem:[%s12375_s3 + $0x30] sm:$0xff] }
 0x3d9   : > { %8746 = vmatprep.subr.mxu1 %v7293_v39 }
 0x3db   : > { %8652 = vmatmul.mubr.msk.f32.gmra.mrb[6].mxu1 %vm3291_vm5, %v11112_v59 }
 0x3dc   : > { %8654 = vmatprep.mubr.msk.f32.mxu1 %vm3291_vm5, %v11133_v7 }
 0x3df   : > { %8655 = vmatmul.mubr.msk.f32.gmra.mrb[8].mxu1 %vm3291_vm5, %v11135_v48 }
 0x3e0   : > { %8657 = vmatprep.mubr.msk.f32.mxu1 %vm3291_vm5, %v11156_v20 }
 0x3e3   : > { %8658 = vmatmul.mubr.msk.f32.gmra.mrb[10].mxu1 %vm3291_vm5, %v11158_v21 }
 0x3e4   : > { %8660 = vmatprep.mubr.msk.f32.mxu1 %vm3291_vm5, %v11179_v14 }
 0x3e7   : > { %8661 = vmatmul.mubr.msk.f32.gmra.mrb[12].mxu1 %vm3291_vm5, %v11181_v16 }
 0x3e8   : > { %8663 = vmatprep.mubr.msk.f32.mxu1 %vm3291_vm5, %v11202_v3 }
 0x3eb   : > { %8664 = vmatmul.mubr.msk.f32.gmra.mrb[14].mxu1 %vm3291_vm5, %v11204_v4 }
 0x3ec   : > { %8666 = vmatprep.mubr.msk.f32.mxu1 %vm3291_vm5, %v11225_v35 }
 0x3ef   : > { %8667 = vmatmul.mubr.msk.f32.gmra.mrb[16].mxu1 %vm3291_vm5, %v11227_v36 }
 0x3f0   : > { %8669 = vmatprep.mubr.msk.f32.mxu1 %vm3291_vm5, %v11248_v61 }
 0x3f3   : > { %8670 = vmatmul.mubr.msk.f32.gmra.mrb[18].mxu1 %vm3291_vm5, %v11250_v41 }
 0x3f4   : > { %8672 = vmatprep.mubr.msk.f32.mxu1 %vm3291_vm5, %v11271_v60 }
 0x3f7   : > { %8673 = vmatmul.mubr.msk.f32.gmra.mrb[20].mxu1 %vm3291_vm5, %v11273_v6 }
 0x3f8   : > { %8675 = vmatprep.mubr.msk.f32.mxu1 %vm3291_vm5, %v11294_v37 }
 0x3fb   : > { %8676 = vmatmul.mubr.msk.f32.gmra.mrb[22].mxu1 %vm3291_vm5, %v11296_v8 }
 0x3fc   : > { %8678 = vmatprep.mubr.msk.f32.mxu1 %vm3291_vm5, %v11317_v28 }
 0x3ff   : > { %8679 = vmatmul.mubr.msk.f32.gmra.mrb[24].mxu1 %vm3291_vm5, %v11319_v63 }
 0x400   : > { %8681 = vmatprep.mubr.msk.f32.mxu1 %vm3291_vm5, %v11340_v40 }
 0x403   : > { %8682 = vmatmul.mubr.msk.f32.gmra.mrb[26].mxu1 %vm3291_vm5, %v11342_v50 }
 0x404   : > { %8684 = vmatprep.mubr.msk.f32.mxu1 %vm3291_vm5, %v11364_v11 }
 0x407   : > { %8685 = vmatmul.mubr.msk.f32.gmra.mrb[28].mxu1 %vm3291_vm5, %v11366_v51 }
 0x408   : > { %8687 = vmatprep.mubr.msk.f32.mxu1 %vm3291_vm5, %v11388_v27 }
 0x40b   : > { %8688 = vmatmul.mubr.msk.f32.gmra.mrb[30].mxu1 %vm3291_vm5, %v11390_v38 }
 0x40c   : > { %8690 = vmatprep.mubr.msk.f32.mxu1 %vm3291_vm5, %v11411_v54 }
 0x40f   : > { %8691 = vmatmul.mubr.msk.f32.gmra.mrb[32].mxu1 %vm3291_vm5, %v11413_v58 }
 0x410   : > { %8693 = vmatprep.mubr.msk.f32.mxu1 %vm3291_vm5, %v11768_v31 }
 0x413   : > { %8694 = vmatmul.mubr.msk.f32.gmra.mrb[34].mxu1 %vm3291_vm5, %v11772_v5 }
 0x414   : > { %8698 = vmatprep.mubr.msk.f32.mxu1 %vm3291_vm5, %v11099_v2  ;;  %v12703_v2 = vld [vmem:[#allocation9_spill] sm:$0xff] }
 0x417   : > { %8699 = vmatmul.mubr.msk.f32.vlgmr.msra.gmra.mrb[4].mxu1 %vm3291_vm5, %v11102_v9  ;;  %v12705_v9 = vld [vmem:[#allocation23_spill] sm:$0xff] }
 0x418   : > { %8747 = vmatpush3.msra.mxu1 %v7293_v39  ;;  %8701 = vmatprep.mubr.msk.f32.mxu1 %vm3291_vm5, %v11122_v32  ;;  %v12710_v39 = vld [vmem:[#allocation44_spill] sm:$0xff] }
 0x419   : > { %8796 = vmatprep.subr.mxu1 %v7326_v29 }
 0x41b   : > { %8702 = vmatmul.mubr.msk.f32.gmra.mrb[6].mxu1 %vm3291_vm5, %v11125_v0 }
 0x41c   : > { %8704 = vmatprep.mubr.msk.f32.mxu1 %vm3291_vm5, %v11145_v12 }
 0x41f   : > { %8705 = vmatmul.mubr.msk.f32.gmra.mrb[8].mxu1 %vm3291_vm5, %v12702_v25 }
 0x420   : > { %8707 = vmatprep.mubr.msk.f32.mxu1 %vm3291_vm5, %v12703_v2  ;;  %v12711_v2 = vld [vmem:[#allocation10_spill] sm:$0xff] }
 0x423   : > { %8708 = vmatmul.mubr.msk.f32.gmra.mrb[10].mxu1 %vm3291_vm5, %v12704_v62  ;;  %v12712_v62 = vld [vmem:[#allocation11_spill] sm:$0xff] }
 0x424   : > { %8710 = vmatprep.mubr.msk.f32.mxu1 %vm3291_vm5, %v12705_v9  ;;  %v12713_v9 = vld [vmem:[#allocation13_spill] sm:$0xff] }
 0x427   : > { %8711 = vmatmul.mubr.msk.f32.gmra.mrb[12].mxu1 %vm3291_vm5, %v12706_v46  ;;  %v12714_v46 = vld [vmem:[#allocation14_spill] sm:$0xff] }
 0x428   : > { %8713 = vmatprep.mubr.msk.f32.mxu1 %vm3291_vm5, %v12707_v1  ;;  %v12715_v1 = vld [vmem:[#allocation15_spill] sm:$0xff] }
 0x42b   : > { %8714 = vmatmul.mubr.msk.f32.gmra.mrb[14].mxu1 %vm3291_vm5, %v12708_v49  ;;  %v12716_v49 = vld [vmem:[#allocation16_spill] sm:$0xff] }
 0x42c   : > { %8716 = vmatprep.mubr.msk.f32.mxu1 %vm3291_vm5, %v12709_v47  ;;  %v12717_v47 = vld [vmem:[#allocation17_spill] sm:$0xff] }
 0x42f   : > { %8717 = vmatmul.mubr.msk.f32.gmra.mrb[16].mxu1 %vm3291_vm5, %v12710_v39  ;;  %v12718_v39 = vld [vmem:[#allocation18_spill] sm:$0xff] }
 0x430   : > { %8719 = vmatprep.mubr.msk.f32.mxu1 %vm3291_vm5, %v12711_v2  ;;  %v12724_v2 = vld [vmem:[#allocation27_spill] sm:$0xff] }
 0x433   : > { %8720 = vmatmul.mubr.msk.f32.gmra.mrb[18].mxu1 %vm3291_vm5, %v12712_v62  ;;  %v12719_v62 = vld [vmem:[#allocation20_spill] sm:$0xff] }
 0x434   : > { %8722 = vmatprep.mubr.msk.f32.mxu1 %vm3291_vm5, %v12713_v9  ;;  %v12723_v9 = vld [vmem:[#allocation25_spill] sm:$0xff] }
 0x437   : > { %8723 = vmatmul.mubr.msk.f32.gmra.mrb[20].mxu1 %vm3291_vm5, %v12714_v46  ;;  %v12720_v46 = vld [vmem:[#allocation21_spill] sm:$0xff] }
 0x438   : > { %8725 = vmatprep.mubr.msk.f32.mxu1 %vm3291_vm5, %v12715_v1  ;;  %v12721_v1 = vld [vmem:[#allocation22_spill] sm:$0xff] }
 0x43b   : > { %8726 = vmatmul.mubr.msk.f32.gmra.mrb[22].mxu1 %vm3291_vm5, %v12716_v49  ;;  %v4845_v49 = vrot.slane %v11772_v5, 1 }
 0x43c   : > { %8728 = vmatprep.mubr.msk.f32.mxu1 %vm3291_vm5, %v12717_v47  ;;  %v4844_v47 = vrot.slane %v11768_v31, 1 }
 0x43f   : > { %8729 = vmatmul.mubr.msk.f32.gmra.mrb[24].mxu1 %vm3291_vm5, %v12718_v39  ;;  %v12722_v39 = vld [vmem:[#allocation24_spill] sm:$0xff] }
 0x440   : > { %8731 = vmatprep.mubr.msk.f32.mxu1 %vm3291_vm5, %v11354_v18  ;;  %v3462_v18 = vld [vmem:[#allocation3 + $0x190] sm:$0x3] }
 0x443   : > { %8732 = vmatmul.mubr.msk.f32.gmra.mrb[26].mxu1 %vm3291_vm5, %v12719_v62  ;;  %v4847_v62 = vrot.slane %v3462_v18, 1 }
 0x444   : > { %8734 = vmatprep.mubr.msk.f32.mxu1 %vm3291_vm5, %v11379_v23 }
 0x447   : > { %8735 = vmatmul.mubr.msk.f32.gmra.mrb[28].mxu1 %vm3291_vm5, %v12720_v46  ;;  %v11842_v46 = vsel %vm555_vm3, %v4844_v47, %v4845_v49  ;;  %v12730_v47 = vld [vmem:[#allocation33_spill] sm:$0xff] }
 0x448   : > { %8737 = vmatprep.mubr.msk.f32.mxu1 %vm3291_vm5, %v12721_v1  ;;  %v11847_v1 = vsel %vm555_vm3, %v4845_v49, %v4847_v62  ;;  %v12725_v62 = vld [vmem:[#allocation28_spill] sm:$0xff] }
 0x449   : > { %v12729_v49 = vld [vmem:[#allocation32_spill] sm:$0xff] }
 0x44b   : > { %8738 = vmatmul.mubr.msk.f32.gmra.mrb[30].mxu1 %vm3291_vm5, %v12722_v39 }
 0x44c   : > { %8740 = vmatprep.mubr.msk.f32.mxu1 %vm3291_vm5, %v12723_v9  ;;  %v7359_v9 = vld [vmem:[%s12375_s3 + $0x38] sm:$0xff] }
 0x44f   : > { %8741 = vmatmul.mubr.msk.f32.gmra.mrb[32].mxu1 %vm3291_vm5, %v12724_v2 }
 0x450   : > { %8743 = vmatprep.mubr.msk.f32.mxu1 %vm3291_vm5, %v11842_v46 }
 0x453   : > { %8744 = vmatmul.mubr.msk.f32.gmra.mrb[34].mxu1 %vm3291_vm5, %v11847_v1 }
 0x454   : > { %8748 = vmatprep.mubr.msk.f32.mxu1 %vm3291_vm5, %v11512_v42  ;;  %v12726_v42 = vld [vmem:[#allocation29_spill] sm:$0xff] }
 0x457   : > { %8749 = vmatmul.mubr.msk.f32.vlgmr.msra.gmra.mrb[4].mxu1 %vm3291_vm5, %v11520_v13  ;;  %v12727_v13 = vld [vmem:[#allocation30_spill] sm:$0xff] }
 0x458   : > { %8797 = vmatpush3.msra.mxu1 %v7326_v29  ;;  %8751 = vmatprep.mubr.msk.f32.mxu1 %vm3291_vm5, %v11526_v15  ;;  %v12728_v29 = vld [vmem:[#allocation31_spill] sm:$0xff] }
 0x459   : > { %8846 = vmatprep.subr.mxu1 %v7359_v9 }
 0x45b   : > { %8752 = vmatmul.mubr.msk.f32.gmra.mrb[6].mxu1 %vm3291_vm5, %v11533_v52 }
 0x45c   : > { %8754 = vmatprep.mubr.msk.f32.mxu1 %vm3291_vm5, %v12725_v62 }
 0x45f   : > { %8755 = vmatmul.mubr.msk.f32.gmra.mrb[8].mxu1 %vm3291_vm5, %v11546_v44 }
 0x460   : > { %8757 = vmatprep.mubr.msk.f32.mxu1 %vm3291_vm5, %v12726_v42 }
 0x463   : > { %8758 = vmatmul.mubr.msk.f32.gmra.mrb[10].mxu1 %vm3291_vm5, %v11559_v53 }
 0x464   : > { %8760 = vmatprep.mubr.msk.f32.mxu1 %vm3291_vm5, %v12727_v13  ;;  %v12731_v13 = vld [vmem:[#allocation34_spill] sm:$0xff] }
 0x467   : > { %8761 = vmatmul.mubr.msk.f32.gmra.mrb[12].mxu1 %vm3291_vm5, %v11572_v26 }
 0x468   : > { %8763 = vmatprep.mubr.msk.f32.mxu1 %vm3291_vm5, %v12728_v29  ;;  %v12732_v29 = vld [vmem:[#allocation35_spill] sm:$0xff] }
 0x46b   : > { %8764 = vmatmul.mubr.msk.f32.gmra.mrb[14].mxu1 %vm3291_vm5, %v11585_v17 }
 0x46c   : > { %8766 = vmatprep.mubr.msk.f32.mxu1 %vm3291_vm5, %v12729_v49  ;;  %v12733_v49 = vld [vmem:[#allocation37_spill] sm:$0xff] }
 0x46f   : > { %8767 = vmatmul.mubr.msk.f32.gmra.mrb[16].mxu1 %vm3291_vm5, %v11598_v30 }
 0x470   : > { %8769 = vmatprep.mubr.msk.f32.mxu1 %vm3291_vm5, %v12730_v47  ;;  %v12734_v47 = vld [vmem:[#allocation38_spill] sm:$0xff] }
 0x473   : > { %8770 = vmatmul.mubr.msk.f32.gmra.mrb[18].mxu1 %vm3291_vm5, %v11611_v43 }
 0x474   : > { %8772 = vmatprep.mubr.msk.f32.mxu1 %vm3291_vm5, %v12731_v13  ;;  %v12735_v13 = vld [vmem:[#allocation43_spill] sm:$0xff] }
 0x477   : > { %8773 = vmatmul.mubr.msk.f32.gmra.mrb[20].mxu1 %vm3291_vm5, %v11624_v22 }
 0x478   : > { %8775 = vmatprep.mubr.msk.f32.mxu1 %vm3291_vm5, %v12732_v29 }
 0x47b   : > { %8776 = vmatmul.mubr.msk.f32.gmra.mrb[22].mxu1 %vm3291_vm5, %v11637_v24  ;;  %v5113_v24 = vrot.slane %v11772_v5, 2 }
 0x47c   : > { %8778 = vmatprep.mubr.msk.f32.mxu1 %vm3291_vm5, %v12733_v49  ;;  %v5112_v49 = vrot.slane %v11768_v31, 2 }
 0x47f   : > { %8779 = vmatmul.mubr.msk.f32.gmra.mrb[24].mxu1 %vm3291_vm5, %v11650_v56 }
 0x480   : > { %8781 = vmatprep.mubr.msk.f32.mxu1 %vm3291_vm5, %v12734_v47 }
 0x483   : > { %8782 = vmatmul.mubr.msk.f32.gmra.mrb[26].mxu1 %vm3291_vm5, %v11663_v33  ;;  %v5115_v33 = vrot.slane %v3462_v18, 2  ;;  %v6530_v18 = vld [vmem:[%s12377_s5] sm:$0xf] }
 0x484   : > { %8784 = vmatprep.mubr.msk.f32.mxu1 %vm3291_vm5, %v12735_v13  ;;  %v11917_v13 = vsel %vm1223_vm4, %v5112_v49, %v5113_v24  ;;  %8946 = vmatprep.subr.msk.mxu0 %vm702_vm0, %v6530_v18  ;;  %v7392_v49 = vld [vmem:[%s12375_s3 + $0x40] sm:$0xff] }
 0x485   : > { %8947 = vmatpush3.msk.msra.mxu0 %vm702_vm0, %v6530_v18 }
 0x487   : > { %8785 = vmatmul.mubr.msk.f32.gmra.mrb[28].mxu1 %vm3291_vm5, %v11676_v19 }
 0x488   : > { %8787 = vmatprep.mubr.msk.f32.mxu1 %vm3291_vm5, %v11682_v55  ;;  %v11922_v55 = vsel %vm1223_vm4, %v5113_v24, %v5115_v33 }
 0x48b   : > { %8788 = vmatmul.mubr.msk.f32.gmra.mrb[30].mxu1 %vm3291_vm5, %v11689_v45 }
 0x48c   : > { %8790 = vmatprep.mubr.msk.f32.mxu1 %vm3291_vm5, %v11695_v10 }
 0x48f   : > { %8791 = vmatmul.mubr.msk.f32.gmra.mrb[32].mxu1 %vm3291_vm5, %v11700_v34 }
 0x490   : > { %8793 = vmatprep.mubr.msk.f32.mxu1 %vm3291_vm5, %v11917_v13 }
 0x493   : > { %8794 = vmatmul.mubr.msk.f32.gmra.mrb[34].mxu1 %vm3291_vm5, %v11922_v55 }
 0x494   : > { %8798 = vmatprep.mubr.msk.f32.mxu1 %vm3291_vm5, %v11110_v57  ;;  %v6515_v57 = vld [vmem:[#allocation2 + $0x19] ss:$2 sm:$0xff] }
 0x495   : > { %8948 = vmatprep.mubr.msk.f32.mxu0 %vm277_vm1, %v6515_v57 }
 0x497   : > { %8799 = vmatmul.mubr.msk.f32.vlgmr.msra.gmra.mrb[4].mxu1 %vm3291_vm5, %v11112_v59  ;;  %v6517_v59 = vld [vmem:[#allocation2 + $0x49] ss:$2 sm:$0xff] }
 0x498   : > { %8847 = vmatpush3.msra.mxu1 %v7359_v9  ;;  %8801 = vmatprep.mubr.msk.f32.mxu1 %vm3291_vm5, %v11133_v7  ;;  %v6519_v7 = vld [vmem:[#allocation2 + $0x79] ss:$2 sm:$0xff] }
 0x499   : > { %8896 = vmatprep.subr.mxu1 %v7392_v49  ;;  %8949 = vmatmul.mubr.msk.f32.vlgmr.msra.gmra.mrb[32].mxu0 %vm277_vm1, %v6517_v59 }
 0x49a   : > { %8951 = vmatprep.mubr.msk.f32.mxu0 %vm277_vm1, %v6519_v7 }
 0x49b   : > { %8802 = vmatmul.mubr.msk.f32.gmra.mrb[6].mxu1 %vm3291_vm5, %v11135_v48  ;;  %v6521_v48 = vld [vmem:[#allocation2 + $0xa9] ss:$2 sm:$0xff] }
 0x49c   : > { %8804 = vmatprep.mubr.msk.f32.mxu1 %vm3291_vm5, %v11156_v20  ;;  %v6523_v20 = vld [vmem:[#allocation2 + $0xd9] ss:$2 sm:$0xff] }
 0x49d   : > { %8952 = vmatmul.mubr.msk.f32.gmra.mrb[34].mxu0 %vm277_vm1, %v6521_v48 }
 0x49e   : > { %8954 = vmatprep.mubr.msk.f32.mxu0 %vm277_vm1, %v6523_v20 }
 0x49f   : > { %8805 = vmatmul.mubr.msk.f32.gmra.mrb[8].mxu1 %vm3291_vm5, %v11158_v21  ;;  %v6525_v21 = vld [vmem:[#allocation2 + $0x109] ss:$2 sm:$0xff] }
 0x4a0   : > { %8807 = vmatprep.mubr.msk.f32.mxu1 %vm3291_vm5, %v11179_v14  ;;  %v6527_v14 = vld [vmem:[#allocation2 + $0x139] ss:$2 sm:$0xff] }
 0x4a1   : > { %8955 = vmatmul.mubr.msk.f32.gmra.mrb[36].mxu0 %vm277_vm1, %v6525_v21 }
 0x4a2   : > { %8957 = vmatprep.mubr.msk.f32.mxu0 %vm277_vm1, %v6527_v14 }
 0x4a3   : > { %8808 = vmatmul.mubr.msk.f32.gmra.mrb[10].mxu1 %vm3291_vm5, %v11181_v16  ;;  %v6529_v16 = vld [vmem:[#allocation2 + $0x169] ss:$2 sm:$0xff] }
 0x4a4   : > { %8810 = vmatprep.mubr.msk.f32.mxu1 %vm3291_vm5, %v11202_v3  ;;  %v12736_v3 = vld [vmem:[#allocation9_spill] sm:$0xff] }
 0x4a5   : > { %8958 = vmatmul.mubr.msk.f32.gmra.mrb[38].mxu0 %vm277_vm1, %v6529_v16 }
 0x4a7   : > { %8811 = vmatmul.mubr.msk.f32.gmra.mrb[12].mxu1 %vm3291_vm5, %v11204_v4  ;;  %v12737_v4 = vld [vmem:[#allocation12_spill] sm:$0xff] }
 0x4a8   : > { %8813 = vmatprep.mubr.msk.f32.mxu1 %vm3291_vm5, %v11225_v35  ;;  %v12739_v35 = vld [vmem:[#allocation26_spill] sm:$0xff] }
 0x4ab   : > { %8814 = vmatmul.mubr.msk.f32.gmra.mrb[14].mxu1 %vm3291_vm5, %v11227_v36  ;;  %v12741_v36 = vld [vmem:[#allocation40_spill] sm:$0xff] }
 0x4ac   : > { %8816 = vmatprep.mubr.msk.f32.mxu1 %vm3291_vm5, %v11248_v61  ;;  %v12744_v61 = vld [vmem:[#allocation10_spill] sm:$0xff] }
 0x4af   : > { %8817 = vmatmul.mubr.msk.f32.gmra.mrb[16].mxu1 %vm3291_vm5, %v11250_v41  ;;  %v12745_v41 = vld [vmem:[#allocation11_spill] sm:$0xff] }
 0x4b0   : > { %8819 = vmatprep.mubr.msk.f32.mxu1 %vm3291_vm5, %v11271_v60  ;;  %v12747_v60 = vld [vmem:[#allocation14_spill] sm:$0xff] }
 0x4b3   : > { %8820 = vmatmul.mubr.msk.f32.gmra.mrb[18].mxu1 %vm3291_vm5, %v11273_v6  ;;  %v12748_v6 = vld [vmem:[#allocation15_spill] sm:$0xff] }
 0x4b4   : > { %8822 = vmatprep.mubr.msk.f32.mxu1 %vm3291_vm5, %v11294_v37  ;;  %v12746_v37 = vld [vmem:[#allocation13_spill] sm:$0xff] }
 0x4b7   : > { %8823 = vmatmul.mubr.msk.f32.gmra.mrb[20].mxu1 %vm3291_vm5, %v11296_v8  ;;  %v12750_v8 = vld [vmem:[#allocation17_spill] sm:$0xff] }
 0x4b8   : > { %8825 = vmatprep.mubr.msk.f32.mxu1 %vm3291_vm5, %v11317_v28  ;;  %v12749_v28 = vld [vmem:[#allocation16_spill] sm:$0xff] }
 0x4bb   : > { %8826 = vmatmul.mubr.msk.f32.gmra.mrb[22].mxu1 %vm3291_vm5, %v11319_v63  ;;  %v12751_v63 = vld [vmem:[#allocation18_spill] sm:$0xff] }
 0x4bc   : > { %8828 = vmatprep.mubr.msk.f32.mxu1 %vm3291_vm5, %v11340_v40  ;;  %v12743_v40 = vld [vmem:[#allocation44_spill] sm:$0xff] }
 0x4bf   : > { %8829 = vmatmul.mubr.msk.f32.gmra.mrb[24].mxu1 %vm3291_vm5, %v11342_v50  ;;  %v12752_v50 = vld [vmem:[#allocation19_spill] sm:$0xff] }
 0x4c0   : > { %8831 = vmatprep.mubr.msk.f32.mxu1 %vm3291_vm5, %v11364_v11  ;;  %v11998_v11 = vld [vmem:[#allocation3 + $0x198] sm:$0xff] }
 0x4c1   : > { %v5646_v24 = vrot.slane %v11998_v11, 1 }
 0x4c3   : > { %8832 = vmatmul.mubr.msk.f32.gmra.mrb[26].mxu1 %vm3291_vm5, %v11366_v51  ;;  %v12753_v51 = vld [vmem:[#allocation20_spill] sm:$0xff] }
 0x4c4   : > { %8834 = vmatprep.mubr.msk.f32.mxu1 %vm3291_vm5, %v11388_v27  ;;  %v12004_v27 = vld [vmem:[#allocation3 + $0x1a0] sm:$0xff] }
 0x4c5   : > { %v5647_v33 = vrot.slane %v12004_v27, 1  ;;  %v5915_v9 = vrot.slane %v12004_v27, 2 }
 0x4c7   : > { %8835 = vmatmul.mubr.msk.f32.gmra.mrb[28].mxu1 %vm3291_vm5, %v11390_v38  ;;  %v12754_v38 = vld [vmem:[#allocation21_spill] sm:$0xff] }
 0x4c8   : > { %8837 = vmatprep.mubr.msk.f32.mxu1 %vm3291_vm5, %v11411_v54  ;;  %v12755_v54 = vld [vmem:[#allocation22_spill] sm:$0xff] }
 0x4cb   : > { %8838 = vmatmul.mubr.msk.f32.gmra.mrb[30].mxu1 %vm3291_vm5, %v11413_v58  ;;  %v12756_v58 = vld [vmem:[#allocation25_spill] sm:$0xff] }
 0x4cc   : > { %8840 = vmatprep.mubr.msk.f32.mxu1 %vm3291_vm5, %v11768_v31  ;;  %v3465_v31 = vld [vmem:[#allocation3 + $0x1a8] sm:$0x3] }
 0x4cf   : > { %8841 = vmatmul.mubr.msk.f32.gmra.mrb[32].mxu1 %vm3291_vm5, %v11772_v5  ;;  %v5648_v5 = vsel %vm555_vm3, %v5646_v24, %v5647_v33 }
 0x4d0   : > { %8843 = vmatprep.mubr.msk.f32.mxu1 %vm3291_vm5, %v11998_v11 }
 0x4d3   : > { %8844 = vmatmul.mubr.msk.f32.gmra.mrb[34].mxu1 %vm3291_vm5, %v12004_v27 }
 0x4d4   : > { %8848 = vmatprep.mubr.msk.f32.mxu1 %vm3291_vm5, %v11122_v32  ;;  %v12738_v32 = vld [vmem:[#allocation23_spill] sm:$0xff] }
 0x4d7   : > { %8849 = vmatmul.mubr.msk.f32.vlgmr.msra.gmra.mrb[4].mxu1 %vm3291_vm5, %v11125_v0  ;;  %v12740_v0 = vld [vmem:[#allocation39_spill] sm:$0xff] }
 0x4d8   : > { %8897 = vmatpush3.msra.mxu1 %v7392_v49  ;;  %8851 = vmatprep.mubr.msk.f32.mxu1 %vm3291_vm5, %v11145_v12  ;;  %v12742_v12 = vld [vmem:[#allocation41_spill] sm:$0xff] }
 0x4db   : > { %8852 = vmatmul.mubr.msk.f32.gmra.mrb[6].mxu1 %vm3291_vm5, %v12702_v25 }
 0x4dc   : > { %8854 = vmatprep.mubr.msk.f32.mxu1 %vm3291_vm5, %v12736_v3 }
 0x4df   : > { %8855 = vmatmul.mubr.msk.f32.gmra.mrb[8].mxu1 %vm3291_vm5, %v12737_v4 }
 0x4e0   : > { %8857 = vmatprep.mubr.msk.f32.mxu1 %vm3291_vm5, %v12738_v32 }
 0x4e3   : > { %8858 = vmatmul.mubr.msk.f32.gmra.mrb[10].mxu1 %vm3291_vm5, %v12739_v35 }
 0x4e4   : > { %8860 = vmatprep.mubr.msk.f32.mxu1 %vm3291_vm5, %v12740_v0 }
 0x4e7   : > { %8861 = vmatmul.mubr.msk.f32.gmra.mrb[12].mxu1 %vm3291_vm5, %v12741_v36 }
 0x4e8   : > { %8863 = vmatprep.mubr.msk.f32.mxu1 %vm3291_vm5, %v12742_v12 }
 0x4eb   : > { %8864 = vmatmul.mubr.msk.f32.gmra.mrb[14].mxu1 %vm3291_vm5, %v12743_v40 }
 0x4ec   : > { %8866 = vmatprep.mubr.msk.f32.mxu1 %vm3291_vm5, %v12744_v61 }
 0x4ef   : > { %8867 = vmatmul.mubr.msk.f32.gmra.mrb[16].mxu1 %vm3291_vm5, %v12745_v41 }
 0x4f0   : > { %8869 = vmatprep.mubr.msk.f32.mxu1 %vm3291_vm5, %v12746_v37 }
 0x4f3   : > { %8870 = vmatmul.mubr.msk.f32.gmra.mrb[18].mxu1 %vm3291_vm5, %v12747_v60 }
 0x4f4   : > { %8872 = vmatprep.mubr.msk.f32.mxu1 %vm3291_vm5, %v12748_v6 }
 0x4f7   : > { %8873 = vmatmul.mubr.msk.f32.gmra.mrb[20].mxu1 %vm3291_vm5, %v12749_v28 }
 0x4f8   : > { %8875 = vmatprep.mubr.msk.f32.mxu1 %vm3291_vm5, %v12750_v8 }
 0x4fb   : > { %8876 = vmatmul.mubr.msk.f32.gmra.mrb[22].mxu1 %vm3291_vm5, %v12751_v63 }
 0x4fc   : > { %8878 = vmatprep.mubr.msk.f32.mxu1 %vm3291_vm5, %v12752_v50 }
 0x4ff   : > { %8879 = vmatmul.mubr.msk.f32.gmra.mrb[24].mxu1 %vm3291_vm5, %v12753_v51 }
 0x500   : > { %8881 = vmatprep.mubr.msk.f32.mxu1 %vm3291_vm5, %v11379_v23  ;;  %v5649_v23 = vrot.slane %v3465_v31, 1 }
 0x502   : > { %v5650_v25 = vsel %vm555_vm3, %v5647_v33, %v5649_v23 }
 0x503   : > { %8882 = vmatmul.mubr.msk.f32.gmra.mrb[26].mxu1 %vm3291_vm5, %v12754_v38  ;;  %v12233_v38 = vld [vmem:[%s12378_s6] ss:$0 sm:$0xff] }
 0x504   : > { %8884 = vmatprep.mubr.msk.f32.mxu1 %vm3291_vm5, %v12755_v54 }
 0x507   : > { %8885 = vmatmul.mubr.msk.f32.gmra.mrb[28].mxu1 %vm3291_vm5, %v12722_v39 }
 0x508   : > { %8887 = vmatprep.mubr.msk.f32.mxu1 %vm3291_vm5, %v12756_v58 }
 0x50b   : > { %8888 = vmatmul.mubr.msk.f32.gmra.mrb[30].mxu1 %vm3291_vm5, %v12724_v2  ;;  %v12757_v2 = vld [vmem:[#allocation30_spill] sm:$0xff] }
 0x50c   : > { %8890 = vmatprep.mubr.msk.f32.mxu1 %vm3291_vm5, %v11842_v46 }
 0x50f   : > { %8891 = vmatmul.mubr.msk.f32.gmra.mrb[32].mxu1 %vm3291_vm5, %v11847_v1 }
 0x510   : > { %8893 = vmatprep.mubr.msk.f32.mxu1 %vm3291_vm5, %v5648_v5 }
 0x513   : > { %8894 = vmatmul.mubr.msk.f32.gmra.mrb[34].mxu1 %vm3291_vm5, %v5650_v25 }
 0x514   : > { %8898 = vmatprep.mubr.msk.f32.mxu1 %vm3291_vm5, %v11526_v15  ;;  %v12758_v15 = vld [vmem:[#allocation31_spill] sm:$0xff] }
 0x517   : > { %8899 = vmatmul.mubr.msk.f32.vlgmr.msra.gmra.mrb[4].mxu1 %vm3291_vm5, %v11533_v52  ;;  %v12759_v52 = vld [vmem:[#allocation32_spill] sm:$0xff] }
 0x518   : > { %8901 = vmatprep.mubr.msk.f32.mxu1 %vm3291_vm5, %v12725_v62 }
 0x51b   : > { %8902 = vmatmul.mubr.msk.f32.gmra.mrb[6].mxu1 %vm3291_vm5, %v11546_v44  ;;  %v12760_v44 = vld [vmem:[#allocation33_spill] sm:$0xff] }
 0x51c   : > { %8904 = vmatprep.mubr.msk.f32.mxu1 %vm3291_vm5, %v12726_v42 }
 0x51f   : > { %8905 = vmatmul.mubr.msk.f32.gmra.mrb[8].mxu1 %vm3291_vm5, %v11559_v53  ;;  %v12761_v53 = vld [vmem:[#allocation34_spill] sm:$0xff] }
 0x520   : > { %8907 = vmatprep.mubr.msk.f32.mxu1 %vm3291_vm5, %v12757_v2 }
 0x523   : > { %8908 = vmatmul.mubr.msk.f32.gmra.mrb[10].mxu1 %vm3291_vm5, %v11572_v26  ;;  %v12762_v26 = vld [vmem:[#allocation36_spill] sm:$0xff] }
 0x524   : > { %8910 = vmatprep.mubr.msk.f32.mxu1 %vm3291_vm5, %v12758_v15 }
 0x527   : > { %8911 = vmatmul.mubr.msk.f32.gmra.mrb[12].mxu1 %vm3291_vm5, %v11585_v17  ;;  %v12763_v17 = vld [vmem:[#allocation37_spill] sm:$0xff] }
 0x528   : > { %8913 = vmatprep.mubr.msk.f32.mxu1 %vm3291_vm5, %v12759_v52 }
 0x52b   : > { %8914 = vmatmul.mubr.msk.f32.gmra.mrb[14].mxu1 %vm3291_vm5, %v11598_v30  ;;  %v12764_v30 = vld [vmem:[#allocation42_spill] sm:$0xff] }
 0x52c   : > { %8916 = vmatprep.mubr.msk.f32.mxu1 %vm3291_vm5, %v12760_v44 }
 0x52f   : > { %8917 = vmatmul.mubr.msk.f32.gmra.mrb[16].mxu1 %vm3291_vm5, %v11611_v43  ;;  %v12765_v43 = vld [vmem:[#allocation43_spill] sm:$0xff] }
 0x530   : > { %8919 = vmatprep.mubr.msk.f32.mxu1 %vm3291_vm5, %v12761_v53 }
 0x533   : > { %8920 = vmatmul.mubr.msk.f32.gmra.mrb[18].mxu1 %vm3291_vm5, %v11624_v22  ;;  %v12766_v22 = vld [vmem:[#allocation45_spill] sm:$0xff] }
 0x534   : > { %8922 = vmatprep.mubr.msk.f32.mxu1 %vm3291_vm5, %v12732_v29 }
 0x537   : > { %8923 = vmatmul.mubr.msk.f32.gmra.mrb[20].mxu1 %vm3291_vm5, %v12762_v26 }
 0x538   : > { %8925 = vmatprep.mubr.msk.f32.mxu1 %vm3291_vm5, %v12763_v17 }
 0x53b   : > { %8926 = vmatmul.mubr.msk.f32.gmra.mrb[22].mxu1 %vm3291_vm5, %v11650_v56  ;;  %v5914_v56 = vrot.slane %v11998_v11, 2 }
 0x53c   : > { %8928 = vmatprep.mubr.msk.f32.mxu1 %vm3291_vm5, %v12734_v47  ;;  %v12212_v47 = vld [vmem:[%s12376_s4] ss:$0 sm:$0xff] }
 0x53d   : > { %v5916_v46 = vsel %vm1223_vm4, %v5914_v56, %v5915_v9 }
 0x53f   : > { %8929 = vmatmul.mubr.msk.f32.gmra.mrb[24].mxu1 %vm3291_vm5, %v12764_v30 }
 0x540   : > { %8931 = vmatprep.mubr.msk.f32.mxu1 %vm3291_vm5, %v12765_v43 }
 0x543   : > { %8932 = vmatmul.mubr.msk.f32.gmra.mrb[26].mxu1 %vm3291_vm5, %v11676_v19  ;;  %v5917_v19 = vrot.slane %v3465_v31, 2 }
 0x544   : > { %8934 = vmatprep.mubr.msk.f32.mxu1 %vm3291_vm5, %v12766_v22 }
 0x547   : > { %8935 = vmatmul.mubr.msk.f32.gmra.mrb[28].mxu1 %vm3291_vm5, %v11689_v45  ;;  %v5918_v45 = vsel %vm1223_vm4, %v5915_v9, %v5917_v19 }
 0x548   : > { %8937 = vmatprep.mubr.msk.f32.mxu1 %vm3291_vm5, %v11695_v10  ;;  %v9582_v10 = vmov -inf  }
 0x549   : > { %6225 = vst.msk [vmem:[#allocation4 + $0x20] sm:$0xff] %vm3291_vm5, %v9582_v10  ;;  %6221 = vst.msk [vmem:[#allocation4] sm:$0xff] %vm3291_vm5, %v9582_v10 }
 0x54a   : > { %6226 = vst.msk [vmem:[#allocation4 + $0x28] sm:$0x3] %vm3294_vm6, %v9582_v10  ;;  %6223 = vst.msk [vmem:[#allocation4 + $0x10] sm:$0x3] %vm3294_vm6, %v9582_v10 }
 0x54b   : > { %8938 = vmatmul.mubr.msk.f32.gmra.mrb[30].mxu1 %vm3291_vm5, %v11700_v34  ;;  %6222 = vst.msk [vmem:[#allocation4 + $0x8] sm:$0xff] %vm3291_vm5, %v9582_v10  ;;  %6224 = vst.msk [vmem:[#allocation4 + $0x18] sm:$0xff] %vm3291_vm5, %v9582_v10 }
 0x54c   : > { %8940 = vmatprep.mubr.msk.f32.mxu1 %vm3291_vm5, %v11917_v13  ;;  %6227 = vst.msk [vmem:[#allocation4 + $0x30] sm:$0xff] %vm3291_vm5, %v9582_v10  ;;  %6228 = vst.msk [vmem:[#allocation4 + $0x38] sm:$0xff] %vm3291_vm5, %v9582_v10 }
 0x54d   : > { %6229 = vst.msk [vmem:[#allocation4 + $0x40] sm:$0x3] %vm3294_vm6, %v9582_v10  ;;  %6232 = vst.msk [vmem:[#allocation4 + $0x58] sm:$0x3] %vm3294_vm6, %v9582_v10 }
 0x54e   : > { %6230 = vst.msk [vmem:[#allocation4 + $0x48] sm:$0xff] %vm3291_vm5, %v9582_v10  ;;  %6231 = vst.msk [vmem:[#allocation4 + $0x50] sm:$0xff] %vm3291_vm5, %v9582_v10 }
 0x54f   : > { %8941 = vmatmul.mubr.msk.f32.gmra.mrb[32].mxu1 %vm3291_vm5, %v11922_v55  ;;  %6233 = vst.msk [vmem:[#allocation4 + $0x60] sm:$0xff] %vm3291_vm5, %v9582_v10  ;;  %6234 = vst.msk [vmem:[#allocation4 + $0x68] sm:$0xff] %vm3291_vm5, %v9582_v10 }
 0x550   : > { %8943 = vmatprep.mubr.msk.f32.mxu1 %vm3291_vm5, %v5916_v46  ;;  %6235 = vst.msk [vmem:[#allocation4 + $0x70] sm:$0x3] %vm3294_vm6, %v9582_v10  ;;  %6238 = vst.msk [vmem:[#allocation4 + $0x88] sm:$0x3] %vm3294_vm6, %v9582_v10 }
 0x551   : > { %6236 = vst.msk [vmem:[#allocation4 + $0x78] sm:$0xff] %vm3291_vm5, %v9582_v10  ;;  %6237 = vst.msk [vmem:[#allocation4 + $0x80] sm:$0xff] %vm3291_vm5, %v9582_v10 }
 0x552   : > { %6239 = vst.msk [vmem:[#allocation4 + $0x90] sm:$0xff] %vm3291_vm5, %v9582_v10  ;;  %6240 = vst.msk [vmem:[#allocation4 + $0x98] sm:$0xff] %vm3291_vm5, %v9582_v10  ;;  %v6308_v59 = vld [vmem:[#allocation4] ss:$2 sm:$0xff]  ;;  %v6324_v7 = vld [vmem:[#allocation4 + $0x1] ss:$2 sm:$0xff] }
 0x553   : > { %8944 = vmatmul.mubr.msk.f32.gmra.mrb[34].mxu1 %vm3291_vm5, %v5918_v45  ;;  %6241 = vst.msk [vmem:[#allocation4 + $0xa0] sm:$0x3] %vm3294_vm6, %v9582_v10  ;;  %6244 = vst.msk [vmem:[#allocation4 + $0xb8] sm:$0x3] %vm3294_vm6, %v9582_v10  ;;  %v6339_v21 = vmax.f32 %v6308_v59, %v6324_v7  ;;  %v6348_v14 = vld [vmem:[#allocation4 + $0x2] ss:$2 sm:$0xff] }
 0x554   : > { %6242 = vst.msk [vmem:[#allocation4 + $0xa8] sm:$0xff] %vm3291_vm5, %v9582_v10  ;;  %6243 = vst.msk [vmem:[#allocation4 + $0xb0] sm:$0xff] %vm3291_vm5, %v9582_v10 }
 0x555   : > { %6245 = vst.msk [vmem:[#allocation4 + $0xc0] sm:$0xff] %vm3291_vm5, %v9582_v10  ;;  %6246 = vst.msk [vmem:[#allocation4 + $0xc8] sm:$0xff] %vm3291_vm5, %v9582_v10  ;;  %v6363_v4 = vmax.f32 %v6339_v21, %v6348_v14 }
 0x556   : > { %6247 = vst.msk [vmem:[#allocation4 + $0xd0] sm:$0x3] %vm3294_vm6, %v9582_v10  ;;  %6250 = vst.msk [vmem:[#allocation4 + $0xe8] sm:$0x3] %vm3294_vm6, %v9582_v10 }
 0x557   : > { %6248 = vst.msk [vmem:[#allocation4 + $0xd8] sm:$0xff] %vm3291_vm5, %v9582_v10  ;;  %6249 = vst.msk [vmem:[#allocation4 + $0xe0] sm:$0xff] %vm3291_vm5, %v9582_v10 }
 0x558   : > { %6251 = vst.msk [vmem:[#allocation4 + $0xf0] sm:$0xff] %vm3291_vm5, %v9582_v10  ;;  %6252 = vst.msk [vmem:[#allocation4 + $0xf8] sm:$0xff] %vm3291_vm5, %v9582_v10 }
 0x559   : > { %6253 = vst.msk [vmem:[#allocation4 + $0x100] sm:$0x3] %vm3294_vm6, %v9582_v10  ;;  %6256 = vst.msk [vmem:[#allocation4 + $0x118] sm:$0x3] %vm3294_vm6, %v9582_v10 }
 0x55a   : > { %6254 = vst.msk [vmem:[#allocation4 + $0x108] sm:$0xff] %vm3291_vm5, %v9582_v10  ;;  %6255 = vst.msk [vmem:[#allocation4 + $0x110] sm:$0xff] %vm3291_vm5, %v9582_v10 }
 0x55b   : > { %6257 = vst.msk [vmem:[#allocation4 + $0x120] sm:$0xff] %vm3291_vm5, %v9582_v10  ;;  %6258 = vst.msk [vmem:[#allocation4 + $0x128] sm:$0xff] %vm3291_vm5, %v9582_v10 }
 0x55c   : > { %6259 = vst.msk [vmem:[#allocation4 + $0x130] sm:$0x3] %vm3294_vm6, %v9582_v10  ;;  %6262 = vst.msk [vmem:[#allocation4 + $0x148] sm:$0x3] %vm3294_vm6, %v9582_v10 }
 0x55d   : > { %6260 = vst.msk [vmem:[#allocation4 + $0x138] sm:$0xff] %vm3291_vm5, %v9582_v10  ;;  %6261 = vst.msk [vmem:[#allocation4 + $0x140] sm:$0xff] %vm3291_vm5, %v9582_v10 }
 0x55e   : > { %6263 = vst.msk [vmem:[#allocation4 + $0x150] sm:$0xff] %vm3291_vm5, %v9582_v10  ;;  %6264 = vst.msk [vmem:[#allocation4 + $0x158] sm:$0xff] %vm3291_vm5, %v9582_v10 }
 0x55f   : > { %6265 = vst.msk [vmem:[#allocation4 + $0x160] sm:$0x3] %vm3294_vm6, %v9582_v10  ;;  %6268 = vst.msk [vmem:[#allocation4 + $0x178] sm:$0x3] %vm3294_vm6, %v9582_v10 }
 0x560   : > { %6266 = vst.msk [vmem:[#allocation4 + $0x168] sm:$0xff] %vm3291_vm5, %v9582_v10  ;;  %6267 = vst.msk [vmem:[#allocation4 + $0x170] sm:$0xff] %vm3291_vm5, %v9582_v10 }
 0x561   : > { %6269 = vst.msk [vmem:[#allocation4 + $0x180] sm:$0xff] %vm3291_vm5, %v9582_v10  ;;  %6270 = vst.msk [vmem:[#allocation4 + $0x188] sm:$0xff] %vm3291_vm5, %v9582_v10 }
 0x562   : > { %6271 = vst.msk [vmem:[#allocation4 + $0x190] sm:$0x3] %vm3294_vm6, %v9582_v10 }
 0x56c   : > { %v12193_v55 = vpop.f32.mrb[32].mxu0 }
 0x56d   : > { %v12195_v34 = vpop.f32.mrb[33].mxu0 }
 0x56e   : > { %v6632_v26 = vadd.f32 %v12233_v38, %v12195_v34 }
 0x570   : > { %v12197_v1 = vpop.f32.mrb[34].mxu0 }
 0x571   : > { %v12199_v39 = vpop.f32.mrb[35].mxu0 }
 0x574   : > { %v12201_v62 = vpop.f32.mrb[36].mxu0 }
 0x575   : > { %v12203_v42 = vpop.f32.mrb[37].mxu0 }
 0x578   : > { %v12205_v13 = vpop.f32.mrb[38].mxu0 }
 0x579   : > { %v12207_v29 = vpop.f32.mrb[39].mxu0 }
 0x5ea   : > { %v8900_v18 = vpop.f32.mrb[4].mxu1 }
 0x5eb   : > { %v6190_v49 = vadd.f32 %v8900_v18, %v12212_v47  ;;  %v5991_v57 = vpop.f32.mrb[5].mxu1 }
 0x5ec   : > { %v6189_v48 = vadd.f32 %v12212_v47, %v5991_v57 }
 0x5ed   : > { %6277 = vst.msk [vmem:[#allocation4 + $0x21] sm:$0xff] %vm3291_vm5, %v6190_v49 }
 0x5ee   : > { %6276 = vst.msk [vmem:[#allocation4 + $0x19] sm:$0xff] %vm3291_vm5, %v6189_v48  ;;  %v8903_v20 = vpop.f32.mrb[6].mxu1 }
 0x5ef   : > { %v6192_v11 = vadd.f32 %v8903_v20, %v12212_v47  ;;  %v6001_v27 = vpop.f32.mrb[7].mxu1 }
 0x5f0   : > { %v6191_v16 = vadd.f32 %v12212_v47, %v6001_v27 }
 0x5f1   : > { %6279 = vst.msk [vmem:[#allocation4 + $0x39] sm:$0xff] %vm3291_vm5, %v6192_v11 }
 0x5f2   : > { %6278 = vst.msk [vmem:[#allocation4 + $0x31] sm:$0xff] %vm3291_vm5, %v6191_v16  ;;  %v8906_v3 = vpop.f32.mrb[8].mxu1 }
 0x5f3   : > { %v6194_v32 = vadd.f32 %v8906_v3, %v12212_v47  ;;  %v6011_v35 = vpop.f32.mrb[9].mxu1 }
 0x5f4   : > { %v6193_v0 = vadd.f32 %v12212_v47, %v6011_v35 }
 0x5f5   : > { %6281 = vst.msk [vmem:[#allocation4 + $0x51] sm:$0xff] %vm3291_vm5, %v6194_v32  ;;  %v6371_v36 = vld [vmem:[#allocation4 + $0x18] ss:$2 sm:$0xff]  ;;  %v6395_v37 = vld [vmem:[#allocation4 + $0x19] ss:$2 sm:$0xff] }
 0x5f6   : > { %6280 = vst.msk [vmem:[#allocation4 + $0x49] sm:$0xff] %vm3291_vm5, %v6193_v0  ;;  %v8909_v12 = vpop.f32.mrb[10].mxu1  ;;  %v6386_v40 = vmax.f32 %v6363_v4, %v6371_v36  ;;  %v6419_v63 = vld [vmem:[#allocation4 + $0x1a] ss:$2 sm:$0xff]  ;;  %v6637_v4 = vadd.f32 %v12193_v55, %v12233_v38 }
 0x5f7   : > { %v6196_v61 = vadd.f32 %v8909_v12, %v12212_v47  ;;  %v6021_v41 = vpop.f32.mrb[11].mxu1 }
 0x5f8   : > { %v6195_v60 = vadd.f32 %v12212_v47, %v6021_v41  ;;  %v6410_v6 = vmax.f32 %v6386_v40, %v6395_v37 }
 0x5f9   : > { %6283 = vst.msk [vmem:[#allocation4 + $0x69] sm:$0xff] %vm3291_vm5, %v6196_v61  ;;  %v6310_v28 = vld [vmem:[#allocation4 + $0x30] ss:$2 sm:$0xff]  ;;  %v6326_v8 = vld [vmem:[#allocation4 + $0x31] ss:$2 sm:$0xff] }
 0x5fa   : > { %6282 = vst.msk [vmem:[#allocation4 + $0x61] sm:$0xff] %vm3291_vm5, %v6195_v60  ;;  %v8912_v50 = vpop.f32.mrb[12].mxu1  ;;  %v6340_v51 = vmax.f32 %v6310_v28, %v6326_v8  ;;  %v6434_v54 = vmax.f32 %v6410_v6, %v6419_v63  ;;  %v6350_v33 = vld [vmem:[#allocation4 + $0x32] ss:$2 sm:$0xff]  ;;  %v6467_v15 = vld [vmem:[#allocation4 + $0x31] ss:$2 sm:$0xff] }
 0x5fb   : > { %v6198_v58 = vadd.f32 %v8912_v50, %v12212_v47  ;;  %v6031_v24 = vpop.f32.mrb[13].mxu1  ;;  %v6443_v31 = vld [vmem:[#allocation4 + $0x30] ss:$2 sm:$0xff] }
 0x5fc   : > { %v6197_v23 = vadd.f32 %v12212_v47, %v6031_v24  ;;  %v6364_v5 = vmax.f32 %v6340_v51, %v6350_v33  ;;  %v6458_v25 = vmax.f32 %v6434_v54, %v6443_v31  ;;  %v6491_v22 = vld [vmem:[#allocation4 + $0x32] ss:$2 sm:$0xff] }
 0x5fd   : > { %6285 = vst.msk [vmem:[#allocation4 + $0x81] sm:$0xff] %vm3291_vm5, %v6198_v58  ;;  %v6373_v2 = vld [vmem:[#allocation4 + $0x48] ss:$2 sm:$0xff]  ;;  %v6397_v30 = vld [vmem:[#allocation4 + $0x49] ss:$2 sm:$0xff] }
 0x5fe   : > { %6284 = vst.msk [vmem:[#allocation4 + $0x79] sm:$0xff] %vm3291_vm5, %v6197_v23  ;;  %v8915_v52 = vpop.f32.mrb[14].mxu1  ;;  %v6387_v44 = vmax.f32 %v6364_v5, %v6373_v2  ;;  %v6482_v53 = vmax.f32 %v6458_v25, %v6467_v15  ;;  %v6421_v46 = vld [vmem:[#allocation4 + $0x4a] ss:$2 sm:$0xff] }
 0x5ff   : > { %v6200_v17 = vadd.f32 %v8915_v52, %v12212_v47  ;;  %v6041_v43 = vpop.f32.mrb[15].mxu1 }
 0x600   : > { %v6411_v56 = vmax.f32 %v6387_v44, %v6397_v30  ;;  %v6199_v9 = vadd.f32 %v12212_v47, %v6041_v43  ;;  %v6506_v19 = vmax.f32 %v6482_v53, %v6491_v22 }
 0x601   : > { %6287 = vst.msk [vmem:[#allocation4 + $0x99] sm:$0xff] %vm3291_vm5, %v6200_v17  ;;  %v6312_v49 = vld [vmem:[#allocation4 + $0x60] ss:$2 sm:$0xff]  ;;  %v6328_v57 = vld [vmem:[#allocation4 + $0x61] ss:$2 sm:$0xff]  ;;  %v6642_v17 = vadd.f32 %v12233_v38, %v12199_v39 }
 0x602   : > { %v6435_v45 = vmax.f32 %v6411_v56, %v6421_v46  ;;  %6286 = vst.msk [vmem:[#allocation4 + $0x91] sm:$0xff] %vm3291_vm5, %v6199_v9  ;;  %v6670_v10 = vadd.f32 %v6632_v26, %v6506_v19  ;;  %v8918_v18 = vpop.f32.mrb[16].mxu1  ;;  %v6445_v34 = vld [vmem:[#allocation4 + $0x60] ss:$2 sm:$0xff]  ;;  %v6341_v48 = vmax.f32 %v6312_v49, %v6328_v57  ;;  %v6469_v27 = vld [vmem:[#allocation4 + $0x61] ss:$2 sm:$0xff] }
 0x603   : > { %v6202_v59 = vadd.f32 %v8918_v18, %v12212_v47  ;;  %v6051_v7 = vpop.f32.mrb[17].mxu1  ;;  %v6352_v11 = vld [vmem:[#allocation4 + $0x62] ss:$2 sm:$0xff] }
 0x604   : > { %v6459_v20 = vmax.f32 %v6435_v45, %v6445_v34  ;;  %6678 = vst.msk [vmem:[%s12249_s22] sm:$0xff] %vm3291_vm5, %v6670_v10  ;;  %v6201_v21 = vadd.f32 %v12212_v47, %v6051_v7  ;;  %v6365_v14 = vmax.f32 %v6341_v48, %v6352_v11  ;;  %v6493_v35 = vld [vmem:[#allocation4 + $0x62] ss:$2 sm:$0xff] }
 0x605   : > { %6289 = vst.msk [vmem:[#allocation4 + $0xb1] sm:$0xff] %vm3291_vm5, %v6202_v59  ;;  %v6375_v16 = vld [vmem:[#allocation4 + $0x78] ss:$2 sm:$0xff]  ;;  %v6399_v41 = vld [vmem:[#allocation4 + $0x79] ss:$2 sm:$0xff] }
 0x606   : > { %v6483_v3 = vmax.f32 %v6459_v20, %v6469_v27  ;;  %6288 = vst.msk [vmem:[#allocation4 + $0xa9] sm:$0xff] %vm3291_vm5, %v6201_v21  ;;  %v8921_v32 = vpop.f32.mrb[18].mxu1  ;;  %v6388_v12 = vmax.f32 %v6365_v14, %v6375_v16  ;;  %v6423_v63 = vld [vmem:[#allocation4 + $0x7a] ss:$2 sm:$0xff]  ;;  %v6647_v14 = vadd.f32 %v12197_v1, %v12233_v38 }
 0x607   : > { %v6204_v0 = vadd.f32 %v8921_v32, %v12212_v47  ;;  %v6061_v36 = vpop.f32.mrb[19].mxu1 }
 0x608   : > { %v6507_v40 = vmax.f32 %v6483_v3, %v6493_v35  ;;  %v6203_v61 = vadd.f32 %v12212_v47, %v6061_v36  ;;  %v6412_v6 = vmax.f32 %v6388_v12, %v6399_v41 }
 0x609   : > { %6291 = vst.msk [vmem:[#allocation4 + $0xc9] sm:$0xff] %vm3291_vm5, %v6204_v0  ;;  %v6314_v37 = vld [vmem:[#allocation4 + $0x90] ss:$2 sm:$0xff]  ;;  %v6330_v60 = vld [vmem:[#allocation4 + $0x91] ss:$2 sm:$0xff] }
 0x60a   : > { %v6671_v28 = vadd.f32 %v6637_v4, %v6507_v40  ;;  %6290 = vst.msk [vmem:[#allocation4 + $0xc1] sm:$0xff] %vm3291_vm5, %v6203_v61  ;;  %v8924_v55 = vpop.f32.mrb[20].mxu1  ;;  %v6342_v8 = vmax.f32 %v6314_v37, %v6330_v60  ;;  %v6354_v54 = vld [vmem:[#allocation4 + $0x92] ss:$2 sm:$0xff]  ;;  %v6436_v58 = vmax.f32 %v6412_v6, %v6423_v63  ;;  %v6471_v15 = vld [vmem:[#allocation4 + $0x91] ss:$2 sm:$0xff] }
 0x60b   : > { %v6206_v50 = vadd.f32 %v8924_v55, %v12212_v47  ;;  %v6071_v51 = vpop.f32.mrb[21].mxu1  ;;  %v6447_v31 = vld [vmem:[#allocation4 + $0x90] ss:$2 sm:$0xff] }
 0x60c   : > { %6679 = vst.msk [vmem:[%s12249_s22 + $0x8] sm:$0xff] %vm3291_vm5, %v6671_v28  ;;  %v6205_v24 = vadd.f32 %v12212_v47, %v6071_v51  ;;  %v6366_v33 = vmax.f32 %v6342_v8, %v6354_v54  ;;  %v6460_v5 = vmax.f32 %v6436_v58, %v6447_v31  ;;  %v6495_v22 = vld [vmem:[#allocation4 + $0x92] ss:$2 sm:$0xff] }
 0x60d   : > { %6293 = vst.msk [vmem:[#allocation4 + $0xe1] sm:$0xff] %vm3291_vm5, %v6206_v50  ;;  %v6377_v23 = vld [vmem:[#allocation4 + $0xa8] ss:$2 sm:$0xff]  ;;  %v6401_v44 = vld [vmem:[#allocation4 + $0xa9] ss:$2 sm:$0xff] }
 0x60e   : > { %6292 = vst.msk [vmem:[#allocation4 + $0xd9] sm:$0xff] %vm3291_vm5, %v6205_v24  ;;  %v8927_v25 = vpop.f32.mrb[22].mxu1  ;;  %v6389_v2 = vmax.f32 %v6366_v33, %v6377_v23  ;;  %v6484_v26 = vmax.f32 %v6460_v5, %v6471_v15  ;;  %v6425_v56 = vld [vmem:[#allocation4 + $0xaa] ss:$2 sm:$0xff] }
 0x60f   : > { %v6208_v52 = vadd.f32 %v8927_v25, %v12212_v47  ;;  %v6081_v53 = vpop.f32.mrb[23].mxu1 }
 0x610   : > { %v6413_v30 = vmax.f32 %v6389_v2, %v6401_v44  ;;  %v6207_v43 = vadd.f32 %v12212_v47, %v6081_v53  ;;  %v6508_v9 = vmax.f32 %v6484_v26, %v6495_v22 }
 0x611   : > { %6295 = vst.msk [vmem:[#allocation4 + $0xf9] sm:$0xff] %vm3291_vm5, %v6208_v52  ;;  %v6316_v45 = vld [vmem:[#allocation4 + $0xc0] ss:$2 sm:$0xff]  ;;  %v6332_v10 = vld [vmem:[#allocation4 + $0xc1] ss:$2 sm:$0xff]  ;;  %v6652_v52 = vadd.f32 %v12233_v38, %v12203_v42 }
 0x612   : > { %v6437_v19 = vmax.f32 %v6413_v30, %v6425_v56  ;;  %6294 = vst.msk [vmem:[#allocation4 + $0xf1] sm:$0xff] %vm3291_vm5, %v6207_v43  ;;  %v8930_v46 = vpop.f32.mrb[24].mxu1  ;;  %v6449_v18 = vld [vmem:[#allocation4 + $0xc0] ss:$2 sm:$0xff]  ;;  %v6672_v49 = vadd.f32 %v6642_v17, %v6508_v9  ;;  %v6343_v34 = vmax.f32 %v6316_v45, %v6332_v10  ;;  %v6473_v20 = vld [vmem:[#allocation4 + $0xc1] ss:$2 sm:$0xff] }
 0x613   : > { %v6210_v57 = vadd.f32 %v8930_v46, %v12212_v47  ;;  %v6091_v39 = vpop.f32.mrb[25].mxu1  ;;  %v6356_v48 = vld [vmem:[#allocation4 + $0xc2] ss:$2 sm:$0xff] }
 0x614   : > { %v6461_v59 = vmax.f32 %v6437_v19, %v6449_v18  ;;  %v6209_v7 = vadd.f32 %v12212_v47, %v6091_v39  ;;  %6680 = vst.msk [vmem:[%s12249_s22 + $0x10] sm:$0xff] %vm3291_vm5, %v6672_v49  ;;  %v6367_v21 = vmax.f32 %v6343_v34, %v6356_v48  ;;  %v6497_v3 = vld [vmem:[#allocation4 + $0xc2] ss:$2 sm:$0xff]  ;;  %v6657_v48 = vadd.f32 %v12201_v62, %v12233_v38 }
 0x615   : > { %6297 = vst.msk [vmem:[#allocation4 + $0x111] sm:$0xff] %vm3291_vm5, %v6210_v57  ;;  %v6379_v11 = vld [vmem:[#allocation4 + $0xd8] ss:$2 sm:$0xff]  ;;  %v6403_v12 = vld [vmem:[#allocation4 + $0xd9] ss:$2 sm:$0xff] }
 0x616   : > { %v6485_v27 = vmax.f32 %v6461_v59, %v6473_v20  ;;  %6296 = vst.msk [vmem:[#allocation4 + $0x109] sm:$0xff] %vm3291_vm5, %v6209_v7  ;;  %v8933_v16 = vpop.f32.mrb[26].mxu1  ;;  %v6390_v35 = vmax.f32 %v6367_v21, %v6379_v11  ;;  %v6427_v6 = vld [vmem:[#allocation4 + $0xda] ss:$2 sm:$0xff] }
 0x617   : > { %v6212_v4 = vadd.f32 %v8933_v16, %v12212_v47  ;;  %v6101_v32 = vpop.f32.mrb[27].mxu1 }
 0x618   : > { %v6509_v0 = vmax.f32 %v6485_v27, %v6497_v3  ;;  %v6211_v36 = vadd.f32 %v12212_v47, %v6101_v32  ;;  %v6414_v41 = vmax.f32 %v6390_v35, %v6403_v12 }
 0x619   : > { %6299 = vst.msk [vmem:[#allocation4 + $0x129] sm:$0xff] %vm3291_vm5, %v6212_v4  ;;  %v6318_v40 = vld [vmem:[#allocation4 + $0xf0] ss:$2 sm:$0xff]  ;;  %v6334_v61 = vld [vmem:[#allocation4 + $0xf1] ss:$2 sm:$0xff] }
 0x61a   : > { %v6673_v37 = vadd.f32 %v6647_v14, %v6509_v0  ;;  %6298 = vst.msk [vmem:[#allocation4 + $0x121] sm:$0xff] %vm3291_vm5, %v6211_v36  ;;  %v8936_v1 = vpop.f32.mrb[28].mxu1  ;;  %v6344_v60 = vmax.f32 %v6318_v40, %v6334_v61  ;;  %v6358_v8 = vld [vmem:[#allocation4 + $0xf2] ss:$2 sm:$0xff]  ;;  %v6438_v63 = vmax.f32 %v6414_v41, %v6427_v6  ;;  %v6475_v23 = vld [vmem:[#allocation4 + $0xf1] ss:$2 sm:$0xff] }
 0x61b   : > { %v6214_v28 = vadd.f32 %v8936_v1, %v12212_v47  ;;  %v6111_v55 = vpop.f32.mrb[29].mxu1  ;;  %v6451_v54 = vld [vmem:[#allocation4 + $0xf0] ss:$2 sm:$0xff] }
 0x61c   : > { %6681 = vst.msk [vmem:[%s12249_s22 + $0x18] sm:$0xff] %vm3291_vm5, %v6673_v37  ;;  %v6213_v50 = vadd.f32 %v12212_v47, %v6111_v55  ;;  %v6368_v51 = vmax.f32 %v6344_v60, %v6358_v8  ;;  %v6462_v24 = vmax.f32 %v6438_v63, %v6451_v54  ;;  %v6499_v26 = vld [vmem:[#allocation4 + $0xf2] ss:$2 sm:$0xff]  ;;  %v6662_v8 = vadd.f32 %v12233_v38, %v12207_v29 }
 0x61d   : > { %6301 = vst.msk [vmem:[#allocation4 + $0x141] sm:$0xff] %vm3291_vm5, %v6214_v28  ;;  %v6381_v58 = vld [vmem:[#allocation4 + $0x108] ss:$2 sm:$0xff]  ;;  %v6405_v25 = vld [vmem:[#allocation4 + $0x109] ss:$2 sm:$0xff] }
 0x61e   : > { %6300 = vst.msk [vmem:[#allocation4 + $0x139] sm:$0xff] %vm3291_vm5, %v6213_v50  ;;  %v8939_v33 = vpop.f32.mrb[30].mxu1  ;;  %v6391_v31 = vmax.f32 %v6368_v51, %v6381_v58  ;;  %v6486_v15 = vmax.f32 %v6462_v24, %v6475_v23  ;;  %v6429_v17 = vld [vmem:[#allocation4 + $0x10a] ss:$2 sm:$0xff] }
 0x61f   : > { %v6216_v5 = vadd.f32 %v8939_v33, %v12212_v47  ;;  %v6121_v2 = vpop.f32.mrb[31].mxu1 }
 0x620   : > { %v6415_v44 = vmax.f32 %v6391_v31, %v6405_v25  ;;  %v6215_v53 = vadd.f32 %v12212_v47, %v6121_v2  ;;  %v6510_v30 = vmax.f32 %v6486_v15, %v6499_v26  ;;  %v6667_v25 = vadd.f32 %v12205_v13, %v12233_v38 }
 0x621   : > { %6303 = vst.msk [vmem:[#allocation4 + $0x159] sm:$0xff] %vm3291_vm5, %v6216_v5  ;;  %v6320_v56 = vld [vmem:[#allocation4 + $0x120] ss:$2 sm:$0xff]  ;;  %v6336_v9 = vld [vmem:[#allocation4 + $0x121] ss:$2 sm:$0xff] }
 0x622   : > { %v6439_v43 = vmax.f32 %v6415_v44, %v6429_v17  ;;  %6302 = vst.msk [vmem:[#allocation4 + $0x151] sm:$0xff] %vm3291_vm5, %v6215_v53  ;;  %v8942_v22 = vpop.f32.mrb[32].mxu1  ;;  %v6453_v19 = vld [vmem:[#allocation4 + $0x120] ss:$2 sm:$0xff]  ;;  %v6674_v46 = vadd.f32 %v6652_v52, %v6510_v30  ;;  %v6345_v10 = vmax.f32 %v6320_v56, %v6336_v9  ;;  %v6477_v39 = vld [vmem:[#allocation4 + $0x121] ss:$2 sm:$0xff] }
 0x623   : > { %v6218_v45 = vadd.f32 %v8942_v22, %v12212_v47  ;;  %v6131_v42 = vpop.f32.mrb[33].mxu1  ;;  %v6360_v57 = vld [vmem:[#allocation4 + $0x122] ss:$2 sm:$0xff] }
 0x624   : > { %v6463_v18 = vmax.f32 %v6439_v43, %v6453_v19  ;;  %v6217_v49 = vadd.f32 %v12212_v47, %v6131_v42  ;;  %6682 = vst.msk [vmem:[%s12249_s22 + $0x20] sm:$0xff] %vm3291_vm5, %v6674_v46  ;;  %v6369_v34 = vmax.f32 %v6345_v10, %v6360_v57  ;;  %v6501_v21 = vld [vmem:[#allocation4 + $0x122] ss:$2 sm:$0xff] }
 0x625   : > { %6305 = vst.msk [vmem:[#allocation4 + $0x171] sm:$0xff] %vm3291_vm5, %v6218_v45  ;;  %v6383_v59 = vld [vmem:[#allocation4 + $0x138] ss:$2 sm:$0xff]  ;;  %v6407_v4 = vld [vmem:[#allocation4 + $0x139] ss:$2 sm:$0xff] }
 0x626   : > { %v6487_v7 = vmax.f32 %v6463_v18, %v6477_v39  ;;  %6304 = vst.msk [vmem:[#allocation4 + $0x169] sm:$0xff] %vm3291_vm5, %v6217_v49  ;;  %v8945_v20 = vpop.f32.mrb[34].mxu1  ;;  %v6392_v14 = vmax.f32 %v6369_v34, %v6383_v59  ;;  %v6431_v12 = vld [vmem:[#allocation4 + $0x13a] ss:$2 sm:$0xff] }
 0x627   : > { %v6220_v11 = vadd.f32 %v8945_v20, %v12212_v47  ;;  %v6141_v27 = vpop.f32.mrb[35].mxu1 }
 0x628   : > { %v6511_v16 = vmax.f32 %v6487_v7, %v6501_v21  ;;  %v6219_v3 = vadd.f32 %v12212_v47, %v6141_v27  ;;  %v6416_v0 = vmax.f32 %v6392_v14, %v6407_v4 }
 0x629   : > { %6307 = vst.msk [vmem:[#allocation4 + $0x189] sm:$0xff] %vm3291_vm5, %v6220_v11  ;;  %v6322_v32 = vld [vmem:[#allocation4 + $0x150] ss:$2 sm:$0xff]  ;;  %v6338_v35 = vld [vmem:[#allocation4 + $0x151] ss:$2 sm:$0xff] }
 0x62a   : > { %v6675_v36 = vadd.f32 %v6657_v48, %v6511_v16  ;;  %6306 = vst.msk [vmem:[#allocation4 + $0x181] sm:$0xff] %vm3291_vm5, %v6219_v3  ;;  %v6346_v62 = vmax.f32 %v6322_v32, %v6338_v35  ;;  %v6362_v40 = vld [vmem:[#allocation4 + $0x152] ss:$2 sm:$0xff]  ;;  %v6440_v61 = vmax.f32 %v6416_v0, %v6431_v12  ;;  %v6479_v6 = vld [vmem:[#allocation4 + $0x151] ss:$2 sm:$0xff] }
 0x62b   : > { %v6455_v37 = vld [vmem:[#allocation4 + $0x150] ss:$2 sm:$0xff] }
 0x62c   : > { %6683 = vst.msk [vmem:[%s12249_s22 + $0x28] sm:$0xff] %vm3291_vm5, %v6675_v36  ;;  %v6370_v41 = vmax.f32 %v6346_v62, %v6362_v40  ;;  %v6464_v47 = vmax.f32 %v6440_v61, %v6455_v37  ;;  %v6503_v50 = vld [vmem:[#allocation4 + $0x152] ss:$2 sm:$0xff] }
 0x62d   : > { %v6385_v1 = vld [vmem:[#allocation4 + $0x168] ss:$2 sm:$0xff]  ;;  %v6409_v28 = vld [vmem:[#allocation4 + $0x169] ss:$2 sm:$0xff] }
 0x62e   : > { %v6393_v60 = vmax.f32 %v6370_v41, %v6385_v1  ;;  %v6488_v55 = vmax.f32 %v6464_v47, %v6479_v6  ;;  %v6433_v51 = vld [vmem:[#allocation4 + $0x16a] ss:$2 sm:$0xff] }
 0x630   : > { %v6417_v63 = vmax.f32 %v6393_v60, %v6409_v28  ;;  %v6512_v54 = vmax.f32 %v6488_v55, %v6503_v50 }
 0x631   : > { %v6457_v24 = vld [vmem:[#allocation4 + $0x180] ss:$2 sm:$0xff]  ;;  %v6481_v23 = vld [vmem:[#allocation4 + $0x181] ss:$2 sm:$0xff] }
 0x632   : > { %v6441_v58 = vmax.f32 %v6417_v63, %v6433_v51  ;;  %v6676_v33 = vadd.f32 %v6662_v8, %v6512_v54  ;;  %v6505_v29 = vld [vmem:[#allocation4 + $0x182] ss:$2 sm:$0xff] }
 0x634   : > { %v6465_v31 = vmax.f32 %v6441_v58, %v6457_v24  ;;  %6684 = vst.msk [vmem:[%s12249_s22 + $0x30] sm:$0xff] %vm3291_vm5, %v6676_v33 }
 0x636   : > { %v6489_v5 = vmax.f32 %v6465_v31, %v6481_v23 }
 0x638   : > { %v6513_v2 = vmax.f32 %v6489_v5, %v6505_v29 }
 0x63a   : > { %v6677_v15 = vadd.f32 %v6667_v25, %v6513_v2 }
 0x63c   : > { %6685 = vst.msk [vmem:[%s12249_s22 + $0x38] sm:$0xff] %vm3291_vm5, %v6677_v15 }
 0x63d   : > { %9530 = shalt.err (!%p9527_p3)
}
 0x63e   : > { %s9531_s18 = scalar_lea.hbm %s12323_s13, 1024  ;;  %s9535_s21 = scalar_lea.hbm %s12379_s7, 2048 }
 0x63f   : > { %p9532_p4 = scmp.ne.s32.totalorder %s12323_s13, %s9531_s18  ;;  %p9536_p9 = scmp.lt.u32.totalorder %s12323_s13, %s12379_s7 }
 0x640   : > { %p9537_p10 = scmp.lt.u32.totalorder %s9535_s21, %s9531_s18  ;;  %p9539_p12 = scmp.lt.u32.totalorder %s9531_s18, %s12323_s13 }
 0x641   : > { %p9533_p7 = pnand %p9532_p4, %p9664_p5 }
 0x642   : > { %p9538_p11 = por %p9537_p10, %p9536_p9 }
 0x643   : > { %p9534_p8 = pneg %p9533_p7 }
 0x644   : > { %p9540_p13 = por %p9539_p12, %p9538_p11 }
 0x646   : > { %p9541_p0 = pnand %p9540_p13, %p9534_p8 }
 0x648   : > { %9544 = shalt.err (!%p9541_p0)
}
 0x649   : > { %s9584_s8 = smov 128   ;;  %s9585_s9 = smov 8  }
 0x64a   : > { %9474 = dma.vmem_to_hbm [thread:$0]  (%p9664_p5), %s12325_s29, 1024, %s12323_s13, %s12331_s14, %s9584_s8, %s9584_s8, %s9585_s9  }
 0x64b PF: > { %p9480_p1 = scmp.ge.s32.totalorder %s9579_s27, 2  ;;  %s6715_s28 = sand.u32 1, %s9567_s24  }
 0x64c   : > { %s6716_s15 = scalar_lea.sflag [#allocation6], %s6715_s28 }
 0x64d   : > { %p9477_p2 = pnand %p9480_p1, %p9668_p6 }
 0x64f   : > { %9562 = dma.done.wait (!%p9477_p2), %s6716_s15, 1024  }
 0x650   : > { %9564 = vsyncadd (!%p9477_p2), %s6716_s15, 4294966272  ;;  %p17_p3 = scmp.ge.s32.totalorder %s9651_s30, 4   ;;  %s12767_s24 = smov %s9571_s25 }
 0x651   : > { %s12768_s25 = smov %s9575_s26  ;;  %s12769_s26 = smov %s9662_s10 }
 0x652   : > { %s12770_s27 = smov %s9651_s30  ;;  %19 = sbr.rel (!%p17_p3) target bundleno = 3 (0x3), region = 180 }
 0x659   :  { %6721 = vsyncpa [#allocation6], 1 }
 0x65a   :  { %6723 = vsyncpa [#allocation6 + $0x1], 1 }

</bundles_post_ra>
